<compile_context>
chip_gen: v7x
topology: tpu7x:2x2x1
jax: 0.10.0
libtpu: 0.0.40
codegen_flags: <defaults>
</compile_context>

<pallas_src>
import functools

import jax
import jax.numpy as jnp
from jax.experimental import pallas as pl
from jax.experimental.pallas import tpu as pltpu

_LN_EPS = 1e-5                      # PyTorch nn.LayerNorm default
_SQRT_HALF = 0.7071067811865476
_SQRT_2_OVER_PI = 0.7978845608028654


# ---------------------------------------------------------------------------
# In-kernel math helpers (f32 elementwise; v5e has no bf16 VPU/EUP)
# ---------------------------------------------------------------------------
def _erf_as(x):
    # Abramowitz & Stegun 7.1.26, |err| <= 1.5e-7.  Exact division (NOT the approx
    # reciprocal) so the kernel tracks PyTorch's exact-erf GELU to f32 noise.
    a1, a2, a3, a4, a5 = 0.254829592, -0.284496736, 1.421413741, -1.453152027, 1.061405429
    p = 0.3275911
    sign = jnp.where(x >= 0.0, 1.0, -1.0)
    ax = jnp.abs(x)
    t = 1.0 / (1.0 + p * ax)
    poly = ((((a5 * t + a4) * t + a3) * t + a2) * t + a1) * t
    return sign * (1.0 - poly * jnp.exp(-ax * ax))


def _gelu(x, *, tanh_approx):
    if tanh_approx:
        # Cheaper on the VALU; tanh rides the EUP slot.  ~1e-3 abs deviation from exact GELU.
        inner = _SQRT_2_OVER_PI * (x + 0.044715 * x * x * x)
        return 0.5 * x * (1.0 + jnp.tanh(inner))
    return 0.5 * x * (1.0 + _erf_as(x * _SQRT_HALF))


def _layernorm_f32(x, g, b):
    mu = jnp.mean(x, axis=-1, keepdims=True)
    var = jnp.mean(jnp.square(x - mu), axis=-1, keepdims=True)   # biased var, like PyTorch LN
    return (x - mu) * jax.lax.rsqrt(var + _LN_EPS) * g + b


# ---------------------------------------------------------------------------
# Fused FFN kernel: one (bm, E) row tile per grid step; weights resident in VMEM.
# ---------------------------------------------------------------------------
def _ffn_kernel(x_ref, g_ref, bln_ref, w1t_ref, b1_ref, w2t_ref, b2_ref, o_ref,
                *, matmul_dtype, tanh_gelu):
    x = x_ref[...].astype(jnp.float32)
    y = _layernorm_f32(x, g_ref[...].astype(jnp.float32), bln_ref[...].astype(jnp.float32))

    mm_dt = jnp.float32 if matmul_dtype is None else matmul_dtype

    h = jnp.dot(y.astype(mm_dt), w1t_ref[...].astype(mm_dt),
                preferred_element_type=jnp.float32) + b1_ref[...].astype(jnp.float32)
    h = _gelu(h, tanh_approx=tanh_gelu)
    out = jnp.dot(h.astype(mm_dt), w2t_ref[...].astype(mm_dt),
                  preferred_element_type=jnp.float32) + b2_ref[...].astype(jnp.float32)
    o_ref[...] = out.astype(o_ref.dtype)


# ---------------------------------------------------------------------------
# Tiling / VMEM planning
# ---------------------------------------------------------------------------
def _round_up(x, n):
    return ((x + n - 1) // n) * n


def _vmem_budget_bytes():
    """~80% of physical per-core VMEM: v5e/v6e (128 MiB) -> ~102 MiB, v7x (64 MiB) -> ~51 MiB.
    Leaves Mosaic internal-scratch / spill headroom."""
    try:
        cap = int(pltpu.get_tpu_info().vmem_capacity_bytes)
    except Exception:
        cap = 64 * 1024 * 1024   # conservative fallback (v7x per-TensorCore)
    return max(32 * 1024 * 1024, int(cap * 0.80))


def _plan_row_block(m, e, hdim, io_itemsize, w_itemsize, budget):
    """Pick the row tile bm (multiple of 8) from the VMEM budget."""
    # Resident, single-buffered weights + (8,128)-padded biases / LN params.
    weight_bytes = 2 * e * hdim * w_itemsize + (hdim + 3 * e) * 8 * 4
    # Per-row bytes: double-buffered in/out tiles + rough f32 temporaries (y, h, gelu temps).
    per_row = 4 * e * io_itemsize + (2 * e + 3 * hdim) * 4
    avail = budget - weight_bytes
    row_cap = max(8, (avail // per_row) // 8 * 8) if avail > 8 * per_row else 8
    # TODO(synk): if weight_bytes alone exceeds the budget (large E*H, esp. v7x 64 MiB VMEM),
    # switch to an H-tiled grid ("arbitrary" axis + f32 accumulator scratch) instead of
    # fully-resident weights.

    bm = min(row_cap, 2048)          # ~1-2 MiB per f32 tile at E=128; enough to hit HBM roofline
    if m >= 512:
        # >=2 grid steps so v7x's two TensorCores both get work, while keeping the MXU
        # M-dimension >= 256 to amortize systolic fill/drain.
        bm = max(256, min(bm, _round_up(pl.cdiv(m, 2), 8)))
    else:
        bm = min(bm, _round_up(m, 8))
    return max(8, min(bm, row_cap))


# ---------------------------------------------------------------------------
# Wrapper
# ---------------------------------------------------------------------------
def ffn_pallas(x, params, *, matmul_dtype=jnp.bfloat16, tanh_gelu=False):
    """FeedForwardNetwork forward: Linear2(GELU(Linear1(LayerNorm(x)))).

    `params` holds pre-transposed weights (transposed once at init, never per-forward):
      w1t: (E, H), b1: (1, H), w2t: (H, E), b2: (1, E), ln_g/ln_b: (1, E)
    """
    e = x.shape[-1]
    hdim = params["w1t"].shape[-1]
    x2 = x.reshape(-1, e)
    m = x2.shape[0]

    w1t = params["w1t"]
    w2t = params["w2t"]
    if matmul_dtype is not None:
        # Halve weight DMA bytes; MXU accumulates in f32 via preferred_element_type.
        w1t = w1t.astype(matmul_dtype)
        w2t = w2t.astype(matmul_dtype)

    budget = _vmem_budget_bytes()
    bm = _plan_row_block(m, e, hdim, x.dtype.itemsize, w1t.dtype.itemsize, budget)
    grid = (pl.cdiv(m, bm),)                 # ragged last block is legal (masked writeback)

    # Constant-index operands (weights / biases / LN params): single buffer, nothing to pipeline.
    resident = dict(pipeline_mode=pl.Buffered(1))

    flops = int(4 * m * e * hdim + 12 * m * (e + hdim))
    transcendentals = int(m * (hdim + 1))    # exp/tanh per hidden element + rsqrt per row
    bytes_accessed = int(2 * m * e * x.dtype.itemsize
                         + 2 * e * hdim * w1t.dtype.itemsize
                         + (hdim + 3 * e) * 4)

    kern = functools.partial(_ffn_kernel, matmul_dtype=matmul_dtype, tanh_gelu=tanh_gelu)
    out = pl.pallas_call(
        kern,
        out_shape=jax.ShapeDtypeStruct((m, e), x.dtype),
        grid=grid,
        in_specs=[
            pl.BlockSpec((bm, e), lambda i: (i, 0)),                 # x rows (pipelined)
            pl.BlockSpec((1, e), lambda i: (0, 0), **resident),      # ln gamma
            pl.BlockSpec((1, e), lambda i: (0, 0), **resident),      # ln beta
            pl.BlockSpec((e, hdim), lambda i: (0, 0), **resident),   # w1^T (resident)
            pl.BlockSpec((1, hdim), lambda i: (0, 0), **resident),   # b1
            pl.BlockSpec((hdim, e), lambda i: (0, 0), **resident),   # w2^T (resident)
            pl.BlockSpec((1, e), lambda i: (0, 0), **resident),      # b2
        ],
        out_specs=pl.BlockSpec((bm, e), lambda i: (i, 0)),
        compiler_params=pltpu.CompilerParams(
            dimension_semantics=("parallel",),
            vmem_limit_bytes=budget,
        ),
        cost_estimate=pl.CostEstimate(
            flops=flops, transcendentals=transcendentals, bytes_accessed=bytes_accessed),
    )(x2, params["ln_g"], params["ln_b"], w1t, params["b1"], w2t, params["b2"])
    return out.reshape(x.shape)


# ---------------------------------------------------------------------------
# Parameter init (deterministic, PyTorch (out, in) layout -> pre-transposed once here)
# ---------------------------------------------------------------------------
def init_ffn_params(key, emb_dim, ff_expansion=2.0, scale=0.05):
    hdim = int(ff_expansion * emb_dim)
    k1, k2, k3, k4 = jax.random.split(key, 4)
    w1 = scale * jax.random.normal(k1, (hdim, emb_dim), jnp.float32)   # PyTorch (out, in)
    w2 = scale * jax.random.normal(k3, (emb_dim, hdim), jnp.float32)
    return {
        "ln_g": jnp.ones((1, emb_dim), jnp.float32),
        "ln_b": jnp.zeros((1, emb_dim), jnp.float32),
        "w1t": w1.T,                                                   # (E, H)
        "b1": (0.02 * jax.random.normal(k2, (hdim,), jnp.float32)).reshape(1, hdim),
        "w2t": w2.T,                                                   # (H, E)
        "b2": (0.02 * jax.random.normal(k4, (emb_dim,), jnp.float32)).reshape(1, emb_dim),
    }


# ---------------------------------------------------------------------------
# Pure-JAX reference: exact-erf GELU, HIGHEST-precision matmuls (true f32 gold standard)
# ---------------------------------------------------------------------------
def ffn_reference(x, params):
    e = x.shape[-1]
    mu = jnp.mean(x, axis=-1, keepdims=True)
    var = jnp.mean(jnp.square(x - mu), axis=-1, keepdims=True)
    y = (x - mu) * jax.lax.rsqrt(var + _LN_EPS) * params["ln_g"].reshape(e) + params["ln_b"].reshape(e)
    hi = jax.lax.Precision.HIGHEST
    h = jnp.dot(y, params["w1t"], precision=hi) + params["b1"].reshape(-1)
    h = 0.5 * h * (1.0 + jax.scipy.special.erf(h * _SQRT_HALF))
    return jnp.dot(h, params["w2t"], precision=hi) + params["b2"].reshape(-1)


# ---------------------------------------------------------------------------
if __name__ == "__main__":
    # NOTE: nn.Dropout is identity in eval/inference; not modeled as a kernel.
    EMB_DIM = 128          # multiple of 128 -> lane-dense stores (multiples of 256 fill the
                           # v6e/v7x MXU contraction better; shape-level choice, not kernel-level)
    FF_EXPANSION = 2.0     # FeedForwardNetwork default -> hidden = 256
    BATCH, SEQ = 2, 256    # m = 512 rows -> bm = 256, 2 parallel grid steps (feeds both v7x TCs)

    key = jax.random.PRNGKey(0)
    pkey, xkey = jax.random.split(key)
    params = init_ffn_params(pkey, EMB_DIM, FF_EXPANSION)
    hidden_states = jax.random.normal(xkey, (BATCH, SEQ, EMB_DIM), jnp.float32)

    ref = ffn_reference(hidden_states, params)

    # Default (recommended) path: bf16 MXU operands, f32 accumulation.
    out = jax.block_until_ready(jax.jit(ffn_pallas)(hidden_states, params))
    assert out.shape == hidden_states.shape, out.shape
    assert bool(jnp.all(jnp.isfinite(out)))
    err_bf16 = float(jnp.max(jnp.abs(out - ref)))
    assert err_bf16 < 3e-2, f"bf16-operand path max abs err vs reference: {err_bf16}"

    # f32-operand path: checks the LN -> Linear -> exact-erf GELU -> Linear chain itself.
    fwd_f32 = jax.jit(functools.partial(ffn_pallas, matmul_dtype=None))
    out_f32 = jax.block_until_ready(fwd_f32(hidden_states, params))
    err_f32 = float(jnp.max(jnp.abs(out_f32 - ref)))
    assert err_f32 < 1e-2, f"f32-operand path max abs err vs reference: {err_f32}"

    print("KERNEL_OK")
</pallas_src>

<mosaic_0001>
module attributes {stable_mosaic.version = 11 : i64} {
  func.func @_ffn_kernel(%arg0: i32, %arg1: memref<256x128xf32, #tpu.memory_space<vmem>>, %arg2: memref<1x128xf32, #tpu.memory_space<vmem>>, %arg3: memref<1x128xf32, #tpu.memory_space<vmem>>, %arg4: memref<128x256xbf16, #tpu.memory_space<vmem>>, %arg5: memref<1x256xf32, #tpu.memory_space<vmem>>, %arg6: memref<256x128xbf16, #tpu.memory_space<vmem>>, %arg7: memref<1x128xf32, #tpu.memory_space<vmem>>, %arg8: memref<256x128xf32, #tpu.memory_space<vmem>>) attributes {dimension_semantics = [#tpu.dimension_semantics<parallel>], iteration_bounds = array<i64: 2>, scalar_prefetch = 0 : i64, scratch_operands = 0 : i64, tpu.core_type = #tpu.core_type<tc>, window_params = [{transform_indices = @transform_0, window_bounds = array<i64: 256, 128>}, {pipeline_mode = #tpu.pipeline_mode<synchronous>, transform_indices = @transform_1, window_bounds = array<i64: 1, 128>}, {pipeline_mode = #tpu.pipeline_mode<synchronous>, transform_indices = @transform_2, window_bounds = array<i64: 1, 128>}, {pipeline_mode = #tpu.pipeline_mode<synchronous>, transform_indices = @transform_3, window_bounds = array<i64: 128, 256>}, {pipeline_mode = #tpu.pipeline_mode<synchronous>, transform_indices = @transform_4, window_bounds = array<i64: 1, 256>}, {pipeline_mode = #tpu.pipeline_mode<synchronous>, transform_indices = @transform_5, window_bounds = array<i64: 256, 128>}, {pipeline_mode = #tpu.pipeline_mode<synchronous>, transform_indices = @transform_6, window_bounds = array<i64: 1, 128>}, {transform_indices = @transform_7, window_bounds = array<i64: 256, 128>}]} {
    %c0 = arith.constant 0 : index
    %c0_0 = arith.constant 0 : index
    %0 = vector.load %arg1[%c0, %c0_0] : memref<256x128xf32, #tpu.memory_space<vmem>>, vector<256x128xf32>
    %c0_1 = arith.constant 0 : index
    %c0_2 = arith.constant 0 : index
    %1 = vector.load %arg2[%c0_1, %c0_2] : memref<1x128xf32, #tpu.memory_space<vmem>>, vector<1x128xf32>
    %c0_3 = arith.constant 0 : index
    %c0_4 = arith.constant 0 : index
    %2 = vector.load %arg3[%c0_3, %c0_4] : memref<1x128xf32, #tpu.memory_space<vmem>>, vector<1x128xf32>
    %cst = arith.constant dense<0.000000e+00> : vector<256xf32>
    %3 = vector.multi_reduction <add>, %0, %cst [1] : vector<256x128xf32> to vector<256xf32>
    %4 = vector.shape_cast %3 : vector<256xf32> to vector<256x1xf32>
    %cst_5 = arith.constant 1.280000e+02 : f32
    %5 = vector.broadcast %cst_5 : f32 to vector<256x1xf32>
    %6 = arith.divf %4, %5 : vector<256x1xf32>
    %7 = vector.broadcast %6 : vector<256x1xf32> to vector<256x128xf32>
    %8 = arith.subf %0, %7 : vector<256x128xf32>
    %9 = arith.mulf %8, %8 : vector<256x128xf32>
    %cst_6 = arith.constant dense<0.000000e+00> : vector<256xf32>
    %10 = vector.multi_reduction <add>, %9, %cst_6 [1] : vector<256x128xf32> to vector<256xf32>
    %11 = vector.shape_cast %10 : vector<256xf32> to vector<256x1xf32>
    %cst_7 = arith.constant 1.280000e+02 : f32
    %12 = vector.broadcast %cst_7 : f32 to vector<256x1xf32>
    %13 = arith.divf %11, %12 : vector<256x1xf32>
    %14 = vector.broadcast %6 : vector<256x1xf32> to vector<256x128xf32>
    %15 = arith.subf %0, %14 : vector<256x128xf32>
    %cst_8 = arith.constant 9.99999974E-6 : f32
    %16 = vector.broadcast %cst_8 : f32 to vector<256x1xf32>
    %17 = arith.addf %13, %16 : vector<256x1xf32>
    %18 = math.rsqrt %17 : vector<256x1xf32>
    %19 = vector.broadcast %18 : vector<256x1xf32> to vector<256x128xf32>
    %20 = arith.mulf %15, %19 : vector<256x128xf32>
    %21 = vector.broadcast %1 : vector<1x128xf32> to vector<256x128xf32>
    %22 = arith.mulf %20, %21 : vector<256x128xf32>
    %23 = vector.broadcast %2 : vector<1x128xf32> to vector<256x128xf32>
    %24 = arith.addf %22, %23 : vector<256x128xf32>
    %25 = arith.truncf %24 : vector<256x128xf32> to vector<256x128xbf16>
    %c0_9 = arith.constant 0 : index
    %c0_10 = arith.constant 0 : index
    %26 = vector.load %arg4[%c0_9, %c0_10] : memref<128x256xbf16, #tpu.memory_space<vmem>>, vector<128x256xbf16>
    %cst_11 = arith.constant dense<0.000000e+00> : vector<256x256xf32>
    %27 = tpu.matmul %25, %26, %cst_11 {dimension_numbers = #tpu.dot_dimension_numbers<[1], [0], [0], [1], [0, 0, 1, 1], [], []>} : vector<256x128xbf16>, vector<128x256xbf16>, vector<256x256xf32> -> vector<256x256xf32>
    %c0_12 = arith.constant 0 : index
    %c0_13 = arith.constant 0 : index
    %28 = vector.load %arg5[%c0_12, %c0_13] : memref<1x256xf32, #tpu.memory_space<vmem>>, vector<1x256xf32>
    %29 = vector.broadcast %28 : vector<1x256xf32> to vector<256x256xf32>
    %30 = arith.addf %27, %29 : vector<256x256xf32>
    %cst_14 = arith.constant 5.000000e-01 : f32
    %31 = vector.broadcast %cst_14 : f32 to vector<256x256xf32>
    %32 = arith.mulf %31, %30 : vector<256x256xf32>
    %cst_15 = arith.constant 0.707106769 : f32
    %33 = vector.broadcast %cst_15 : f32 to vector<256x256xf32>
    %34 = arith.mulf %30, %33 : vector<256x256xf32>
    %cst_16 = arith.constant 0.000000e+00 : f32
    %35 = vector.broadcast %cst_16 : f32 to vector<256x256xf32>
    %36 = arith.cmpf oge, %34, %35 : vector<256x256xf32>
    %cst_17 = arith.constant 1.000000e+00 : f32
    %cst_18 = arith.constant -1.000000e+00 : f32
    %37 = vector.broadcast %cst_17 : f32 to vector<256x256xf32>
    %38 = vector.broadcast %cst_18 : f32 to vector<256x256xf32>
    %39 = arith.select %36, %37, %38 : vector<256x256xi1>, vector<256x256xf32>
    %40 = math.absf %34 : vector<256x256xf32>
    %cst_19 = arith.constant 0.327591091 : f32
    %41 = vector.broadcast %cst_19 : f32 to vector<256x256xf32>
    %42 = arith.mulf %41, %40 : vector<256x256xf32>
    %cst_20 = arith.constant 1.000000e+00 : f32
    %43 = vector.broadcast %cst_20 : f32 to vector<256x256xf32>
    %44 = arith.addf %43, %42 : vector<256x256xf32>
    %cst_21 = arith.constant 1.000000e+00 : f32
    %45 = vector.broadcast %cst_21 : f32 to vector<256x256xf32>
    %46 = arith.divf %45, %44 : vector<256x256xf32>
    %cst_22 = arith.constant 1.06140542 : f32
    %47 = vector.broadcast %cst_22 : f32 to vector<256x256xf32>
    %48 = arith.mulf %47, %46 : vector<256x256xf32>
    %cst_23 = arith.constant -1.45315206 : f32
    %49 = vector.broadcast %cst_23 : f32 to vector<256x256xf32>
    %50 = arith.addf %48, %49 : vector<256x256xf32>
    %51 = arith.mulf %50, %46 : vector<256x256xf32>
    %cst_24 = arith.constant 1.42141378 : f32
    %52 = vector.broadcast %cst_24 : f32 to vector<256x256xf32>
    %53 = arith.addf %51, %52 : vector<256x256xf32>
    %54 = arith.mulf %53, %46 : vector<256x256xf32>
    %cst_25 = arith.constant -0.284496725 : f32
    %55 = vector.broadcast %cst_25 : f32 to vector<256x256xf32>
    %56 = arith.addf %54, %55 : vector<256x256xf32>
    %57 = arith.mulf %56, %46 : vector<256x256xf32>
    %cst_26 = arith.constant 0.254829586 : f32
    %58 = vector.broadcast %cst_26 : f32 to vector<256x256xf32>
    %59 = arith.addf %57, %58 : vector<256x256xf32>
    %60 = arith.mulf %59, %46 : vector<256x256xf32>
    %cst_27 = arith.constant 0.000000e+00 : f32
    %61 = vector.broadcast %cst_27 : f32 to vector<256x256xf32>
    %62 = arith.subf %61, %40 : vector<256x256xf32>
    %63 = arith.mulf %62, %40 : vector<256x256xf32>
    %64 = math.exp %63 : vector<256x256xf32>
    %65 = arith.mulf %60, %64 : vector<256x256xf32>
    %cst_28 = arith.constant 1.000000e+00 : f32
    %66 = vector.broadcast %cst_28 : f32 to vector<256x256xf32>
    %67 = arith.subf %66, %65 : vector<256x256xf32>
    %68 = arith.mulf %39, %67 : vector<256x256xf32>
    %cst_29 = arith.constant 1.000000e+00 : f32
    %69 = vector.broadcast %cst_29 : f32 to vector<256x256xf32>
    %70 = arith.addf %69, %68 : vector<256x256xf32>
    %71 = arith.mulf %32, %70 : vector<256x256xf32>
    %72 = arith.truncf %71 : vector<256x256xf32> to vector<256x256xbf16>
    %c0_30 = arith.constant 0 : index
    %c0_31 = arith.constant 0 : index
    %73 = vector.load %arg6[%c0_30, %c0_31] : memref<256x128xbf16, #tpu.memory_space<vmem>>, vector<256x128xbf16>
    %cst_32 = arith.constant dense<0.000000e+00> : vector<256x128xf32>
    %74 = tpu.matmul %72, %73, %cst_32 {dimension_numbers = #tpu.dot_dimension_numbers<[1], [0], [0], [1], [0, 0, 1, 1], [], []>} : vector<256x256xbf16>, vector<256x128xbf16>, vector<256x128xf32> -> vector<256x128xf32>
    %c0_33 = arith.constant 0 : index
    %c0_34 = arith.constant 0 : index
    %75 = vector.load %arg7[%c0_33, %c0_34] : memref<1x128xf32, #tpu.memory_space<vmem>>, vector<1x128xf32>
    %76 = vector.broadcast %75 : vector<1x128xf32> to vector<256x128xf32>
    %77 = arith.addf %74, %76 : vector<256x128xf32>
    %c0_35 = arith.constant 0 : index
    %c0_36 = arith.constant 0 : index
    %78 = vector.load %arg8[%c0_35, %c0_36] : memref<256x128xf32, #tpu.memory_space<vmem>>, vector<256x128xf32>
    tpu.vector_store %arg8[%c0_35, %c0_36], %77 {strides = array<i32>} : memref<256x128xf32, #tpu.memory_space<vmem>>, vector<256x128xf32>,
    return
  }
  func.func @transform_0(%arg0: i32) -> (i32, i32) {
    %c0_i32 = arith.constant 0 : i32
    %c0_i32_0 = arith.constant 0 : i32
    return %arg0, %c0_i32 : i32, i32
  }
  func.func @transform_1(%arg0: i32) -> (i32, i32) {
    %c0_i32 = arith.constant 0 : i32
    %c0_i32_0 = arith.constant 0 : i32
    %c0_i32_1 = arith.constant 0 : i32
    return %c0_i32, %c0_i32_0 : i32, i32
  }
  func.func @transform_2(%arg0: i32) -> (i32, i32) {
    %c0_i32 = arith.constant 0 : i32
    %c0_i32_0 = arith.constant 0 : i32
    %c0_i32_1 = arith.constant 0 : i32
    return %c0_i32, %c0_i32_0 : i32, i32
  }
  func.func @transform_3(%arg0: i32) -> (i32, i32) {
    %c0_i32 = arith.constant 0 : i32
    %c0_i32_0 = arith.constant 0 : i32
    %c0_i32_1 = arith.constant 0 : i32
    return %c0_i32, %c0_i32_0 : i32, i32
  }
  func.func @transform_4(%arg0: i32) -> (i32, i32) {
    %c0_i32 = arith.constant 0 : i32
    %c0_i32_0 = arith.constant 0 : i32
    %c0_i32_1 = arith.constant 0 : i32
    return %c0_i32, %c0_i32_0 : i32, i32
  }
  func.func @transform_5(%arg0: i32) -> (i32, i32) {
    %c0_i32 = arith.constant 0 : i32
    %c0_i32_0 = arith.constant 0 : i32
    %c0_i32_1 = arith.constant 0 : i32
    return %c0_i32, %c0_i32_0 : i32, i32
  }
  func.func @transform_6(%arg0: i32) -> (i32, i32) {
    %c0_i32 = arith.constant 0 : i32
    %c0_i32_0 = arith.constant 0 : i32
    %c0_i32_1 = arith.constant 0 : i32
    return %c0_i32, %c0_i32_0 : i32, i32
  }
  func.func @transform_7(%arg0: i32) -> (i32, i32) {
    %c0_i32 = arith.constant 0 : i32
    %c0_i32_0 = arith.constant 0 : i32
    return %arg0, %c0_i32 : i32, i32
  }
}

</mosaic_0001>

<bundles_post_ra>
// kernel: ffn_pallas.1
= control target key start
LH: loop header
LB: loop body
LE: loop exit
PB: predicated region body
PF: predicated region fallthrough
CT: control target
= control target key end

     0   :  { %12 = vsyncpa [#allocation3], 0  ;;  %s6562_s0 = inlined_call_operand.vmem [shape: f32[512,128], index: 0, kind: input, shape index: {}]   ;;  %s6563_s1 = inlined_call_operand.vmem [shape: f32[1,128], index: 1, kind: input, shape index: {}]   ;;  %s6564_s2 = inlined_call_operand.vmem [shape: f32[1,128], index: 2, kind: input, shape index: {}]   ;;  %s6565_s3 = inlined_call_operand.vmem [shape: bf16[128,256], index: 3, kind: input, shape index: {}]   ;;  %s6566_s4 = inlined_call_operand.vmem [shape: f32[1,256], index: 4, kind: input, shape index: {}]   ;;  %s6567_s5 = inlined_call_operand.vmem [shape: bf16[256,128], index: 5, kind: input, shape index: {}]   ;;  %s6568_s6 = inlined_call_operand.vmem [shape: f32[1,128], index: 6, kind: input, shape index: {}]   ;;  %s6569_s7 = inlined_call_operand.hbm [shape: f32[512,128], index: 7, kind: output, shape index: {}]  }
   0x1   :  { %14 = vsyncpa [#allocation3 + $0x1], 0  ;;  %s3897_s24 = smov 0   ;;  %s3899_s25 = smov 0  }
   0x2   :  { %s3901_s26 = smov 0   ;;  %s3903_s27 = smov 0  }
   0x3 LB: > { %s3918_s28 = sadd.s32 4294967295, %s3850_s27   ;;  %s3225_s29 = sadd.s32 4294967294, %s3850_s27   ;;  %s3850_s27 = sphi %s3903_s27, %s6680_s27   ;;  %s3846_s26 = sphi %s3901_s26, %s6679_s26   ;;  %s3842_s25 = sphi %s3899_s25, %s6678_s25   ;;  %s3838_s24 = sphi %s3897_s24, %s6677_s24  }
   0x4   : > { %s3922_s30 = sadd.s32 1, %s3850_s27   ;;  %s179_s8 = sadd.s32 1, %s3846_s26 }
   0x5   : > { %s176_s9 = ssub.s32 %s3850_s27, %s3922_s30  ;;  %p189_p0 = scmp.ne.s32.totalorder %s3846_s26, %s3842_s25 }
   0x6   : > { %p177_p1 = scmp.eq.s32.totalorder %s176_s9, 0  ;;  %p190_p2 = scmp.eq.s32.totalorder %s3918_s28, 1 }
   0x7   : > { %p195_p3 = scmp.ne.s32.totalorder %s3842_s25, %s3838_s24  ;;  %p196_p4 = scmp.eq.s32.totalorder %s3225_s29, 1 }
   0x8   : > { %s3933_s10 = scalar_select %p177_p1, %s3846_s26, %s179_s8  }
   0x9   : > { %p3935_p5 = por %p190_p2, %p189_p0  ;;  %p3939_p6 = por %p196_p4, %p195_p3 }
   0xa   : > { %p3228_p7 = scmp.ge.s32.totalorder %s3850_s27, 1  ;;  %p241_p8 = scmp.lt.s32.totalorder %s3850_s27, 3 }
   0xc   : > { %p242_p9 = pnand %p3228_p7, %p241_p8 }
   0xe   : > { %245 = sbr.rel (%p242_p9) target bundleno = 1255 (0x4e7), region = 48 }
  0x15   : > { %s3230_s13 = sshll.u32 %s3918_s28, 5  ;;  %v3428_v20 = vld [vmem:[%s6565_s3 + $0x4] ss:$8 sps:$4 sm:$0xff]   ;;  %v3430_v21 = vld [vmem:[%s6565_s3] ss:$8 sps:$4 sm:$0xff]   ;;  %s270_s20 = sand.u32 1, %s3842_s25  }
  0x16   : > { %p274_p10 = scmp.lt.s32.totalorder %s3230_s13, 63  ;;  %v3431_v22 = vld [vmem:[%s6565_s3 + $0x14] ss:$8 sps:$4 sm:$0xff]   ;;  %868 = vmatprep.subr.bf16.mxu0 %v3428_v20  ;;  %v3433_v51 = vld [vmem:[%s6565_s3 + $0x10] ss:$8 sps:$4 sm:$0xff]   ;;  %s3229_s21 = sshll.u32 %s270_s20, 8 }
  0x17   : > { %869 = vmatpush1.bf16.msra.mxu0 %v3430_v21  ;;  %v3434_v54 = vld [vmem:[%s6565_s3 + $0x24] ss:$8 sps:$4 sm:$0xff]   ;;  %v3436_v58 = vld [vmem:[%s6565_s3 + $0x20] ss:$8 sps:$4 sm:$0xff]   ;;  %v3437_v61 = vld [vmem:[%s6565_s3 + $0x34] ss:$8 sps:$4 sm:$0xff]  }
  0x18   : > { %s6682_s13 = smov (!%p274_p10, %s3230_s13), 63  ;;  %870 = vmatprep.subr.bf16.mxu0 %v3431_v22  ;;  %v3442_v21 = vld [vmem:[%s6565_s3 + $0x40] ss:$8 sps:$4 sm:$0xff]   ;;  %s3272_s29 = sshll.u32 %s3918_s28, 12 }
  0x19   : > { %s3231_s14 = sshll.u32 %s6682_s13, 3  ;;  %s6521_s28 = scalar_lea.sflag [#allocation3], %s270_s20 }
  0x1a   : > { %s3949_s17 = scalar_lea.vmem %s6562_s0, %s3231_s14  ;;  %s6512_s14 = scalar_lea.hbm %s6569_s7, %s3272_s29 }
  0x1b   : > { %v281_v0 = vld [vmem:[%s3949_s17] sm:$0xff]  ;;  %v283_v1 = vld [vmem:[%s3949_s17 + $0x10] sm:$0xff]  ;;  %v282_v2 = vld [vmem:[%s3949_s17 + $0x8] sm:$0xff]  ;;  %871 = vmatpush1.bf16.msra.mxu0 %v3433_v51  ;;  %s3854_s16 = smov [#allocation2]  }
  0x1c   : > { %315 = vadd.xlane.f32.xlu0 %v281_v0  ;;  %319 = vadd.xlane.f32.xlu1 %v283_v1  ;;  %v284_v3 = vld [vmem:[%s3949_s17 + $0x18] sm:$0xff]  ;;  %v3956_v4 = vld [vmem:[%s3949_s17 + $0x20] sm:$0xff]  ;;  %v3959_v5 = vld [vmem:[%s3949_s17 + $0x28] sm:$0xff]  ;;  %s3792_s18 = sshll.u32 %s3854_s16, 4  ;;  %s3793_s18 = int_to_ptr.vmem [resolvable:$false] %s3792_s18 }
  0x1d   : > { %v3962_v6 = vld [vmem:[%s3949_s17 + $0x30] sm:$0xff]  ;;  %v3965_v7 = vld [vmem:[%s3949_s17 + $0x38] sm:$0xff]  ;;  %v3970_v8 = vld [vmem:[%s3949_s17 + $0x40] sm:$0xff]  ;;  %872 = vmatprep.subr.bf16.mxu0 %v3434_v54  ;;  %s3794_s19 = scalar_lea.vmem %s3793_s18, 8192 }
  0x1e   : > { %v3973_v9 = vld [vmem:[%s3949_s17 + $0x48] sm:$0xff]  ;;  %v3980_v10 = vld [vmem:[%s3949_s17 + $0x50] sm:$0xff]  ;;  %v3983_v11 = vld [vmem:[%s3949_s17 + $0x58] sm:$0xff] }
  0x1f   : > { %v3988_v12 = vld [vmem:[%s3949_s17 + $0x60] sm:$0xff]  ;;  %v3991_v13 = vld [vmem:[%s3949_s17 + $0x68] sm:$0xff]  ;;  %v3996_v14 = vld [vmem:[%s3949_s17 + $0x70] sm:$0xff]  ;;  %873 = vmatpush1.bf16.msra.mxu0 %v3436_v58 }
  0x20   : > { %317 = vadd.xlane.f32.xlu0 %v282_v2  ;;  %321 = vadd.xlane.f32.xlu1 %v284_v3  ;;  %v3999_v15 = vld [vmem:[%s3949_s17 + $0x78] sm:$0xff]  ;;  %v4004_v16 = vld [vmem:[%s3949_s17 + $0x80] sm:$0xff]  ;;  %v4007_v17 = vld [vmem:[%s3949_s17 + $0x88] sm:$0xff] }
  0x21   : > { %v4012_v18 = vld [vmem:[%s3949_s17 + $0x90] sm:$0xff]  ;;  %v4015_v19 = vld [vmem:[%s3949_s17 + $0x98] sm:$0xff]  ;;  %v4037_v35 = vld [vmem:[%s3949_s17 + $0xa0] sm:$0xff]  ;;  %874 = vmatprep.subr.bf16.mxu0 %v3437_v61 }
  0x22   : > { %v4047_v41 = vld [vmem:[%s3949_s17 + $0xa8] sm:$0xff]  ;;  %v4056_v46 = vld [vmem:[%s3949_s17 + $0xb0] sm:$0xff]  ;;  %v4068_v52 = vld [vmem:[%s3949_s17 + $0xb8] sm:$0xff] }
  0x23   : > { %v4083_v59 = vld [vmem:[%s3949_s17 + $0xc0] sm:$0xff]  ;;  %v4113_v22 = vld [vmem:[%s3949_s17 + $0xd0] sm:$0xff] }
  0x24   : > { %323 = vadd.xlane.f32.xlu0 %v3956_v4  ;;  %325 = vadd.xlane.f32.xlu1 %v3959_v5  ;;  %v4167_v58 = vld [vmem:[%s3949_s17 + $0xf0] sm:$0xff] }
  0x28   : > { %327 = vadd.xlane.f32.xlu0 %v3962_v6  ;;  %329 = vadd.xlane.f32.xlu1 %v3965_v7 }
  0x2c   : > { %331 = vadd.xlane.f32.xlu0 %v3970_v8  ;;  %333 = vadd.xlane.f32.xlu1 %v3973_v9 }
  0x30   : > { %335 = vadd.xlane.f32.xlu0 %v3980_v10  ;;  %337 = vadd.xlane.f32.xlu1 %v3983_v11 }
  0x34   : > { %339 = vadd.xlane.f32.xlu0 %v3988_v12  ;;  %341 = vadd.xlane.f32.xlu1 %v3991_v13 }
  0x38   : > { %343 = vadd.xlane.f32.xlu0 %v3996_v14  ;;  %345 = vadd.xlane.f32.xlu1 %v3999_v15 }
  0x3c   : > { %347 = vadd.xlane.f32.xlu0 %v4004_v16  ;;  %349 = vadd.xlane.f32.xlu1 %v4007_v17 }
  0x40   : > { %351 = vadd.xlane.f32.xlu0 %v4012_v18  ;;  %353 = vadd.xlane.f32.xlu1 %v4015_v19 }
  0xa9   : > { %v316_v23 = vpop.xlane.xlu0 %315  ;;  %v320_v24 = vpop.xlane.xlu1 %319 }
  0xaa   : > { %v380_v25 = vmul.f32 0.0078125, %v316_v23  ;;  %v382_v27 = vmul.f32 0.0078125, %v320_v24 }
  0xac   : > { %v4028_v26 = vsub.f32 %v281_v0, %v380_v25  ;;  %v4034_v33 = vsub.f32 %v283_v1, %v382_v27  ;;  %v3439_v1 = vld [vmem:[%s6565_s3 + $0x30] ss:$8 sps:$4 sm:$0xff]  }
  0xad   : > { %v318_v28 = vpop.xlane.xlu0 %317  ;;  %v322_v29 = vpop.xlane.xlu1 %321  ;;  %875 = vmatpush1.bf16.msra.mxu0 %v3439_v1 }
  0xae   : > { %v381_v30 = vmul.f32 0.0078125, %v318_v28  ;;  %v444_v31 = vmul.f32 %v4028_v26, %v4028_v26  ;;  %v383_v34 = vmul.f32 0.0078125, %v322_v29  ;;  %v446_v39 = vmul.f32 %v4034_v33, %v4034_v33  ;;  %v3445_v29 = vld [vmem:[%s6565_s3 + $0x50] ss:$8 sps:$4 sm:$0xff]  }
  0xb0   : > { %v4032_v32 = vsub.f32 %v282_v2, %v381_v30  ;;  %476 = vadd.xlane.f32.xlu0 %v444_v31  ;;  %v4042_v38 = vsub.f32 %v284_v3, %v383_v34  ;;  %v4098_v2 = vld [vmem:[%s3949_s17 + $0xc8] sm:$0xff]  ;;  %v4128_v30 = vld [vmem:[%s3949_s17 + $0xd8] sm:$0xff] }
  0xb1   : > { %v324_v36 = vpop.xlane.xlu0 %323  ;;  %v326_v42 = vpop.xlane.xlu1 %325  ;;  %v3446_v34 = vld [vmem:[%s6565_s3 + $0x64] ss:$8 sps:$4 sm:$0xff]  }
  0xb2   : > { %v445_v37 = vmul.f32 %v4032_v32, %v4032_v32  ;;  %v384_v40 = vmul.f32 0.0078125, %v324_v36  ;;  %v447_v44 = vmul.f32 %v4042_v38, %v4042_v38  ;;  %v385_v45 = vmul.f32 0.0078125, %v326_v42 }
  0xb4   : > { %355 = vadd.xlane.f32.xlu0 %v4037_v35  ;;  %478 = vadd.xlane.f32.xlu1 %v445_v37  ;;  %v4051_v43 = vsub.f32 %v3956_v4, %v384_v40  ;;  %v4060_v48 = vsub.f32 %v3959_v5, %v385_v45  ;;  %v3440_v5 = vld [vmem:[%s6565_s3 + $0x44] ss:$8 sps:$4 sm:$0xff]  }
  0xb5   : > { %v328_v47 = vpop.xlane.xlu0 %327  ;;  %v330_v53 = vpop.xlane.xlu1 %329  ;;  %876 = vmatprep.subr.bf16.mxu0 %v3440_v5  ;;  %v4143_v40 = vld [vmem:[%s3949_s17 + $0xe0] sm:$0xff] }
  0xb6   : > { %v448_v49 = vmul.f32 %v4051_v43, %v4051_v43  ;;  %v386_v50 = vmul.f32 0.0078125, %v328_v47  ;;  %v449_v56 = vmul.f32 %v4060_v48, %v4060_v48  ;;  %v387_v57 = vmul.f32 0.0078125, %v330_v53  ;;  %877 = vmatpush1.bf16.msra.mxu0 %v3442_v21 }
  0xb8   : > { %480 = vadd.xlane.f32.xlu0 %v446_v39  ;;  %357 = vadd.xlane.f32.xlu1 %v4047_v41  ;;  %v4075_v55 = vsub.f32 %v3962_v6, %v386_v50  ;;  %v4090_v62 = vsub.f32 %v3965_v7, %v387_v57  ;;  %v3448_v39 = vld [vmem:[%s6565_s3 + $0x60] ss:$8 sps:$4 sm:$0xff]  }
  0xb9   : > { %v332_v60 = vpop.xlane.xlu0 %331  ;;  %v334_v3 = vpop.xlane.xlu1 %333  ;;  %v4158_v50 = vld [vmem:[%s3949_s17 + $0xe8] sm:$0xff] }
  0xba   : > { %v450_v63 = vmul.f32 %v4075_v55, %v4075_v55  ;;  %v388_v0 = vmul.f32 0.0078125, %v332_v60  ;;  %v451_v7 = vmul.f32 %v4090_v62, %v4090_v62  ;;  %v389_v20 = vmul.f32 0.0078125, %v334_v3 }
  0xbb   : > { %v3852_v60 = vmov 0  }
  0xbc   : > { %359 = vadd.xlane.f32.xlu0 %v4056_v46  ;;  %482 = vadd.xlane.f32.xlu1 %v447_v44  ;;  %v4105_v6 = vsub.f32 %v3970_v8, %v388_v0  ;;  %v3443_v8 = vld [vmem:[%s6565_s3 + $0x54] ss:$8 sps:$4 sm:$0xff]   ;;  %v4120_v25 = vsub.f32 %v3973_v9, %v389_v20 }
  0xbd   : > { %v336_v4 = vpop.xlane.xlu0 %335  ;;  %v338_v23 = vpop.xlane.xlu1 %337  ;;  %878 = vmatprep.subr.bf16.mxu0 %v3443_v8  ;;  %v3449_v44 = vld [vmem:[%s6565_s3 + $0x74] ss:$8 sps:$4 sm:$0xff]   ;;  %900 = vmatprep.mubr.bf16.mxu0 %v3852_v60 }
  0xbe   : > { %v452_v27 = vmul.f32 %v4105_v6, %v4105_v6  ;;  %v390_v28 = vmul.f32 0.0078125, %v336_v4  ;;  %879 = vmatpush1.bf16.msra.mxu0 %v3445_v29  ;;  %v453_v36 = vmul.f32 %v4120_v25, %v4120_v25  ;;  %v391_v37 = vmul.f32 0.0078125, %v338_v23  ;;  %v4180_v4 = vld [vmem:[%s3949_s17 + $0xf8] sm:$0xff]  ;;  %s6406_s17 = scalar_lea.vmem [#allocation2], %s3229_s21 }
  0xbf   : > { %880 = vmatprep.subr.bf16.mxu0 %v3446_v34  ;;  %s3163_s8 = sshll.u32 %s6406_s17, 4  ;;  %s6514_s8 = int_to_ptr.vmem [resolvable:$true] %s3163_s8 }
  0xc0   : > { %361 = vadd.xlane.f32.xlu1 %v4068_v52  ;;  %484 = vadd.xlane.f32.xlu0 %v448_v49  ;;  %v4135_v9 = vsub.f32 %v3980_v10, %v390_v28  ;;  %v4150_v10 = vsub.f32 %v3983_v11, %v391_v37  ;;  %v3451_v49 = vld [vmem:[%s6565_s3 + $0x70] ss:$8 sps:$4 sm:$0xff]   ;;  %s3788_s15 = scalar_lea.vmem %s6514_s8, 4096  ;;  %p3795_p0 = scmp.lt.s32.totalorder %s6514_s8, %s3793_s18 }
  0xc1   : > { %v340_v24 = vpop.xlane.xlu0 %339  ;;  %v342_v31 = vpop.xlane.xlu1 %341  ;;  %p3789_p11 = scmp.ne.s32.totalorder %s6514_s8, %s3788_s15  ;;  %p3796_p1 = scmp.lt.s32.totalorder %s3794_s19, %s3788_s15 }
  0xc2   : > { %881 = vmatpush1.bf16.msra.mxu0 %v3448_v39  ;;  %v454_v45 = vmul.f32 %v4135_v9, %v4135_v9  ;;  %v392_v47 = vmul.f32 0.0078125, %v340_v24  ;;  %v393_v53 = vmul.f32 0.0078125, %v342_v31 }
  0xc3   : > { %882 = vmatprep.subr.bf16.mxu0 %v3449_v44  ;;  %p3790_p12 = pnand %p3789_p11, %p3935_p5  ;;  %p3797_p2 = por %p3796_p1, %p3795_p0 }
  0xc4   : > { %486 = vadd.xlane.f32.xlu1 %v449_v56  ;;  %363 = vadd.xlane.f32.xlu0 %v4083_v59  ;;  %v4162_v11 = vsub.f32 %v3988_v12, %v392_v47  ;;  %v455_v56 = vmul.f32 %v4150_v10, %v4150_v10  ;;  %v4171_v61 = vsub.f32 %v3991_v13, %v393_v53 }
  0xc5   : > { %v344_v42 = vpop.xlane.xlu0 %343  ;;  %v346_v51 = vpop.xlane.xlu1 %345  ;;  %p3791_p13 = pneg %p3790_p12 }
  0xc6   : > { %883 = vmatpush1.bf16.msra.mxu0 %v3451_v49  ;;  %v394_v57 = vmul.f32 0.0078125, %v344_v42  ;;  %v456_v1 = vmul.f32 %v4162_v11, %v4162_v11  ;;  %v457_v13 = vmul.f32 %v4171_v61, %v4171_v61 }
  0xc7   : > { %p3798_p3 = pnand %p3797_p2, %p3791_p13 }
  0xc8   : > { %365 = vadd.xlane.f32.xlu1 %v4098_v2  ;;  %488 = vadd.xlane.f32.xlu0 %v450_v63  ;;  %v395_v63 = vmul.f32 0.0078125, %v346_v51  ;;  %v4175_v12 = vsub.f32 %v3996_v14, %v394_v57 }
  0xc9   : > { %v348_v54 = vpop.xlane.xlu0 %347  ;;  %v350_v0 = vpop.xlane.xlu1 %349 }
  0xca   : > { %v396_v3 = vmul.f32 0.0078125, %v348_v54  ;;  %v458_v14 = vmul.f32 %v4175_v12, %v4175_v12  ;;  %v397_v21 = vmul.f32 0.0078125, %v350_v0 }
  0xcc   : > { %490 = vadd.xlane.f32.xlu1 %v451_v7  ;;  %367 = vadd.xlane.f32.xlu0 %v4113_v22  ;;  %v4183_v7 = vsub.f32 %v3999_v15, %v395_v63  ;;  %v4189_v20 = vsub.f32 %v4004_v16, %v396_v3  ;;  %v4196_v15 = vsub.f32 %v4007_v17, %v397_v21 }
  0xcd   : > { %v352_v5 = vpop.xlane.xlu0 %351  ;;  %v354_v24 = vpop.xlane.xlu1 %353 }
  0xce   : > { %v398_v23 = vmul.f32 0.0078125, %v352_v5  ;;  %v459_v8 = vmul.f32 %v4183_v7, %v4183_v7  ;;  %v460_v16 = vmul.f32 %v4189_v20, %v4189_v20  ;;  %v399_v28 = vmul.f32 0.0078125, %v354_v24 }
  0xcf   : > { %v461_v31 = vmul.f32 %v4196_v15, %v4196_v15 }
  0xd0   : > { %369 = vadd.xlane.f32.xlu1 %v4128_v30  ;;  %492 = vadd.xlane.f32.xlu0 %v452_v27  ;;  %v4199_v27 = vsub.f32 %v4012_v18, %v398_v23  ;;  %v4204_v29 = vsub.f32 %v4015_v19, %v399_v28 }
  0xd2   : > { %v462_v34 = vmul.f32 %v4199_v27, %v4199_v27  ;;  %v463_v17 = vmul.f32 %v4204_v29, %v4204_v29 }
  0xd4   : > { %494 = vadd.xlane.f32.xlu1 %v453_v36  ;;  %371 = vadd.xlane.f32.xlu0 %v4143_v40 }
  0xd8   : > { %373 = vadd.xlane.f32.xlu1 %v4158_v50  ;;  %496 = vadd.xlane.f32.xlu0 %v454_v45 }
  0xdc   : > { %498 = vadd.xlane.f32.xlu1 %v455_v56  ;;  %375 = vadd.xlane.f32.xlu0 %v4167_v58 }
  0xe0   : > { %377 = vadd.xlane.f32.xlu1 %v4180_v4  ;;  %500 = vadd.xlane.f32.xlu0 %v456_v1 }
  0xe4   : > { %502 = vadd.xlane.f32.xlu1 %v457_v13  ;;  %504 = vadd.xlane.f32.xlu0 %v458_v14 }
  0xe8   : > { %506 = vadd.xlane.f32.xlu1 %v459_v8  ;;  %508 = vadd.xlane.f32.xlu0 %v460_v16 }
  0xec   : > { %510 = vadd.xlane.f32.xlu1 %v461_v31  ;;  %512 = vadd.xlane.f32.xlu0 %v462_v34  ;;  %v4231_v31 = vld [vmem:[%s6563_s1] ss:$0 sm:$0xff] }
  0xf0   : > { %514 = vadd.xlane.f32.xlu1 %v463_v17 }
 0x13d   : > { %v477_v18 = vpop.xlane.xlu0 %476 }
 0x13e   : > { %v540_v36 = vmul.f32 0.0078125, %v477_v18 }
 0x140   : > { %v572_v37 = vadd.f32 1e-05, %v540_v36 }
 0x141   : > { %v479_v39 = vpop.xlane.xlu1 %478  ;;  %v356_v42 = vpop.xlane.xlu0 %355 }
 0x142   : > { %3468 = vrsqrt.f32 %v572_v37  ;;  %v541_v19 = vmul.f32 0.0078125, %v479_v39  ;;  %v400_v44 = vmul.f32 0.0078125, %v356_v42 }
 0x144   : > { %v573_v45 = vadd.f32 1e-05, %v541_v19  ;;  %v4213_v47 = vsub.f32 %v4037_v35, %v400_v44  ;;  %v4243_v44 = vld [vmem:[%s6564_s2] ss:$0 sm:$0xff] }
 0x145   : > { %v358_v49 = vpop.xlane.xlu1 %357  ;;  %v481_v51 = vpop.xlane.xlu0 %480 }
 0x146   : > { %3470 = vrsqrt.f32 %v573_v45  ;;  %v401_v53 = vmul.f32 0.0078125, %v358_v49  ;;  %v542_v54 = vmul.f32 0.0078125, %v481_v51  ;;  %v464_v56 = vmul.f32 %v4213_v47, %v4213_v47 }
 0x148   : > { %v4218_v57 = vsub.f32 %v4047_v41, %v401_v53  ;;  %v574_v63 = vadd.f32 1e-05, %v542_v54  ;;  %516 = vadd.xlane.f32.xlu0 %v464_v56 }
 0x149   : > { %v483_v0 = vpop.xlane.xlu1 %482  ;;  %v360_v1 = vpop.xlane.xlu0 %359 }
 0x14a   : > { %3472 = vrsqrt.f32 %v574_v63  ;;  %v543_v3 = vmul.f32 0.0078125, %v483_v0  ;;  %v402_v5 = vmul.f32 0.0078125, %v360_v1  ;;  %v465_v35 = vmul.f32 %v4218_v57, %v4218_v57 }
 0x14c   : > { %v3469_v13 = vpop.eup %3468  ;;  %v575_v14 = vadd.f32 1e-05, %v543_v3  ;;  %v4223_v21 = vsub.f32 %v4056_v46, %v402_v5  ;;  %518 = vadd.xlane.f32.xlu1 %v465_v35 }
 0x14d   : > { %v362_v23 = vpop.xlane.xlu1 %361  ;;  %v485_v24 = vpop.xlane.xlu0 %484  ;;  %v636_v41 = vmul.f32 %v3469_v13, %v4028_v26 }
 0x14e   : > { %3474 = vrsqrt.f32 %v575_v14  ;;  %v403_v8 = vmul.f32 0.0078125, %v362_v23  ;;  %v544_v16 = vmul.f32 0.0078125, %v485_v24  ;;  %v466_v28 = vmul.f32 %v4223_v21, %v4223_v21 }
 0x14f   : > { %v674_v37 = vmul.f32 %v4231_v31, %v636_v41 }
 0x150   : > { %v3471_v34 = vpop.eup %3470  ;;  %v4234_v46 = vsub.f32 %v4068_v52, %v403_v8  ;;  %v576_v17 = vadd.f32 1e-05, %v544_v16  ;;  %520 = vadd.xlane.f32.xlu0 %v466_v28 }
 0x151   : > { %v487_v18 = vpop.xlane.xlu1 %486  ;;  %v364_v36 = vpop.xlane.xlu0 %363  ;;  %v637_v26 = vmul.f32 %v3471_v34, %v4032_v32  ;;  %v712_v54 = vadd.f32 %v4243_v44, %v674_v37 }
 0x152   : > { %3476 = vrsqrt.f32 %v576_v17  ;;  %v545_v39 = vmul.f32 0.0078125, %v487_v18  ;;  %v404_v42 = vmul.f32 0.0078125, %v364_v36  ;;  %v467_v19 = vmul.f32 %v4234_v46, %v4234_v46 }
 0x153   : > { %v675_v52 = vmul.f32 %v4231_v31, %v637_v26 }
 0x154   : > { %v3473_v45 = vpop.eup %3472  ;;  %v577_v49 = vadd.f32 1e-05, %v545_v39  ;;  %v4247_v51 = vsub.f32 %v4083_v59, %v404_v42  ;;  %522 = vadd.xlane.f32.xlu1 %v467_v19 }
 0x155   : > { %v366_v32 = vpop.xlane.xlu1 %365  ;;  %v489_v53 = vpop.xlane.xlu0 %488  ;;  %v713_v56 = vadd.f32 %v4243_v44, %v675_v52  ;;  %v638_v63 = vmul.f32 %v3473_v45, %v4034_v33 }
 0x156   : > { %3478 = vrsqrt.f32 %v577_v49  ;;  %v405_v0 = vmul.f32 0.0078125, %v366_v32  ;;  %v546_v1 = vmul.f32 0.0078125, %v489_v53  ;;  %v468_v3 = vmul.f32 %v4247_v51, %v4247_v51 }
 0x157   : > { %v744_v5 = vpack.c.bf16 %v713_v56, %v712_v54  ;;  %v676_v33 = vmul.f32 %v4231_v31, %v638_v63 }
 0x158   : > { %v3475_v35 = vpop.eup %3474  ;;  %v4255_v59 = vsub.f32 %v4098_v2, %v405_v0  ;;  %v578_v13 = vadd.f32 1e-05, %v546_v1  ;;  %524 = vadd.xlane.f32.xlu0 %v468_v3 }
 0x159   : > { %v491_v14 = vpop.xlane.xlu1 %490  ;;  %901 = vmatmul.mubr.bf16.vlgmr.msra.gmra.mrb[0].mxu0 %v744_v5  ;;  %v368_v23 = vpop.xlane.xlu0 %367  ;;  %v639_v24 = vmul.f32 %v3475_v35, %v4042_v38  ;;  %v714_v36 = vadd.f32 %v4243_v44, %v676_v33 }
 0x15a   : > { %3480 = vrsqrt.f32 %v578_v13  ;;  %v547_v41 = vmul.f32 0.0078125, %v491_v14  ;;  %v406_v8 = vmul.f32 0.0078125, %v368_v23  ;;  %v469_v16 = vmul.f32 %v4255_v59, %v4255_v59  ;;  %910 = vmatprep.mubr.bf16.mxu0 %v3852_v60 }
 0x15b   : > { %v677_v2 = vmul.f32 %v4231_v31, %v639_v24 }
 0x15c   : > { %v3477_v28 = vpop.eup %3476  ;;  %v579_v34 = vadd.f32 1e-05, %v547_v41  ;;  %v4264_v17 = vsub.f32 %v4113_v22, %v406_v8  ;;  %526 = vadd.xlane.f32.xlu1 %v469_v16 }
 0x15d   : > { %v370_v18 = vpop.xlane.xlu1 %369  ;;  %v493_v38 = vpop.xlane.xlu0 %492  ;;  %v715_v26 = vadd.f32 %v4243_v44, %v677_v2  ;;  %v640_v37 = vmul.f32 %v3477_v28, %v4051_v43 }
 0x15e   : > { %3482 = vrsqrt.f32 %v579_v34  ;;  %v407_v39 = vmul.f32 0.0078125, %v370_v18  ;;  %v548_v42 = vmul.f32 0.0078125, %v493_v38  ;;  %v470_v19 = vmul.f32 %v4264_v17, %v4264_v17 }
 0x15f   : > { %v745_v52 = vpack.c.bf16 %v715_v26, %v714_v36  ;;  %v678_v43 = vmul.f32 %v4231_v31, %v640_v37 }
 0x160   : > { %v3479_v45 = vpop.eup %3478  ;;  %v4272_v22 = vsub.f32 %v4128_v30, %v407_v39  ;;  %v580_v49 = vadd.f32 1e-05, %v548_v42  ;;  %528 = vadd.xlane.f32.xlu0 %v470_v19 }
 0x161   : > { %v495_v32 = vpop.xlane.xlu1 %494  ;;  %911 = vmatmul.mubr.bf16.gmra.mrb[4].mxu0 %v745_v52  ;;  %v372_v53 = vpop.xlane.xlu0 %371  ;;  %v641_v54 = vmul.f32 %v3479_v45, %v4060_v48  ;;  %v716_v13 = vadd.f32 %v4243_v44, %v678_v43 }
 0x162   : > { %3484 = vrsqrt.f32 %v580_v49  ;;  %v549_v56 = vmul.f32 0.0078125, %v495_v32  ;;  %v408_v63 = vmul.f32 0.0078125, %v372_v53  ;;  %v471_v0 = vmul.f32 %v4272_v22, %v4272_v22  ;;  %920 = vmatprep.mubr.bf16.mxu0 %v3852_v60 }
 0x163   : > { %v679_v30 = vmul.f32 %v4231_v31, %v641_v54 }
 0x164   : > { %v3481_v1 = vpop.eup %3480  ;;  %v581_v3 = vadd.f32 1e-05, %v549_v56  ;;  %v4281_v5 = vsub.f32 %v4143_v40, %v408_v63  ;;  %530 = vadd.xlane.f32.xlu1 %v471_v0 }
 0x165   : > { %v374_v35 = vpop.xlane.xlu1 %373  ;;  %v497_v48 = vpop.xlane.xlu0 %496  ;;  %v717_v14 = vadd.f32 %v4243_v44, %v679_v30  ;;  %v642_v23 = vmul.f32 %v3481_v1, %v4075_v55 }
 0x166   : > { %3486 = vrsqrt.f32 %v581_v3  ;;  %v409_v24 = vmul.f32 0.0078125, %v374_v35  ;;  %v550_v33 = vmul.f32 0.0078125, %v497_v48  ;;  %v472_v41 = vmul.f32 %v4281_v5, %v4281_v5 }
 0x167   : > { %v746_v8 = vpack.c.bf16 %v717_v14, %v716_v13  ;;  %v680_v55 = vmul.f32 %v4231_v31, %v642_v23 }
 0x168   : > { %v3483_v16 = vpop.eup %3482  ;;  %v4289_v40 = vsub.f32 %v4158_v50, %v409_v24  ;;  %v582_v2 = vadd.f32 1e-05, %v550_v33  ;;  %532 = vadd.xlane.f32.xlu0 %v472_v41 }
 0x169   : > { %v499_v28 = vpop.xlane.xlu1 %498  ;;  %921 = vmatmul.mubr.bf16.gmra.mrb[8].mxu0 %v746_v8  ;;  %v376_v34 = vpop.xlane.xlu0 %375  ;;  %v643_v18 = vmul.f32 %v3483_v16, %v4090_v62  ;;  %v718_v52 = vadd.f32 %v4243_v44, %v680_v55 }
 0x16a   : > { %3488 = vrsqrt.f32 %v582_v2  ;;  %v551_v38 = vmul.f32 0.0078125, %v499_v28  ;;  %v410_v36 = vmul.f32 0.0078125, %v376_v34  ;;  %v473_v26 = vmul.f32 %v4289_v40, %v4289_v40  ;;  %930 = vmatprep.mubr.bf16.mxu0 %v3852_v60 }
 0x16b   : > { %v681_v50 = vmul.f32 %v4231_v31, %v643_v18 }
 0x16c   : > { %v3485_v37 = vpop.eup %3484  ;;  %v583_v39 = vadd.f32 1e-05, %v551_v38  ;;  %v4298_v42 = vsub.f32 %v4167_v58, %v410_v36  ;;  %534 = vadd.xlane.f32.xlu1 %v473_v26 }
 0x16d   : > { %v378_v19 = vpop.xlane.xlu1 %377  ;;  %v501_v62 = vpop.xlane.xlu0 %500  ;;  %v719_v45 = vadd.f32 %v4243_v44, %v681_v50  ;;  %v644_v49 = vmul.f32 %v3485_v37, %v4105_v6 }
 0x16e   : > { %3490 = vrsqrt.f32 %v583_v39  ;;  %v411_v32 = vmul.f32 0.0078125, %v378_v19  ;;  %v552_v53 = vmul.f32 0.0078125, %v501_v62  ;;  %v474_v54 = vmul.f32 %v4298_v42, %v4298_v42 }
 0x16f   : > { %v747_v43 = vpack.c.bf16 %v719_v45, %v718_v52  ;;  %v682_v6 = vmul.f32 %v4231_v31, %v644_v49 }
 0x170   : > { %v3487_v56 = vpop.eup %3486  ;;  %v4306_v58 = vsub.f32 %v4180_v4, %v411_v32  ;;  %v584_v63 = vadd.f32 1e-05, %v552_v53  ;;  %536 = vadd.xlane.f32.xlu0 %v474_v54 }
 0x171   : > { %v503_v0 = vpop.xlane.xlu1 %502  ;;  %931 = vmatmul.mubr.bf16.gmra.mrb[12].mxu0 %v747_v43  ;;  %v505_v30 = vpop.xlane.xlu0 %504  ;;  %v645_v1 = vmul.f32 %v3487_v56, %v4120_v25  ;;  %v720_v25 = vadd.f32 %v4243_v44, %v682_v6 }
 0x172   : > { %3492 = vrsqrt.f32 %v584_v63  ;;  %v553_v3 = vmul.f32 0.0078125, %v503_v0  ;;  %v554_v35 = vmul.f32 0.0078125, %v505_v30  ;;  %v475_v48 = vmul.f32 %v4306_v58, %v4306_v58  ;;  %940 = vmatprep.mubr.bf16.mxu0 %v3852_v60 }
 0x173   : > { %v683_v4 = vmul.f32 %v4231_v31, %v645_v1 }
 0x174   : > { %v3489_v13 = vpop.eup %3488  ;;  %v585_v14 = vadd.f32 1e-05, %v553_v3  ;;  %v586_v23 = vadd.f32 1e-05, %v554_v35  ;;  %538 = vadd.xlane.f32.xlu1 %v475_v48 }
 0x175   : > { %v507_v24 = vpop.xlane.xlu1 %506  ;;  %v509_v33 = vpop.xlane.xlu0 %508  ;;  %v721_v41 = vadd.f32 %v4243_v44, %v683_v4  ;;  %v646_v8 = vmul.f32 %v3489_v13, %v4135_v9 }
 0x176   : > { %3494 = vrsqrt.f32 %v585_v14  ;;  %v555_v16 = vmul.f32 0.0078125, %v507_v24  ;;  %v556_v18 = vmul.f32 0.0078125, %v509_v33 }
 0x177   : > { %v748_v2 = vpack.c.bf16 %v721_v41, %v720_v25  ;;  %3496 = vrsqrt.f32 %v586_v23  ;;  %v684_v36 = vmul.f32 %v4231_v31, %v646_v8 }
 0x178   : > { %v3491_v28 = vpop.eup %3490  ;;  %v587_v34 = vadd.f32 1e-05, %v555_v16  ;;  %v588_v37 = vadd.f32 1e-05, %v556_v18 }
 0x179   : > { %v511_v55 = vpop.xlane.xlu1 %510  ;;  %941 = vmatmul.mubr.bf16.gmra.mrb[16].mxu0 %v748_v2  ;;  %v647_v38 = vmul.f32 %v3491_v28, %v4150_v10  ;;  %v513_v19 = vpop.xlane.xlu0 %512  ;;  %v722_v52 = vadd.f32 %v4243_v44, %v684_v36 }
 0x17a   : > { %3498 = vrsqrt.f32 %v587_v34  ;;  %v557_v26 = vmul.f32 0.0078125, %v511_v55  ;;  %950 = vmatprep.mubr.bf16.mxu0 %v3852_v60  ;;  %v558_v54 = vmul.f32 0.0078125, %v513_v19 }
 0x17b   : > { %v685_v50 = vmul.f32 %v4231_v31, %v647_v38 }
 0x17c   : > { %v3493_v9 = vpop.eup %3492  ;;  %v589_v39 = vadd.f32 1e-05, %v557_v26  ;;  %v590_v6 = vadd.f32 1e-05, %v558_v54 }
 0x17d   : > { %v515_v62 = vpop.xlane.xlu1 %514  ;;  %v723_v45 = vadd.f32 %v4243_v44, %v685_v50  ;;  %v648_v49 = vmul.f32 %v3493_v9, %v4162_v11 }
 0x17e   : > { %3500 = vrsqrt.f32 %v589_v39  ;;  %v559_v10 = vmul.f32 0.0078125, %v515_v62 }
 0x17f   : > { %v749_v32 = vpack.c.bf16 %v723_v45, %v722_v52  ;;  %3502 = vrsqrt.f32 %v588_v37  ;;  %v686_v56 = vmul.f32 %v4231_v31, %v648_v49 }
 0x180   : > { %v3495_v53 = vpop.eup %3494  ;;  %v591_v0 = vadd.f32 1e-05, %v559_v10 }
 0x181   : > { %951 = vmatmul.mubr.bf16.gmra.mrb[20].mxu0 %v749_v32  ;;  %v649_v43 = vmul.f32 %v3495_v53, %v4171_v61  ;;  %v3497_v63 = vpop.eup %3496  ;;  %v724_v11 = vadd.f32 %v4243_v44, %v686_v56 }
 0x182   : > { %960 = vmatprep.mubr.bf16.mxu0 %v3852_v60  ;;  %v650_v35 = vmul.f32 %v3497_v63, %v4175_v12  ;;  %3504 = vrsqrt.f32 %v591_v0  ;;  %v3452_v63 = vld [vmem:[%s6567_s5 + $0x40] sm:$0xff]  }
 0x183   : > { %v687_v30 = vmul.f32 %v4231_v31, %v649_v43  ;;  %3506 = vrsqrt.f32 %v590_v6  ;;  %3273 = vmatprep.subr.bf16.mxu1 %v3452_v63 }
 0x184   : > { %v3499_v1 = vpop.eup %3498  ;;  %v688_v14 = vmul.f32 %v4231_v31, %v650_v35 }
 0x185   : > { %v725_v3 = vadd.f32 %v4243_v44, %v687_v30  ;;  %v651_v48 = vmul.f32 %v3499_v1, %v4183_v7 }
 0x186   : > { %v726_v12 = vadd.f32 %v4243_v44, %v688_v14 }
 0x187   : > { %v750_v61 = vpack.c.bf16 %v725_v3, %v724_v11  ;;  %v689_v4 = vmul.f32 %v4231_v31, %v651_v48 }
 0x188   : > { %v3501_v13 = vpop.eup %3500 }
 0x189   : > { %961 = vmatmul.mubr.bf16.gmra.mrb[24].mxu0 %v750_v61  ;;  %v3503_v23 = vpop.eup %3502  ;;  %v727_v24 = vadd.f32 %v4243_v44, %v689_v4  ;;  %v653_v33 = vmul.f32 %v3501_v13, %v4196_v15 }
 0x18a   : > { %970 = vmatprep.mubr.bf16.mxu0 %v3852_v60  ;;  %v652_v7 = vmul.f32 %v3503_v23, %v4189_v20 }
 0x18b   : > { %v751_v25 = vpack.c.bf16 %v727_v24, %v726_v12  ;;  %v691_v41 = vmul.f32 %v4231_v31, %v653_v33 }
 0x18c   : > { %v3505_v8 = vpop.eup %3504  ;;  %v690_v16 = vmul.f32 %v4231_v31, %v652_v7 }
 0x18d   : > { %v3507_v2 = vpop.eup %3506  ;;  %v729_v28 = vadd.f32 %v4243_v44, %v691_v41  ;;  %v655_v34 = vmul.f32 %v3505_v8, %v4204_v29 }
 0x18e   : > { %v728_v15 = vadd.f32 %v4243_v44, %v690_v16  ;;  %v654_v18 = vmul.f32 %v3507_v2, %v4199_v27 }
 0x18f   : > { %v693_v20 = vmul.f32 %v4231_v31, %v655_v34 }
 0x190   : > { %v752_v55 = vpack.c.bf16 %v729_v28, %v728_v15  ;;  %v692_v38 = vmul.f32 %v4231_v31, %v654_v18 }
 0x191   : > { %971 = vmatmul.mubr.bf16.gmra.mrb[28].mxu0 %v751_v25  ;;  %v731_v36 = vadd.f32 %v4243_v44, %v693_v20 }
 0x192   : > { %980 = vmatprep.mubr.bf16.mxu0 %v3852_v60  ;;  %v730_v26 = vadd.f32 %v4243_v44, %v692_v38 }
 0x194   : > { %v753_v50 = vpack.c.bf16 %v731_v36, %v730_v26 }
 0x199   : > { %981 = vmatmul.mubr.bf16.gmra.mrb[32].mxu0 %v752_v55 }
 0x19a   : > { %990 = vmatprep.mubr.bf16.mxu0 %v3852_v60 }
 0x1a1   : > { %991 = vmatmul.mubr.bf16.gmra.mrb[36].mxu0 %v753_v50 }
 0x1a2   : > { %1000 = vmatprep.mubr.bf16.mxu0 %v3852_v60 }
 0x1d5   : > { %v517_v29 = vpop.xlane.xlu0 %516 }
 0x1d6   : > { %v560_v9 = vmul.f32 0.0078125, %v517_v29  ;;  %v3454_v29 = vld [vmem:[%s6567_s5 + $0x48] sm:$0xff]  }
 0x1d8   : > { %v592_v37 = vadd.f32 1e-05, %v560_v9 }
 0x1d9   : > { %v519_v27 = vpop.xlane.xlu1 %518 }
 0x1da   : > { %3508 = vrsqrt.f32 %v592_v37  ;;  %v561_v39 = vmul.f32 0.0078125, %v519_v27 }
 0x1dc   : > { %v593_v19 = vadd.f32 1e-05, %v561_v39 }
 0x1dd   : > { %v521_v62 = vpop.xlane.xlu0 %520 }
 0x1de   : > { %3510 = vrsqrt.f32 %v593_v19  ;;  %v562_v52 = vmul.f32 0.0078125, %v521_v62 }
 0x1e0   : > { %v594_v45 = vadd.f32 1e-05, %v562_v52 }
 0x1e1   : > { %v523_v49 = vpop.xlane.xlu1 %522 }
 0x1e2   : > { %3512 = vrsqrt.f32 %v594_v45  ;;  %v563_v10 = vmul.f32 0.0078125, %v523_v49  ;;  %v3456_v45 = vld [vmem:[%s6567_s5 + $0x50] sm:$0xff]  }
 0x1e4   : > { %v3509_v32 = vpop.eup %3508  ;;  %v595_v53 = vadd.f32 1e-05, %v563_v10 }
 0x1e5   : > { %v525_v54 = vpop.xlane.xlu0 %524  ;;  %v656_v43 = vmul.f32 %v3509_v32, %v4213_v47 }
 0x1e6   : > { %3514 = vrsqrt.f32 %v595_v53  ;;  %v564_v56 = vmul.f32 0.0078125, %v525_v54 }
 0x1e7   : > { %v694_v11 = vmul.f32 %v4231_v31, %v656_v43 }
 0x1e8   : > { %v3511_v0 = vpop.eup %3510  ;;  %v596_v30 = vadd.f32 1e-05, %v564_v56 }
 0x1e9   : > { %v527_v1 = vpop.xlane.xlu1 %526  ;;  %v657_v6 = vmul.f32 %v3511_v0, %v4218_v57  ;;  %v732_v4 = vadd.f32 %v4243_v44, %v694_v11  ;;  %v3453_v57 = vld [vmem:[%s6567_s5] sm:$0xff]  }
 0x1ea   : > { %3516 = vrsqrt.f32 %v596_v30  ;;  %v565_v3 = vmul.f32 0.0078125, %v527_v1  ;;  %3274 = vmatpush3.bf16.msra.mxu1 %v3453_v57  ;;  %v3457_v1 = vld [vmem:[%s6567_s5 + $0x10] sm:$0xff]  }
 0x1eb   : > { %v695_v35 = vmul.f32 %v4231_v31, %v657_v6  ;;  %3275 = vmatprep.subr.bf16.mxu1 %v3454_v29 }
 0x1ec   : > { %v3513_v48 = vpop.eup %3512  ;;  %v597_v47 = vadd.f32 1e-05, %v565_v3 }
 0x1ed   : > { %v529_v61 = vpop.xlane.xlu0 %528  ;;  %v733_v13 = vadd.f32 %v4243_v44, %v695_v35  ;;  %v658_v14 = vmul.f32 %v3513_v48, %v4223_v21 }
 0x1ee   : > { %3518 = vrsqrt.f32 %v597_v47  ;;  %v566_v23 = vmul.f32 0.0078125, %v529_v61 }
 0x1ef   : > { %v754_v24 = vpack.c.bf16 %v733_v13, %v732_v4  ;;  %v696_v41 = vmul.f32 %v4231_v31, %v658_v14 }
 0x1f0   : > { %v3515_v33 = vpop.eup %3514  ;;  %v598_v12 = vadd.f32 1e-05, %v566_v23 }
 0x1f1   : > { %v531_v7 = vpop.xlane.xlu1 %530  ;;  %1001 = vmatmul.mubr.bf16.gmra.mrb[40].mxu0 %v754_v24  ;;  %v659_v25 = vmul.f32 %v3515_v33, %v4234_v46  ;;  %v734_v34 = vadd.f32 %v4243_v44, %v696_v41 }
 0x1f2   : > { %3520 = vrsqrt.f32 %v598_v12  ;;  %v567_v8 = vmul.f32 0.0078125, %v531_v7  ;;  %1010 = vmatprep.mubr.bf16.mxu0 %v3852_v60 }
 0x1f3   : > { %v697_v21 = vmul.f32 %v4231_v31, %v659_v25  ;;  %v3458_v25 = vld [vmem:[%s6567_s5 + $0x58] sm:$0xff]  }
 0x1f4   : > { %v3517_v16 = vpop.eup %3516  ;;  %v599_v2 = vadd.f32 1e-05, %v567_v8 }
 0x1f5   : > { %v533_v28 = vpop.xlane.xlu0 %532  ;;  %v735_v15 = vadd.f32 %v4243_v44, %v697_v21  ;;  %v660_v18 = vmul.f32 %v3517_v16, %v4247_v51  ;;  %v3455_v51 = vld [vmem:[%s6567_s5 + $0x8] sm:$0xff]   ;;  %v776_v21 = vld [vmem:[%s6566_s4] sm:$0x3] }
 0x1f6   : > { %3522 = vrsqrt.f32 %v599_v2  ;;  %v568_v55 = vmul.f32 0.0078125, %v533_v28  ;;  %3276 = vmatpush3.bf16.msra.mxu1 %v3455_v51 }
 0x1f7   : > { %v755_v46 = vpack.c.bf16 %v735_v15, %v734_v34  ;;  %v698_v50 = vmul.f32 %v4231_v31, %v660_v18  ;;  %3277 = vmatprep.subr.bf16.mxu1 %v3456_v45 }
 0x1f8   : > { %v3519_v20 = vpop.eup %3518  ;;  %v600_v38 = vadd.f32 1e-05, %v568_v55 }
 0x1f9   : > { %v535_v36 = vpop.xlane.xlu1 %534  ;;  %1011 = vmatmul.mubr.bf16.gmra.mrb[44].mxu0 %v755_v46  ;;  %v661_v26 = vmul.f32 %v3519_v20, %v4255_v59  ;;  %v736_v19 = vadd.f32 %v4243_v44, %v698_v50  ;;  %v3462_v50 = vld [vmem:[%s6567_s5 + $0x68] sm:$0xff]  }
 0x1fa   : > { %3524 = vrsqrt.f32 %v600_v38  ;;  %v569_v9 = vmul.f32 0.0078125, %v535_v36  ;;  %1020 = vmatprep.mubr.bf16.mxu0 %v3852_v60  ;;  %3278 = vmatpush3.bf16.msra.mxu1 %v3457_v1 }
 0x1fb   : > { %v699_v37 = vmul.f32 %v4231_v31, %v661_v26  ;;  %3279 = vmatprep.subr.bf16.mxu1 %v3458_v25 }
 0x1fc   : > { %v3521_v27 = vpop.eup %3520  ;;  %v601_v39 = vadd.f32 1e-05, %v569_v9 }
 0x1fd   : > { %v537_v59 = vpop.xlane.xlu0 %536  ;;  %v737_v62 = vadd.f32 %v4243_v44, %v699_v37  ;;  %v662_v52 = vmul.f32 %v3521_v27, %v4264_v17  ;;  %v3463_v27 = vld [vmem:[%s6567_s5 + $0x28] sm:$0xff]  }
 0x1fe   : > { %3526 = vrsqrt.f32 %v601_v39  ;;  %v570_v49 = vmul.f32 0.0078125, %v537_v59 }
 0x1ff   : > { %v756_v10 = vpack.c.bf16 %v737_v62, %v736_v19  ;;  %v700_v56 = vmul.f32 %v4231_v31, %v662_v52 }
 0x200   : > { %v3523_v32 = vpop.eup %3522  ;;  %v602_v53 = vadd.f32 1e-05, %v570_v49 }
 0x201   : > { %v539_v54 = vpop.xlane.xlu1 %538  ;;  %1021 = vmatmul.mubr.bf16.gmra.mrb[48].mxu0 %v756_v10  ;;  %v663_v43 = vmul.f32 %v3523_v32, %v4272_v22  ;;  %v738_v6 = vadd.f32 %v4243_v44, %v700_v56 }
 0x202   : > { %3528 = vrsqrt.f32 %v602_v53  ;;  %v571_v63 = vmul.f32 0.0078125, %v539_v54  ;;  %1030 = vmatprep.mubr.bf16.mxu0 %v3852_v60  ;;  %v3464_v53 = vld [vmem:[%s6567_s5 + $0x70] sm:$0xff]  }
 0x203   : > { %v701_v17 = vmul.f32 %v4231_v31, %v663_v43 }
 0x204   : > { %v3525_v0 = vpop.eup %3524  ;;  %v603_v30 = vadd.f32 1e-05, %v571_v63 }
 0x205   : > { %v739_v11 = vadd.f32 %v4243_v44, %v701_v17  ;;  %v664_v22 = vmul.f32 %v3525_v0, %v4281_v5 }
 0x206   : > { %3530 = vrsqrt.f32 %v603_v30 }
 0x207   : > { %v757_v3 = vpack.c.bf16 %v739_v11, %v738_v6  ;;  %v702_v47 = vmul.f32 %v4231_v31, %v664_v22 }
 0x208   : > { %v3527_v35 = vpop.eup %3526 }
 0x209   : > { %1031 = vmatmul.mubr.bf16.gmra.mrb[52].mxu0 %v757_v3  ;;  %v665_v48 = vmul.f32 %v3527_v35, %v4289_v40  ;;  %v740_v13 = vadd.f32 %v4243_v44, %v702_v47 }
 0x20a   : > { %1040 = vmatprep.mubr.bf16.mxu0 %v3852_v60 }
 0x20b   : > { %v703_v61 = vmul.f32 %v4231_v31, %v665_v48  ;;  %v3465_v48 = vld [vmem:[%s6567_s5 + $0x30] sm:$0xff]  }
 0x20c   : > { %v3529_v4 = vpop.eup %3528 }
 0x20d   : > { %v741_v14 = vadd.f32 %v4243_v44, %v703_v61  ;;  %v666_v5 = vmul.f32 %v3529_v4, %v4298_v42  ;;  %v3459_v42 = vld [vmem:[%s6567_s5 + $0x18] sm:$0xff]  }
 0x20e   : > { %3280 = vmatpush3.bf16.msra.mxu1 %v3459_v42 }
 0x20f   : > { %v758_v23 = vpack.c.bf16 %v741_v14, %v740_v13  ;;  %v704_v40 = vmul.f32 %v4231_v31, %v666_v5 }
 0x210   : > { %v3531_v57 = vpop.eup %3530 }
 0x211   : > { %1041 = vmatmul.mubr.bf16.gmra.mrb[56].mxu0 %v758_v23  ;;  %v667_v24 = vmul.f32 %v3531_v57, %v4306_v58  ;;  %v742_v12 = vadd.f32 %v4243_v44, %v704_v40 }
 0x212   : > { %1050 = vmatprep.mubr.bf16.mxu0 %v3852_v60  ;;  %v3460_v60 = vld [vmem:[%s6567_s5 + $0x60] sm:$0xff]  }
 0x213   : > { %v705_v33 = vmul.f32 %v4231_v31, %v667_v24  ;;  %v778_v31 = vlaneseq  ;;  %3281 = vmatprep.subr.bf16.mxu1 %v3460_v60  ;;  %v6570_v24 = vmov -1.0  }
 0x215   : > { %v743_v7 = vadd.f32 %v4243_v44, %v705_v33  ;;  %v779_v58 = vshrl.u32 %v778_v31, 7  ;;  %v3461_v44 = vld [vmem:[%s6567_s5 + $0x20] sm:$0xff]  }
 0x216   : > { %3282 = vmatpush3.bf16.msra.mxu1 %v3461_v44 }
 0x217   : > { %v759_v41 = vpack.c.bf16 %v743_v7, %v742_v12  ;;  %v780_v8 = vsub.s32 0, %v779_v58  ;;  %v784_v16 = vsub.s32 1, %v779_v58  ;;  %3283 = vmatprep.subr.bf16.mxu1 %v3462_v50 }
 0x219   : > { %1051 = vmatmul.mubr.bf16.gmra.mrb[60].mxu0 %v759_v41  ;;  %v4426_v2 = vrot.slane %v776_v21, %v780_v8  ;;  %v4428_v28 = vrot.slane %v776_v21, %v784_v16 }
 0x21a   : > { %3284 = vmatpush3.bf16.msra.mxu1 %v3463_v27 }
 0x21b   : > { %3285 = vmatprep.subr.bf16.mxu1 %v3464_v53 }
 0x21e   : > { %3286 = vmatpush3.bf16.msra.mxu1 %v3465_v48 }
 0x22c   : > { %v902_v34 = vpop.f32.mrb[0].mxu0 }
 0x22d   : > { %v903_v15 = vadd.f32 %v902_v34, %v4426_v2  ;;  %v904_v18 = vpop.f32.mrb[1].mxu0 }
 0x22e   : > { %v905_v55 = vadd.f32 %v904_v18, %v4428_v28  ;;  %v906_v46 = vpop.f32.mrb[2].mxu0 }
 0x22f   : > { %v1125_v20 = vmul.f32 0.70710677, %v903_v15  ;;  %v907_v38 = vadd.f32 %v906_v46, %v4426_v2  ;;  %v908_v36 = vpop.f32.mrb[3].mxu0  ;;  %v4467_v14 = vmul.f32 0.5, %v903_v15 }
 0x230   : > { %v4433_v26 = vmul.f32 0.70710677, %v905_v55  ;;  %v4442_v37 = vadd.f32 %v908_v36, %v4428_v28  ;;  %v4479_v33 = vmul.f32 0.5, %v905_v55 }
 0x231   : > { %v1317_v29 = vand.u32 2147483647, %v1125_v20  ;;  %v4438_v9 = vmul.f32 0.70710677, %v907_v38  ;;  %vm1189_vm0 = vcmp.ge.f32.partialorder %v1125_v20, 0.0  ;;  %v4481_v12 = vmul.f32 0.5, %v907_v38 }
 0x232   : > { %6580 = vst [vmem:[#allocation5_spill] sm:$0xff] %v4433_v26  ;;  %v1318_v51 = vand.u32 2147483647, %v4433_v26  ;;  %v4449_v10 = vmul.f32 0.70710677, %v4442_v37  ;;  %v4477_v40 = vsel %vm1189_vm0, 1.0, %v6570_v24 }
 0x233   : > { %v1381_v39 = vmul.f32 0.3275911, %v1317_v29  ;;  %v2213_v59 = vsub.f32 0.0, %v1317_v29  ;;  %v1319_v19 = vand.u32 2147483647, %v4438_v9  ;;  %6582 = vst [vmem:[#allocation7_spill] sm:$0xff] %v4479_v33 }
 0x234   : > { %v2214_v62 = vsub.f32 0.0, %v1318_v51  ;;  %v912_v49 = vpop.f32.mrb[4].mxu0  ;;  %6581 = vst [vmem:[#allocation6_spill] sm:$0xff] %v4449_v10  ;;  %v1382_v43 = vmul.f32 0.3275911, %v1318_v51  ;;  %vm1191_vm1 = vcmp.ge.f32.partialorder %v4438_v9, 0.0 }
 0x235   : > { %v1445_v52 = vadd.f32 1.0, %v1381_v39  ;;  %v1383_v45 = vmul.f32 0.3275911, %v1319_v19  ;;  %v914_v32 = vpop.f32.mrb[5].mxu0  ;;  %v2277_v54 = vmul.f32 %v2213_v59, %v1317_v29  ;;  %v913_v30 = vadd.f32 %v912_v49, %v4426_v2 }
 0x236   : > { %v916_v63 = vpop.f32.mrb[6].mxu0  ;;  %v2278_v17 = vmul.f32 %v2214_v62, %v1318_v51  ;;  %v915_v1 = vadd.f32 %v914_v32, %v4428_v28  ;;  %v1320_v6 = vand.u32 2147483647, %v4449_v10  ;;  %v1446_v3 = vadd.f32 1.0, %v1382_v43 }
 0x237   : > { %3532 = vrcp.f32 %v1445_v52  ;;  %v1447_v56 = vadd.f32 1.0, %v1383_v45  ;;  %v918_v0 = vpop.f32.mrb[7].mxu0  ;;  %v4458_v11 = vadd.f32 %v916_v63, %v4426_v2  ;;  %v2341_v22 = vmul.f32 1.442695, %v2277_v54 }
 0x238   : > { %v4460_v35 = vmul.f32 0.70710677, %v913_v30  ;;  %v2343_v47 = vmul.f32 1.442695, %v2278_v17  ;;  %v2215_v61 = vsub.f32 0.0, %v1319_v19  ;;  %v2216_v42 = vsub.f32 0.0, %v1320_v6 }
 0x239   : > { %3534 = vrcp.f32 %v1447_v56  ;;  %v4465_v4 = vmul.f32 0.70710677, %v915_v1  ;;  %v4471_v23 = vmul.f32 0.70710677, %v4458_v11  ;;  %v1384_v21 = vmul.f32 0.3275911, %v1320_v6 }
 0x23a   : > { %v1321_v5 = vand.u32 2147483647, %v4460_v35  ;;  %3536 = vrcp.f32 %v1446_v3  ;;  %v2279_v31 = vmul.f32 %v2215_v61, %v1319_v19  ;;  %v4498_v34 = vadd.f32 %v918_v0, %v4428_v28 }
 0x23b   : > { %v4484_v7 = vand.u32 2147483647, %v4465_v4  ;;  %3538 = vpow2.f32 %v2341_v22  ;;  %v4493_v44 = vand.u32 2147483647, %v4471_v23  ;;  %v4508_v20 = vsel %vm1191_vm1, 1.0, %v6570_v24 }
 0x23c   : > { %v922_v13 = vpop.f32.mrb[8].mxu0  ;;  %v1385_v41 = vmul.f32 0.3275911, %v1321_v5  ;;  %3540 = vpow2.f32 %v2343_v47  ;;  %v4511_v38 = vmul.f32 0.5, %v4442_v37  ;;  %v2280_v36 = vmul.f32 %v2216_v42, %v1320_v6 }
 0x23d   : > { %v4473_v57 = vpop.f32.mrb[9].mxu0  ;;  %v1386_v58 = vmul.f32 0.3275911, %v4484_v7  ;;  %v1387_v55 = vmul.f32 0.3275911, %v4493_v44  ;;  %v4503_v46 = vadd.f32 %v922_v13, %v4426_v2  ;;  %v1448_v59 = vadd.f32 1.0, %v1384_v21 }
 0x23e   : > { %v4486_v25 = vpop.f32.mrb[10].mxu0  ;;  %v1449_v16 = vadd.f32 1.0, %v1385_v41  ;;  %6583 = vst [vmem:[#allocation8_spill] sm:$0xff] %v4511_v38  ;;  %v2345_v29 = vmul.f32 1.442695, %v2279_v31  ;;  %v4517_v19 = vmul.f32 0.5, %v913_v30  ;;  %v4563_v42 = vadd.f32 %v4473_v57, %v4428_v28 }
 0x23f   : > { %v4489_v60 = vpop.f32.mrb[11].mxu0  ;;  %v1450_v18 = vadd.f32 1.0, %v1386_v58  ;;  %v1451_v51 = vadd.f32 1.0, %v1387_v55  ;;  %v2217_v62 = vsub.f32 0.0, %v1321_v5  ;;  %v4520_v9 = vmul.f32 0.70710677, %v4498_v34 }
 0x240   : > { %3542 = vrcp.f32 %v1449_v16  ;;  %vm1193_vm2 = vcmp.ge.f32.partialorder %v4460_v35, 0.0  ;;  %v4528_v49 = vmul.f32 0.70710677, %v4503_v46  ;;  %v2347_v53 = vmul.f32 1.442695, %v2280_v36  ;;  %v3466_v41 = vld [vmem:[%s6567_s5 + $0x78] sm:$0xff]  }
 0x241   : > { %v4495_v8 = vpop.eup %3532  ;;  %3544 = vrcp.f32 %v1450_v18  ;;  %v4532_v54 = vmul.f32 0.5, %v915_v1  ;;  %v4535_v43 = vand.u32 2147483647, %v4520_v9  ;;  %v4540_v0 = vmul.f32 0.5, %v4458_v11  ;;  %3287 = vmatprep.subr.bf16.mxu1 %v3466_v41  ;;  %v3467_v55 = vld [vmem:[%s6567_s5 + $0x38] sm:$0xff]  }
 0x242   : > { %v1637_v15 = vmul.f32 1.0614054, %v4495_v8  ;;  %3546 = vrcp.f32 %v1451_v51  ;;  %v4545_v6 = vsel %vm1193_vm2, 1.0, %v6570_v24  ;;  %v2281_v22 = vmul.f32 %v2217_v62, %v1321_v5  ;;  %3288 = vmatpush3.bf16.msra.mxu1 %v3467_v55 }
 0x243   : > { %v4515_v39 = vpop.eup %3534  ;;  %3548 = vpow2.f32 %v2345_v29  ;;  %v2218_v1 = vsub.f32 0.0, %v4484_v7  ;;  %v1388_v3 = vmul.f32 0.3275911, %v4535_v43  ;;  %vm1194_vm3 = vcmp.ge.f32.partialorder %v4465_v4, 0.0 }
 0x244   : > { %v1701_v50 = vadd.f32 -1.4531521, %v1637_v15  ;;  %v4513_v27 = vpop.f32.mrb[12].mxu0  ;;  %v1639_v45 = vmul.f32 1.0614054, %v4515_v39  ;;  %v4542_v30 = vpop.eup %3536  ;;  %vm1195_vm4 = vcmp.ge.f32.partialorder %v4471_v23, 0.0  ;;  %3550 = vrcp.f32 %v1448_v59 }
 0x245   : > { %v4522_v52 = vpop.f32.mrb[13].mxu0  ;;  %6584 = vst [vmem:[#allocation9_spill] sm:$0xff] %v4542_v30  ;;  %v4549_v35 = vpop.eup %3538  ;;  %v4555_v11 = vand.u32 2147483647, %v4528_v49  ;;  %v2219_v13 = vsub.f32 0.0, %v4493_v44  ;;  %v1452_v5 = vadd.f32 1.0, %v1388_v3  ;;  %v2282_v18 = vmul.f32 %v2218_v1, %v4484_v7 }
 0x246   : > { %v1765_v37 = vmul.f32 %v4495_v8, %v1701_v50  ;;  %v4530_v32 = vpop.f32.mrb[14].mxu0  ;;  %v1703_v17 = vadd.f32 -1.4531521, %v1639_v45  ;;  %v4557_v61 = vpop.eup %3540  ;;  %v2349_v16 = vmul.f32 1.442695, %v2281_v22  ;;  %v4572_v15 = vsel %vm1194_vm3, 1.0, %v6570_v24 }
 0x247   : > { %v4537_v56 = vpop.f32.mrb[15].mxu0  ;;  %6585 = vst [vmem:[#allocation10_spill] sm:$0xff] %v4557_v61  ;;  %v1389_v58 = vmul.f32 0.3275911, %v4555_v11  ;;  %3552 = vrcp.f32 %v1452_v5  ;;  %v4594_v45 = vmul.f32 0.70710677, %v4563_v42  ;;  %v2283_v1 = vmul.f32 %v2219_v13, %v4493_v44 }
 0x248   : > { %v1829_v63 = vadd.f32 1.4214138, %v1765_v37  ;;  %v1767_v47 = vmul.f32 %v4515_v39, %v1703_v17  ;;  %3554 = vpow2.f32 %v2347_v53  ;;  %v4591_v37 = vsel %vm1195_vm4, 1.0, %v6570_v24 }
 0x249   : > { %v1453_v59 = vadd.f32 1.0, %v1389_v58  ;;  %v2220_v23 = vsub.f32 0.0, %v4535_v43  ;;  %v4610_v58 = vmul.f32 0.5, %v4503_v46  ;;  %vm1196_vm5 = vcmp.ge.f32.partialorder %v4520_v9, 0.0 }
 0x24a   : > { %v1893_v48 = vmul.f32 %v4495_v8, %v1829_v63  ;;  %v1831_v4 = vadd.f32 1.4214138, %v1767_v47  ;;  %v4569_v21 = vpop.eup %3542  ;;  %v4602_v47 = vmul.f32 0.5, %v4498_v34  ;;  %v4618_v34 = vand.u32 2147483647, %v4594_v45 }
 0x24b   : > { %v4580_v36 = vpop.eup %3544  ;;  %v1641_v51 = vmul.f32 1.0614054, %v4569_v21  ;;  %3556 = vrcp.f32 %v1453_v59  ;;  %v2284_v46 = vmul.f32 %v2220_v23, %v4535_v43  ;;  %vm1197_vm6 = vcmp.ge.f32.partialorder %v4528_v49, 0.0 }
 0x24c   : > { %v1957_v31 = vadd.f32 -0.28449672, %v1893_v48  ;;  %v4575_v57 = vpop.f32.mrb[16].mxu0  ;;  %v1895_v29 = vmul.f32 %v4515_v39, %v1831_v4  ;;  %v1642_v7 = vmul.f32 1.0614054, %v4580_v36  ;;  %v4599_v3 = vpop.eup %3546  ;;  %3558 = vpow2.f32 %v2349_v16 }
 0x24d   : > { %v4585_v62 = vpop.f32.mrb[17].mxu0  ;;  %v1705_v22 = vadd.f32 -1.4531521, %v1641_v51  ;;  %v2351_v48 = vmul.f32 1.442695, %v2282_v18  ;;  %v4605_v5 = vpop.eup %3548  ;;  %v929_v10 = vadd.f32 %v4489_v60, %v4428_v28  ;;  %v4677_v49 = vadd.f32 %v4513_v27, %v4426_v2 }
 0x24e   : > { %v2021_v50 = vmul.f32 %v4495_v8, %v1957_v31  ;;  %v4596_v63 = vpop.f32.mrb[18].mxu0  ;;  %v1959_v17 = vadd.f32 -0.28449672, %v1895_v29  ;;  %v1706_v53 = vadd.f32 -1.4531521, %v1642_v7  ;;  %v4622_v7 = vpop.eup %3550  ;;  %v4689_v27 = vmul.f32 0.5, %v4563_v42 }
 0x24f   : > { %v1769_v31 = vmul.f32 %v4569_v21, %v1705_v22  ;;  %v1643_v4 = vmul.f32 1.0614054, %v4599_v3  ;;  %v4612_v44 = vpop.f32.mrb[19].mxu0  ;;  %v2353_v29 = vmul.f32 1.442695, %v2283_v1  ;;  %3560 = vpow2.f32 %v2351_v48  ;;  %6586 = vst [vmem:[#allocation11_spill] sm:$0xff] %v4622_v7 }
 0x250   : > { %v2085_v41 = vadd.f32 0.2548296, %v2021_v50  ;;  %v2023_v13 = vmul.f32 %v4515_v39, %v1959_v17  ;;  %v1770_v18 = vmul.f32 %v4580_v36, %v1706_v53  ;;  %v1390_v59 = vmul.f32 0.3275911, %v4618_v34 }
 0x251   : > { %v1833_v55 = vadd.f32 1.4214138, %v1769_v31  ;;  %v1707_v50 = vadd.f32 -1.4531521, %v1643_v4  ;;  %v4628_v53 = vsel %vm1196_vm5, 1.0, %v6570_v24  ;;  %v4632_v1 = vpop.eup %3552  ;;  %v4637_v31 = vadd.f32 %v4486_v25, %v4426_v2 }
 0x252   : > { %v1834_v51 = vadd.f32 1.4214138, %v1770_v18  ;;  %v2149_v17 = vmul.f32 %v4495_v8, %v2085_v41  ;;  %v2087_v48 = vadd.f32 0.2548296, %v2023_v13  ;;  %v1454_v23 = vadd.f32 1.0, %v1390_v59 }
 0x253   : > { %v1897_v22 = vmul.f32 %v4569_v21, %v1833_v55  ;;  %v1771_v9 = vmul.f32 %v4599_v3, %v1707_v50  ;;  %3562 = vpow2.f32 %v2353_v29  ;;  %v4644_v55 = vpop.eup %3554  ;;  %v1644_v13 = vmul.f32 1.0614054, %v4632_v1 }
 0x254   : > { %v4630_v16 = vpop.f32.mrb[20].mxu0  ;;  %v1898_v43 = vmul.f32 %v4580_v36, %v1834_v51  ;;  %6587 = vst [vmem:[#allocation12_spill] sm:$0xff] %v4644_v55  ;;  %v2355_v51 = vmul.f32 1.442695, %v2284_v46  ;;  %3564 = vrcp.f32 %v1454_v23  ;;  %v2469_v25 = vmul.f32 %v4549_v35, %v2149_v17 }
 0x255   : > { %v4639_v8 = vpop.f32.mrb[21].mxu0  ;;  %v1961_v41 = vadd.f32 -0.28449672, %v1897_v22  ;;  %v1835_v4 = vadd.f32 1.4214138, %v1771_v9  ;;  %v4647_v59 = vpop.eup %3556  ;;  %v2221_v29 = vsub.f32 0.0, %v4555_v11  ;;  %v2151_v23 = vmul.f32 %v4515_v39, %v2087_v48 }
 0x256   : > { %v4642_v18 = vpop.f32.mrb[22].mxu0  ;;  %v1962_v50 = vadd.f32 -0.28449672, %v1898_v43  ;;  %v1708_v33 = vadd.f32 -1.4531521, %v1644_v13  ;;  %v6589_v17 = vmov -1.0   ;;  %v3559_v30 = vpop.eup %3558  ;;  %3566 = vpow2.f32 %v2355_v51 }
 0x257   : > { %v2025_v24 = vmul.f32 %v4569_v21, %v1961_v41  ;;  %v1899_v22 = vmul.f32 %v4599_v3, %v1835_v4  ;;  %v4653_v9 = vpop.f32.mrb[23].mxu0  ;;  %v1645_v43 = vmul.f32 1.0614054, %v4647_v59  ;;  %v4658_v46 = vmul.f32 0.70710677, %v4637_v31 }
 0x258   : > { %6588 = vst [vmem:[#allocation13_spill] sm:$0xff] %v4653_v9  ;;  %v2026_v38 = vmul.f32 %v4580_v36, %v1962_v50  ;;  %v4664_v41 = vsel %vm1197_vm6, 1.0, %v6589_v17  ;;  %v1772_v50 = vmul.f32 %v4632_v1, %v1708_v33  ;;  %v2533_v39 = vsub.f32 1.0, %v2469_v25 }
 0x259   : > { %v2089_v55 = vadd.f32 0.2548296, %v2025_v24  ;;  %v1963_v35 = vadd.f32 -0.28449672, %v1899_v22  ;;  %v1709_v13 = vadd.f32 -1.4531521, %v1645_v43  ;;  %v2285_v24 = vmul.f32 %v2221_v29, %v4555_v11 }
 0x25a   : > { %v2090_v61 = vadd.f32 0.2548296, %v2026_v38  ;;  %v2222_v48 = vsub.f32 0.0, %v4618_v34  ;;  %v3561_v38 = vpop.eup %3560  ;;  %v1836_v43 = vadd.f32 1.4214138, %v1772_v50  ;;  %v2471_v11 = vmul.f32 %v4605_v5, %v2151_v23 }
 0x25b   : > { %v2027_v33 = vmul.f32 %v4599_v3, %v1963_v35  ;;  %v1773_v60 = vmul.f32 %v4647_v59, %v1709_v13  ;;  %v1327_v26 = vand.u32 2147483647, %v4658_v46  ;;  %v2153_v25 = vmul.f32 %v4569_v21, %v2089_v55 }
 0x25c   : > { %v4666_v4 = vpop.f32.mrb[24].mxu0  ;;  %v2154_v29 = vmul.f32 %v4580_v36, %v2090_v61  ;;  %v2597_v13 = vmul.f32 %v2533_v39, %v4477_v40  ;;  %v2357_v9 = vmul.f32 1.442695, %v2285_v24  ;;  %vm1198_vm7 = vcmp.ge.f32.partialorder %v4594_v45, 0.0 }
 0x25d   : > { %6590 = vst [vmem:[#allocation14_spill] sm:$0xff] %v4666_v4  ;;  %v4671_v7 = vpop.f32.mrb[25].mxu0  ;;  %v1837_v35 = vadd.f32 1.4214138, %v1773_v60  ;;  %v1391_v50 = vmul.f32 0.3275911, %v1327_v26  ;;  %v3563_v4 = vpop.eup %3562  ;;  %v2286_v5 = vmul.f32 %v2222_v48, %v4618_v34  ;;  %v2473_v36 = vmul.f32 %v3559_v30, %v2153_v25 }
 0x25e   : > { %6591 = vst [vmem:[#allocation15_spill] sm:$0xff] %v4671_v7  ;;  %v4679_v22 = vpop.f32.mrb[26].mxu0  ;;  %v4696_v23 = vpop.eup %3564  ;;  %v2091_v21 = vadd.f32 0.2548296, %v2027_v33  ;;  %v2535_v61 = vsub.f32 1.0, %v2471_v11  ;;  %v4704_v48 = vmul.f32 0.5, %v4637_v31 }
 0x25f   : > { %6592 = vst [vmem:[#allocation16_spill] sm:$0xff] %v4679_v22  ;;  %v4684_v7 = vpop.f32.mrb[27].mxu0  ;;  %v1900_v22 = vmul.f32 %v4632_v1, %v1836_v43  ;;  %v1901_v42 = vmul.f32 %v4647_v59, %v1837_v35  ;;  %v1455_v51 = vadd.f32 1.0, %v1391_v50  ;;  %v1646_v43 = vmul.f32 1.0614054, %v4696_v23 }
 0x260   : > { %6593 = vst [vmem:[#allocation17_spill] sm:$0xff] %v4684_v7  ;;  %v4700_v60 = vmul.f32 0.70710677, %v929_v10  ;;  %v2474_v7 = vmul.f32 %v3561_v38, %v2154_v29  ;;  %v2359_v24 = vmul.f32 1.442695, %v2286_v5  ;;  %v2155_v33 = vmul.f32 %v4599_v3, %v2091_v21  ;;  %v3567_v3 = vpop.eup %3566 }
 0x261   : > { %v1964_v55 = vadd.f32 -0.28449672, %v1900_v22  ;;  %v1965_v39 = vadd.f32 -0.28449672, %v1901_v42  ;;  %3568 = vrcp.f32 %v1455_v51  ;;  %v1710_v34 = vadd.f32 -1.4531521, %v1646_v43 }
 0x262   : > { %3570 = vpow2.f32 %v2357_v9  ;;  %v2661_v22 = vadd.f32 1.0, %v2597_v13  ;;  %v2537_v25 = vsub.f32 1.0, %v2473_v36  ;;  %v4711_v38 = vsel %vm1198_vm7, 1.0, %v6589_v17 }
 0x263   : > { %v2028_v40 = vmul.f32 %v4632_v1, %v1964_v55  ;;  %v2029_v30 = vmul.f32 %v4647_v59, %v1965_v39  ;;  %v1774_v29 = vmul.f32 %v4696_v23, %v1710_v34  ;;  %v4714_v9 = vmul.f32 0.5, %v929_v10 }
 0x264   : > { %v2599_v35 = vmul.f32 %v2535_v61, %v4508_v20  ;;  %v2538_v31 = vsub.f32 1.0, %v2474_v7  ;;  %v2223_v50 = vsub.f32 0.0, %v1327_v26  ;;  %v1328_v13 = vand.u32 2147483647, %v4700_v60 }
 0x265   : > { %v2092_v11 = vadd.f32 0.2548296, %v2028_v40  ;;  %v2093_v21 = vadd.f32 0.2548296, %v2029_v30  ;;  %v1838_v55 = vadd.f32 1.4214138, %v1774_v29  ;;  %v4723_v45 = vmul.f32 %v2661_v22, %v4467_v14 }
 0x266   : > { %v4720_v42 = vmul.f32 0.70710677, %v4677_v49  ;;  %v2475_v51 = vmul.f32 %v3563_v4, %v2155_v33  ;;  %3572 = vpow2.f32 %v2359_v24  ;;  %v1392_v10 = vmul.f32 0.3275911, %v1328_v13 }
 0x267   : > { %v2156_v5 = vmul.f32 %v4632_v1, %v2092_v11  ;;  %v2601_v20 = vmul.f32 %v2537_v25, %v4545_v6  ;;  %v1902_v7 = vmul.f32 %v4696_v23, %v1838_v55  ;;  %vm1199_vm8 = vcmp.ge.f32.partialorder %v4658_v46, 0.0 }
 0x268   : > { %v1329_v61 = vand.u32 2147483647, %v4720_v42  ;;  %v2663_v1 = vadd.f32 1.0, %v2599_v35  ;;  %v2602_v36 = vmul.f32 %v2538_v31, %v4572_v15  ;;  %v2287_v43 = vmul.f32 %v2223_v50, %v1327_v26 }
 0x269   : > { %v1456_v40 = vadd.f32 1.0, %v1392_v10  ;;  %v2476_v39 = vmul.f32 %v3567_v3, %v2156_v5  ;;  %v2157_v14 = vmul.f32 %v4647_v59, %v2093_v21  ;;  %v1966_v34 = vadd.f32 -0.28449672, %v1902_v7 }
 0x26a   : > { %v1393_v4 = vmul.f32 0.3275911, %v1329_v61  ;;  %v2539_v22 = vsub.f32 1.0, %v2475_v51  ;;  %v4734_v6 = vsel %vm1199_vm8, 1.0, %v6589_v17  ;;  %vm1200_vm9 = vcmp.ge.f32.partialorder %v4700_v60, 0.0 }
 0x26b   : > { %v4731_v24 = vpop.eup %3568  ;;  %3574 = vrcp.f32 %v1456_v40  ;;  %v2665_v33 = vadd.f32 1.0, %v2601_v20  ;;  %v2224_v26 = vsub.f32 0.0, %v1328_v13  ;;  %v2666_v30 = vadd.f32 1.0, %v2602_v36 }
 0x26c   : > { %v3571_v46 = vpop.eup %3570  ;;  %v1647_v15 = vmul.f32 1.0614054, %v4731_v24  ;;  %v1457_v11 = vadd.f32 1.0, %v1393_v4  ;;  %v2030_v59 = vmul.f32 %v4696_v23, %v1966_v34  ;;  %v2361_v25 = vmul.f32 1.442695, %v2287_v43 }
 0x26d   : > { %v935_v29 = vadd.f32 %v4522_v52, %v4428_v28  ;;  %v2540_v35 = vsub.f32 1.0, %v2476_v39  ;;  %v2477_v31 = vmul.f32 %v3571_v46, %v2157_v14  ;;  %v4742_v3 = vmul.f32 %v2663_v1, %v4481_v12 }
 0x26e   : > { %v1711_v50 = vadd.f32 -1.4531521, %v1647_v15  ;;  %3576 = vrcp.f32 %v1457_v11  ;;  %v2603_v5 = vmul.f32 %v2539_v22, %v4591_v37  ;;  %v4748_v21 = vsel %vm1200_vm9, 1.0, %v6589_v17 }
 0x26f   : > { %v4750_v55 = vmul.f32 0.70710677, %v935_v29  ;;  %v4753_v51 = vmul.f32 %v2665_v33, %v4517_v19  ;;  %v2288_v10 = vmul.f32 %v2224_v26, %v1328_v13  ;;  %v4758_v20 = vadd.f32 %v4530_v32, %v4426_v2 }
 0x270   : > { %v1775_v52 = vmul.f32 %v4731_v24, %v1711_v50  ;;  %v3573_v12 = vpop.eup %3572  ;;  %v2094_v7 = vadd.f32 0.2548296, %v2030_v59  ;;  %3578 = vpow2.f32 %v2361_v25  ;;  %v2225_v37 = vsub.f32 0.0, %v1329_v61 }
 0x271   : > { %6594 = vst [vmem:[#allocation18_spill] sm:$0xff] %v4753_v51  ;;  %v4761_v60 = vand.u32 2147483647, %v4750_v55  ;;  %v4764_v1 = vmul.f32 %v2666_v30, %v4532_v54  ;;  %v2604_v19 = vmul.f32 %v2540_v35, %v4628_v53  ;;  %v2541_v36 = vsub.f32 1.0, %v2477_v31 }
 0x272   : > { %v1839_v43 = vadd.f32 1.4214138, %v1775_v52  ;;  %v2667_v40 = vadd.f32 1.0, %v2603_v5  ;;  %v4769_v32 = vmul.f32 0.70710677, %v4758_v20  ;;  %v4773_v39 = vadd.f32 %v4537_v56, %v4428_v28 }
 0x273   : > { %v1394_v13 = vmul.f32 0.3275911, %v4761_v60  ;;  %v2363_v34 = vmul.f32 1.442695, %v2288_v10  ;;  %v4777_v54 = vmul.f32 0.5, %v4677_v49  ;;  %vm1201_vm10 = vcmp.ge.f32.partialorder %v4720_v42, 0.0 }
 0x274   : > { %v1903_v14 = vmul.f32 %v4731_v24, %v1839_v43  ;;  %v2158_v4 = vmul.f32 %v4696_v23, %v2094_v7  ;;  %v2289_v22 = vmul.f32 %v2225_v37, %v1329_v61  ;;  %v1331_v33 = vand.u32 2147483647, %v4769_v32 }
 0x275   : > { %v4780_v53 = vpop.eup %3574  ;;  %v1458_v46 = vadd.f32 1.0, %v1394_v13  ;;  %v2668_v15 = vadd.f32 1.0, %v2604_v19  ;;  %v2605_v56 = vmul.f32 %v2541_v36, %v4664_v41  ;;  %v4787_v30 = vmul.f32 %v2667_v40, %v4540_v0  ;;  %v4804_v0 = vpop.f32.mrb[28].mxu0 }
 0x276   : > { %v1967_v26 = vadd.f32 -0.28449672, %v1903_v14  ;;  %v1648_v11 = vmul.f32 1.0614054, %v4780_v53  ;;  %v1395_v49 = vmul.f32 0.3275911, %v1331_v33  ;;  %v4802_v35 = vadd.f32 %v4575_v57, %v4426_v2 }
 0x277   : > { %6595 = vst [vmem:[#allocation19_spill] sm:$0xff] %v4787_v30  ;;  %3580 = vrcp.f32 %v1458_v46  ;;  %v4790_v59 = vmul.f32 0.70710677, %v4773_v39  ;;  %v4798_v41 = vsel %vm1201_vm10, 1.0, %v6589_v17  ;;  %v2478_v31 = vmul.f32 %v3573_v12, %v2158_v4  ;;  %v4823_v4 = vpop.f32.mrb[29].mxu0 }
 0x278   : > { %v4792_v25 = vpop.eup %3576  ;;  %v2031_v23 = vmul.f32 %v4731_v24, %v1967_v26  ;;  %v1712_v61 = vadd.f32 -1.4531521, %v1648_v11  ;;  %3582 = vpow2.f32 %v2363_v34  ;;  %v1459_v5 = vadd.f32 1.0, %v1395_v49 }
 0x279   : > { %v1649_v50 = vmul.f32 1.0614054, %v4792_v25  ;;  %v4808_v52 = vmul.f32 %v2668_v15, %v4602_v47  ;;  %v2669_v10 = vadd.f32 1.0, %v2605_v56  ;;  %v2365_v42 = vmul.f32 1.442695, %v2289_v22  ;;  %v4827_v15 = vpop.f32.mrb[30].mxu0 }
 0x27a   : > { %v1776_v7 = vmul.f32 %v4780_v53, %v1712_v61  ;;  %v3579_v37 = vpop.eup %3578  ;;  %v2095_v19 = vadd.f32 0.2548296, %v2031_v23  ;;  %3584 = vrcp.f32 %v1459_v5  ;;  %v4812_v57 = vand.u32 2147483647, %v4790_v59 }
 0x27b   : > { %v1713_v36 = vadd.f32 -1.4531521, %v1649_v50  ;;  %v4814_v12 = vmul.f32 0.5, %v935_v29  ;;  %v2226_v40 = vsub.f32 0.0, %v4761_v60  ;;  %v4818_v13 = vmul.f32 0.70710677, %v4802_v35 }
 0x27c   : > { %v1840_v43 = vadd.f32 1.4214138, %v1776_v7  ;;  %v2542_v47 = vsub.f32 1.0, %v2478_v31  ;;  %vm1202_vm11 = vcmp.ge.f32.partialorder %v4750_v55, 0.0  ;;  %v1396_v34 = vmul.f32 0.3275911, %v4812_v57 }
 0x27d   : > { %v1777_v14 = vmul.f32 %v4792_v25, %v1713_v36  ;;  %3586 = vpow2.f32 %v2365_v42  ;;  %v2227_v46 = vsub.f32 0.0, %v1331_v33  ;;  %v1333_v29 = vand.u32 2147483647, %v4818_v13  ;;  %v4833_v55 = vpop.f32.mrb[31].mxu0 }
 0x27e   : > { %v1904_v22 = vmul.f32 %v4780_v53, %v1840_v43  ;;  %v4830_v56 = vmul.f32 %v2669_v10, %v4610_v58  ;;  %v2159_v26 = vmul.f32 %v4731_v24, %v2095_v19  ;;  %v1460_v49 = vadd.f32 1.0, %v1396_v34  ;;  %v4856_v34 = vpop.f32.mrb[32].mxu0 }
 0x27f   : > { %v1841_v11 = vadd.f32 1.4214138, %v1777_v14  ;;  %v4836_v61 = vsel %vm1202_vm11, 1.0, %v6589_v17  ;;  %v2290_v31 = vmul.f32 %v2226_v40, %v4761_v60  ;;  %v1397_v50 = vmul.f32 0.3275911, %v1333_v29  ;;  %6597 = vst [vmem:[#allocation21_spill] sm:$0xff] %v4856_v34 }
 0x280   : > { %6596 = vst [vmem:[#allocation20_spill] sm:$0xff] %v4830_v56  ;;  %v1968_v23 = vadd.f32 -0.28449672, %v1904_v22  ;;  %v2606_v7 = vmul.f32 %v2542_v47, %v4711_v38  ;;  %3588 = vrcp.f32 %v1460_v49  ;;  %v4845_v24 = vadd.f32 %v4585_v62, %v4428_v28 }
 0x281   : > { %v4839_v5 = vpop.eup %3580  ;;  %v1905_v58 = vmul.f32 %v4792_v25, %v1841_v11  ;;  %vm1203_vm12 = vcmp.ge.f32.partialorder %v4769_v32, 0.0  ;;  %v2291_v42 = vmul.f32 %v2227_v46, %v1331_v33  ;;  %v1461_v19 = vadd.f32 1.0, %v1397_v50 }
 0x282   : > { %v1650_v10 = vmul.f32 1.0614054, %v4839_v5  ;;  %v3583_v36 = vpop.eup %3582  ;;  %v2479_v60 = vmul.f32 %v3579_v37, %v2159_v26  ;;  %v4850_v40 = vmul.f32 0.5, %v4758_v20  ;;  %v4853_v38 = vmul.f32 0.5, %v4773_v39  ;;  %v4867_v39 = vpop.f32.mrb[33].mxu0 }
 0x283   : > { %v1969_v43 = vadd.f32 -0.28449672, %v1905_v58  ;;  %v2032_v47 = vmul.f32 %v4780_v53, %v1968_v23  ;;  %v2367_v62 = vmul.f32 1.442695, %v2290_v31  ;;  %3590 = vrcp.f32 %v1461_v19  ;;  %6598 = vst [vmem:[#allocation22_spill] sm:$0xff] %v4867_v39  ;;  %v4872_v49 = vpop.f32.mrb[34].mxu0 }
 0x284   : > { %v1714_v14 = vadd.f32 -1.4531521, %v1650_v10  ;;  %v4858_v22 = vpop.eup %3584  ;;  %v2670_v32 = vadd.f32 1.0, %v2606_v7  ;;  %v4861_v33 = vsel %vm1203_vm12, 1.0, %v6589_v17  ;;  %v2228_v37 = vsub.f32 0.0, %v4812_v57  ;;  %6599 = vst [vmem:[#allocation23_spill] sm:$0xff] %v4872_v49 }
 0x285   : > { %v4865_v20 = vmul.f32 0.70710677, %v4845_v24  ;;  %v1651_v26 = vmul.f32 1.0614054, %v4858_v22  ;;  %v2369_v11 = vmul.f32 1.442695, %v2291_v42  ;;  %v2033_v31 = vmul.f32 %v4792_v25, %v1969_v43 }
 0x286   : > { %v1778_v46 = vmul.f32 %v4839_v5, %v1714_v14  ;;  %vm1204_vm13 = vcmp.ge.f32.partialorder %v4790_v59, 0.0  ;;  %v2543_v23 = vsub.f32 1.0, %v2479_v60  ;;  %v2229_v50 = vsub.f32 0.0, %v1333_v29  ;;  %v4878_v58 = vpop.f32.mrb[35].mxu0 }
 0x287   : > { %v4876_v7 = vand.u32 2147483647, %v4865_v20  ;;  %6600 = vst [vmem:[#allocation24_spill] sm:$0xff] %v4878_v58  ;;  %v3587_v10 = vpop.eup %3586  ;;  %v2096_v19 = vadd.f32 0.2548296, %v2032_v47  ;;  %3592 = vpow2.f32 %v2367_v62  ;;  %v4881_v42 = vsel %vm1204_vm13, 1.0, %v6589_v17 }
 0x288   : > { %v1842_v56 = vadd.f32 1.4214138, %v1778_v46  ;;  %v1715_v14 = vadd.f32 -1.4531521, %v1651_v26  ;;  %v2292_v59 = vmul.f32 %v2228_v37, %v4812_v57  ;;  %v4887_v43 = vadd.f32 %v4596_v63, %v4426_v2 }
 0x289   : > { %v1398_v60 = vmul.f32 0.3275911, %v4876_v7  ;;  %3594 = vpow2.f32 %v2369_v11  ;;  %vm1205_vm14 = vcmp.ge.f32.partialorder %v4818_v13, 0.0  ;;  %v2607_v62 = vmul.f32 %v2543_v23, %v4734_v6 }
 0x28a   : > { %v1906_v49 = vmul.f32 %v4839_v5, %v1842_v56  ;;  %v1779_v58 = vmul.f32 %v4858_v22, %v1715_v14  ;;  %v4892_v47 = vpop.eup %3588  ;;  %v2097_v46 = vadd.f32 0.2548296, %v2033_v31  ;;  %v2293_v26 = vmul.f32 %v2229_v50, %v1333_v29  ;;  %v4903_v14 = vpop.f32.mrb[36].mxu0 }
 0x28b   : > { %v1462_v57 = vadd.f32 1.0, %v1398_v60  ;;  %v2160_v37 = vmul.f32 %v4780_v53, %v2096_v19  ;;  %v1652_v63 = vmul.f32 1.0614054, %v4892_v47  ;;  %v2371_v51 = vmul.f32 1.442695, %v2292_v59  ;;  %6601 = vst [vmem:[#allocation25_spill] sm:$0xff] %v4903_v14 }
 0x28c   : > { %v1970_v39 = vadd.f32 -0.28449672, %v1906_v49  ;;  %v1843_v30 = vadd.f32 1.4214138, %v1779_v58  ;;  %v4898_v56 = vmul.f32 0.5, %v4802_v35  ;;  %v4911_v23 = vadd.f32 %v4612_v44, %v4428_v28 }
 0x28d   : > { %3596 = vrcp.f32 %v1462_v57  ;;  %v4901_v11 = vmul.f32 0.70710677, %v4887_v43  ;;  %v4905_v6 = vpop.eup %3590  ;;  %v1716_v49 = vadd.f32 -1.4531521, %v1652_v63  ;;  %v2671_v31 = vadd.f32 1.0, %v2607_v62 }
 0x28e   : > { %v2034_v29 = vmul.f32 %v4839_v5, %v1970_v39  ;;  %v1907_v53 = vmul.f32 %v4858_v22, %v1843_v30  ;;  %v4916_v35 = vsel %vm1205_vm14, 1.0, %v6589_v17  ;;  %v1653_v50 = vmul.f32 1.0614054, %v4905_v6 }
 0x28f   : > { %v2373_v58 = vmul.f32 1.442695, %v2293_v26  ;;  %v2480_v19 = vmul.f32 %v3583_v36, %v2160_v37  ;;  %v2161_v59 = vmul.f32 %v4792_v25, %v2097_v46  ;;  %v1780_v30 = vmul.f32 %v4892_v47, %v1716_v49  ;;  %v4932_v25 = vpop.f32.mrb[37].mxu0 }
 0x290   : > { %v1971_v39 = vadd.f32 -0.28449672, %v1907_v53  ;;  %v4922_v60 = vmul.f32 %v2670_v32, %v4689_v27  ;;  %v2098_v44 = vadd.f32 0.2548296, %v2034_v29  ;;  %v1717_v57 = vadd.f32 -1.4531521, %v1653_v50 }
 0x291   : > { %v4925_v62 = vand.u32 2147483647, %v4901_v11  ;;  %v3593_v13 = vpop.eup %3592  ;;  %v1844_v14 = vadd.f32 1.4214138, %v1780_v30  ;;  %v2230_v26 = vsub.f32 0.0, %v4876_v7  ;;  %6603 = vst [vmem:[#allocation27_spill] sm:$0xff] %v4932_v25  ;;  %3598 = vpow2.f32 %v2371_v51 }
 0x292   : > { %6602 = vst [vmem:[#allocation26_spill] sm:$0xff] %v4922_v60  ;;  %v2035_v63 = vmul.f32 %v4858_v22, %v1971_v39  ;;  %v4930_v36 = vmul.f32 0.70710677, %v4911_v23  ;;  %v1781_v27 = vmul.f32 %v4905_v6, %v1717_v57  ;;  %v4936_v32 = vmul.f32 0.5, %v4845_v24 }
 0x293   : > { %v1399_v46 = vmul.f32 0.3275911, %v4925_v62  ;;  %v3595_v37 = vpop.eup %3594  ;;  %v2544_v29 = vsub.f32 1.0, %v2480_v19  ;;  %v2481_v53 = vmul.f32 %v3587_v10, %v2161_v59  ;;  %v1908_v50 = vmul.f32 %v4892_v47, %v1844_v14 }
 0x294   : > { %v2099_v49 = vadd.f32 0.2548296, %v2035_v63  ;;  %v4941_v39 = vmul.f32 %v2671_v31, %v4704_v48  ;;  %v2162_v30 = vmul.f32 %v4839_v5, %v2098_v44  ;;  %v1845_v25 = vadd.f32 1.4214138, %v1781_v27  ;;  %v4951_v48 = vpop.f32.mrb[38].mxu0 }
 0x295   : > { %v1463_v51 = vadd.f32 1.0, %v1399_v46  ;;  %v1972_v60 = vadd.f32 -0.28449672, %v1908_v50  ;;  %3600 = vpow2.f32 %v2373_v58  ;;  %v2294_v24 = vmul.f32 %v2230_v26, %v4876_v7  ;;  %6605 = vst [vmem:[#allocation29_spill] sm:$0xff] %v4951_v48 }
 0x296   : > { %6604 = vst [vmem:[#allocation28_spill] sm:$0xff] %v4941_v39  ;;  %v1336_v57 = vand.u32 2147483647, %v4930_v36  ;;  %v2163_v10 = vmul.f32 %v4858_v22, %v2099_v49  ;;  %v1909_v19 = vmul.f32 %v4905_v6, %v1845_v25  ;;  %vm1206_vm15 = vcmp.ge.f32.partialorder %v4865_v20, 0.0 }
 0x297   : > { %v4946_v34 = vpop.eup %3596  ;;  %3602 = vrcp.f32 %v1463_v51  ;;  %v2608_v5 = vmul.f32 %v2544_v29, %v4748_v21  ;;  %v2545_v14 = vsub.f32 1.0, %v2481_v53  ;;  %v2036_v31 = vmul.f32 %v4892_v47, %v1972_v60 }
 0x298   : > { %v1654_v7 = vmul.f32 1.0614054, %v4946_v34  ;;  %v2482_v58 = vmul.f32 %v3593_v13, %v2162_v30  ;;  %v1973_v59 = vadd.f32 -0.28449672, %v1909_v19  ;;  %v1400_v44 = vmul.f32 0.3275911, %v1336_v57 }
 0x299   : > { %v953_v22 = vadd.f32 %v4630_v16, %v4426_v2  ;;  %v4959_v63 = vsel %vm1206_vm15, 1.0, %v6589_v17  ;;  %v2375_v26 = vmul.f32 1.442695, %v2294_v24  ;;  %v4962_v25 = vmul.f32 0.5, %v4887_v43 }
 0x29a   : > { %v1718_v20 = vadd.f32 -1.4531521, %v1654_v7  ;;  %v2483_v21 = vmul.f32 %v3595_v37, %v2163_v10  ;;  %v2100_v27 = vadd.f32 0.2548296, %v2036_v31  ;;  %vm1207_vm0 = vcmp.ge.f32.partialorder %v4901_v11, 0.0 }
 0x29b   : > { %v1464_v60 = vadd.f32 1.0, %v1400_v44  ;;  %v2672_v46 = vadd.f32 1.0, %v2608_v5  ;;  %v2609_v13 = vmul.f32 %v2545_v14, %v4798_v41  ;;  %v2231_v16 = vsub.f32 0.0, %v4925_v62  ;;  %v3599_v53 = vpop.eup %3598 }
 0x29c   : > { %v1782_v29 = vmul.f32 %v4946_v34, %v1718_v20  ;;  %v2546_v49 = vsub.f32 1.0, %v2482_v58  ;;  %v2037_v50 = vmul.f32 %v4905_v6, %v1973_v59  ;;  %v4969_v30 = vmul.f32 0.70710677, %v953_v22  ;;  %v4989_v58 = vpop.f32.mrb[39].mxu0 }
 0x29d   : > { %3604 = vrcp.f32 %v1464_v60  ;;  %v2232_v37 = vsub.f32 0.0, %v1336_v57  ;;  %v4973_v51 = vadd.f32 %v4639_v8, %v4428_v28  ;;  %v2547_v24 = vsub.f32 1.0, %v2483_v21  ;;  %6606 = vst [vmem:[#allocation30_spill] sm:$0xff] %v4989_v58 }
 0x29e   : > { %v1846_v43 = vadd.f32 1.4214138, %v1782_v29  ;;  %3606 = vpow2.f32 %v2375_v26  ;;  %v2164_v41 = vmul.f32 %v4892_v47, %v2100_v27  ;;  %v4979_v10 = vsel %vm1207_vm0, 1.0, %v6589_v17 }
 0x29f   : > { %v4982_v19 = vand.u32 2147483647, %v4969_v30  ;;  %v3601_v5 = vpop.eup %3600  ;;  %v4985_v14 = vmul.f32 %v2672_v46, %v4714_v9  ;;  %v2673_v31 = vadd.f32 1.0, %v2609_v13  ;;  %v2295_v8 = vmul.f32 %v2231_v16, %v4925_v62 }
 0x2a0   : > { %v1910_v7 = vmul.f32 %v4946_v34, %v1846_v43  ;;  %v2610_v11 = vmul.f32 %v2546_v49, %v4836_v61  ;;  %v2101_v59 = vadd.f32 0.2548296, %v2037_v50  ;;  %vm1208_vm1 = vcmp.ge.f32.partialorder %v4930_v36, 0.0 }
 0x2a1   : > { %v4991_v47 = vpop.eup %3602  ;;  %v1401_v44 = vmul.f32 0.3275911, %v4982_v19  ;;  %v2296_v26 = vmul.f32 %v2232_v37, %v1336_v57  ;;  %v4998_v21 = vmul.f32 0.70710677, %v4973_v51  ;;  %v2611_v62 = vmul.f32 %v2547_v24, %v4861_v33 }
 0x2a2   : > { %v1974_v20 = vadd.f32 -0.28449672, %v1910_v7  ;;  %v1655_v9 = vmul.f32 1.0614054, %v4991_v47  ;;  %v2484_v27 = vmul.f32 %v3599_v53, %v2164_v41  ;;  %v5003_v46 = vadd.f32 %v4642_v18, %v4426_v2 }
 0x2a3   : > { %v1465_v60 = vadd.f32 1.0, %v1401_v44  ;;  %v5006_v61 = vmul.f32 %v2673_v31, %v4777_v54  ;;  %v2377_v29 = vmul.f32 1.442695, %v2295_v8  ;;  %v5009_v16 = vmul.f32 0.5, %v4911_v23 }
 0x2a4   : > { %v1719_v13 = vadd.f32 -1.4531521, %v1655_v9  ;;  %v2674_v57 = vadd.f32 1.0, %v2610_v11  ;;  %v2165_v49 = vmul.f32 %v4905_v6, %v2101_v59  ;;  %v2038_v50 = vmul.f32 %v4946_v34, %v1974_v20 }
 0x2a5   : > { %6607 = vst [vmem:[#allocation31_spill] sm:$0xff] %v5006_v61  ;;  %3608 = vrcp.f32 %v1465_v60  ;;  %v5017_v18 = vsel %vm1208_vm1, 1.0, %v6589_v17  ;;  %v5019_v54 = vmul.f32 0.5, %v953_v22  ;;  %v1338_v53 = vand.u32 2147483647, %v4998_v21 }
 0x2a6   : > { %v1783_v33 = vmul.f32 %v4991_v47, %v1719_v13  ;;  %v2675_v23 = vadd.f32 1.0, %v2611_v62  ;;  %v2548_v37 = vsub.f32 1.0, %v2484_v27  ;;  %v2379_v24 = vmul.f32 1.442695, %v2296_v26 }
 0x2a7   : > { %v5022_v43 = vpop.eup %3604  ;;  %v5025_v6 = vmul.f32 0.70710677, %v5003_v46  ;;  %3610 = vpow2.f32 %v2377_v29  ;;  %v1402_v36 = vmul.f32 0.3275911, %v1338_v53  ;;  %v5029_v8 = vmul.f32 %v2674_v57, %v4814_v12 }
 0x2a8   : > { %v3607_v41 = vpop.eup %3606  ;;  %v1847_v31 = vadd.f32 1.4214138, %v1783_v33  ;;  %v1656_v7 = vmul.f32 1.0614054, %v5022_v43  ;;  %v2485_v22 = vmul.f32 %v3601_v5, %v2165_v49  ;;  %v2102_v11 = vadd.f32 0.2548296, %v2038_v50 }
 0x2a9   : > { %6608 = vst [vmem:[#allocation32_spill] sm:$0xff] %v5029_v8  ;;  %v5032_v59 = vand.u32 2147483647, %v5025_v6  ;;  %v2233_v9 = vsub.f32 0.0, %v4982_v19  ;;  %v1466_v26 = vadd.f32 1.0, %v1402_v36  ;;  %v2612_v62 = vmul.f32 %v2548_v37, %v4881_v42  ;;  %v6610_v49 = vld [vmem:[#allocation13_spill] sm:$0xff] }
 0x2aa   : > { %v1911_v44 = vmul.f32 %v4991_v47, %v1847_v31  ;;  %v1720_v20 = vadd.f32 -1.4531521, %v1656_v7  ;;  %3612 = vpow2.f32 %v2379_v24  ;;  %vm1209_vm2 = vcmp.ge.f32.partialorder %v4969_v30, 0.0 }
 0x2ab   : > { %v1403_v27 = vmul.f32 0.3275911, %v5032_v59  ;;  %v5040_v12 = vmul.f32 %v2675_v23, %v4850_v40  ;;  %3614 = vrcp.f32 %v1466_v26  ;;  %v2549_v13 = vsub.f32 1.0, %v2485_v22 }
 0x2ac   : > { %v1975_v5 = vadd.f32 -0.28449672, %v1911_v44  ;;  %v1784_v60 = vmul.f32 %v5022_v43, %v1720_v20  ;;  %v2166_v29 = vmul.f32 %v4946_v34, %v2102_v11  ;;  %v5046_v50 = vadd.f32 %v6610_v49, %v4428_v28 }
 0x2ad   : > { %6609 = vst [vmem:[#allocation33_spill] sm:$0xff] %v5040_v12  ;;  %v1467_v57 = vadd.f32 1.0, %v1403_v27  ;;  %v5049_v30 = vsel %vm1209_vm2, 1.0, %v6589_v17  ;;  %v2297_v33 = vmul.f32 %v2233_v9, %v4982_v19  ;;  %v2234_v40 = vsub.f32 0.0, %v1338_v53  ;;  %v6611_v19 = vld [vmem:[#allocation14_spill] sm:$0xff] }
 0x2ae   : > { %v1848_v42 = vadd.f32 1.4214138, %v1784_v60  ;;  %v2676_v37 = vadd.f32 1.0, %v2612_v62  ;;  %v2039_v24 = vmul.f32 %v4991_v47, %v1975_v5  ;;  %v5056_v31 = vmul.f32 0.5, %v4973_v51 }
 0x2af   : > { %v5052_v23 = vpop.eup %3608  ;;  %v5059_v34 = vmul.f32 0.70710677, %v5046_v50  ;;  %vm1210_vm3 = vcmp.ge.f32.partialorder %v4998_v21, 0.0  ;;  %v5066_v22 = vadd.f32 %v6611_v19, %v4426_v2  ;;  %v2613_v11 = vmul.f32 %v2549_v13, %v4916_v35 }
 0x2b0   : > { %v1912_v7 = vmul.f32 %v5022_v43, %v1848_v42  ;;  %v1657_v36 = vmul.f32 1.0614054, %v5052_v23  ;;  %v2486_v44 = vmul.f32 %v3607_v41, %v2166_v29  ;;  %3616 = vrcp.f32 %v1467_v57 }
 0x2b1   : > { %v5070_v51 = vand.u32 2147483647, %v5059_v34  ;;  %v3611_v20 = vpop.eup %3610  ;;  %v2381_v62 = vmul.f32 1.442695, %v2297_v33  ;;  %v2298_v27 = vmul.f32 %v2234_v40, %v1338_v53  ;;  %v5073_v5 = vmul.f32 %v2676_v37, %v4853_v38  ;;  %v6613_v33 = vld [vmem:[#allocation15_spill] sm:$0xff] }
 0x2b2   : > { %v1976_v9 = vadd.f32 -0.28449672, %v1912_v7  ;;  %v1721_v26 = vadd.f32 -1.4531521, %v1657_v36  ;;  %v2103_v21 = vadd.f32 0.2548296, %v2039_v24  ;;  %v5087_v40 = vadd.f32 %v6613_v33, %v4428_v28 }
 0x2b3   : > { %6612 = vst [vmem:[#allocation13_spill] sm:$0xff] %v5073_v5  ;;  %v5076_v60 = vsel %vm1210_vm3, 1.0, %v6589_v17  ;;  %v1404_v49 = vmul.f32 0.3275911, %v5070_v51  ;;  %v2235_v13 = vsub.f32 0.0, %v5032_v59  ;;  %v2677_v53 = vadd.f32 1.0, %v2613_v11 }
 0x2b4   : > { %v2040_v35 = vmul.f32 %v5022_v43, %v1976_v9  ;;  %v1785_v41 = vmul.f32 %v5052_v23, %v1721_v26  ;;  %v5083_v29 = vmul.f32 0.70710677, %v5066_v22  ;;  %v3613_v57 = vpop.eup %3612  ;;  %v2550_v42 = vsub.f32 1.0, %v2486_v44 }
 0x2b5   : > { %v1468_v38 = vadd.f32 1.0, %v1404_v49  ;;  %v5089_v37 = vpop.eup %3614  ;;  %3618 = vpow2.f32 %v2381_v62  ;;  %v2383_v7 = vmul.f32 1.442695, %v2298_v27  ;;  %vm1211_vm4 = vcmp.ge.f32.partialorder %v5025_v6, 0.0 }
 0x2b6   : > { %v1849_v24 = vadd.f32 1.4214138, %v1785_v41  ;;  %v2167_v36 = vmul.f32 %v4991_v47, %v2103_v21  ;;  %v2104_v19 = vadd.f32 0.2548296, %v2040_v35  ;;  %v1658_v9 = vmul.f32 1.0614054, %v5089_v37 }
 0x2b7   : > { %3620 = vrcp.f32 %v1468_v38  ;;  %v5096_v44 = vmul.f32 0.5, %v5003_v46  ;;  %v2299_v26 = vmul.f32 %v2235_v13, %v5032_v59  ;;  %v1341_v49 = vand.u32 2147483647, %v5083_v29 }
 0x2b8   : > { %v1913_v11 = vmul.f32 %v5052_v23, %v1849_v24  ;;  %v5101_v62 = vmul.f32 %v2677_v53, %v4898_v56  ;;  %v2614_v6 = vmul.f32 %v2550_v42, %v4959_v63  ;;  %v1722_v27 = vadd.f32 -1.4531521, %v1658_v9 }
 0x2b9   : > { %v5105_v47 = vmul.f32 0.70710677, %v5087_v40  ;;  %3622 = vpow2.f32 %v2383_v7  ;;  %v5108_v35 = vsel %vm1211_vm4, 1.0, %v6589_v17  ;;  %v1405_v46 = vmul.f32 0.3275911, %v1341_v49 }
 0x2ba   : > { %6614 = vst [vmem:[#allocation14_spill] sm:$0xff] %v5101_v62  ;;  %v1977_v21 = vadd.f32 -0.28449672, %v1913_v11  ;;  %v5110_v41 = vpop.eup %3616  ;;  %v2487_v59 = vmul.f32 %v3611_v20, %v2167_v36  ;;  %v2168_v13 = vmul.f32 %v5022_v43, %v2104_v19  ;;  %v1786_v56 = vmul.f32 %v5089_v37, %v1722_v27  ;;  %v6615_v11 = vld [vmem:[#allocation16_spill] sm:$0xff] }
 0x2bb   : > { %v5115_v53 = vand.u32 2147483647, %v5105_v47  ;;  %v1659_v42 = vmul.f32 1.0614054, %v5110_v41  ;;  %v2385_v38 = vmul.f32 1.442695, %v2299_v26  ;;  %v5126_v27 = vadd.f32 %v6615_v11, %v4426_v2 }
 0x2bc   : > { %v2041_v63 = vmul.f32 %v5052_v23, %v1977_v21  ;;  %v2236_v33 = vsub.f32 0.0, %v5070_v51  ;;  %v2678_v24 = vadd.f32 1.0, %v2614_v6  ;;  %v1850_v7 = vadd.f32 1.4214138, %v1786_v56 }
 0x2bd   : > { %v5121_v9 = vmul.f32 0.5, %v5046_v50  ;;  %v1469_v20 = vadd.f32 1.0, %v1405_v46  ;;  %v1723_v43 = vadd.f32 -1.4531521, %v1659_v42  ;;  %v1406_v19 = vmul.f32 0.3275911, %v5115_v53 }
 0x2be   : > { %v2105_v36 = vadd.f32 0.2548296, %v2041_v63  ;;  %v2551_v21 = vsub.f32 1.0, %v2487_v59  ;;  %v2488_v62 = vmul.f32 %v3613_v57, %v2168_v13  ;;  %v1914_v26 = vmul.f32 %v5089_v37, %v1850_v7 }
 0x2bf   : > { %3624 = vrcp.f32 %v1469_v20  ;;  %v3619_v12 = vpop.eup %3618  ;;  %v1787_v6 = vmul.f32 %v5110_v41, %v1723_v43  ;;  %v2300_v50 = vmul.f32 %v2236_v33, %v5070_v51  ;;  %v2237_v56 = vsub.f32 0.0, %v1341_v49 }
 0x2c0   : > { %v1470_v46 = vadd.f32 1.0, %v1406_v19  ;;  %v5134_v42 = vmul.f32 %v2678_v24, %v4936_v32  ;;  %v1978_v61 = vadd.f32 -0.28449672, %v1914_v26  ;;  %vm1212_vm5 = vcmp.ge.f32.partialorder %v5059_v34, 0.0 }
 0x2c1   : > { %v5131_v63 = vpop.eup %3620  ;;  %v5138_v57 = vmul.f32 0.5, %v5066_v22  ;;  %v2169_v59 = vmul.f32 %v5052_v23, %v2105_v36  ;;  %v1851_v13 = vadd.f32 1.4214138, %v1787_v6  ;;  %vm1213_vm6 = vcmp.ge.f32.partialorder %v5083_v29, 0.0  ;;  %v6617_v36 = vld [vmem:[#allocation17_spill] sm:$0xff] }
 0x2c2   : > { %6616 = vst [vmem:[#allocation15_spill] sm:$0xff] %v5134_v42  ;;  %v1660_v7 = vmul.f32 1.0614054, %v5131_v63  ;;  %v2615_v51 = vmul.f32 %v2551_v21, %v4979_v10  ;;  %v2552_v33 = vsub.f32 1.0, %v2488_v62  ;;  %3626 = vrcp.f32 %v1470_v46 }
 0x2c3   : > { %v1151_v32 = vmul.f32 0.70710677, %v5126_v27  ;;  %v3623_v24 = vpop.eup %3622  ;;  %v1915_v20 = vmul.f32 %v5110_v41, %v1851_v13  ;;  %v2387_v19 = vmul.f32 1.442695, %v2300_v50  ;;  %v2301_v22 = vmul.f32 %v2237_v56, %v1341_v49 }
 0x2c4   : > { %v1724_v43 = vadd.f32 -1.4531521, %v1660_v7  ;;  %v2042_v11 = vmul.f32 %v5089_v37, %v1978_v61  ;;  %3628 = vpow2.f32 %v2385_v38  ;;  %v969_v26 = vadd.f32 %v6617_v36, %v4428_v28 }
 0x2c5   : > { %v5147_v23 = vand.u32 2147483647, %v1151_v32  ;;  %v2489_v6 = vmul.f32 %v3619_v12, %v2169_v59  ;;  %v5154_v10 = vsel %vm1212_vm5, 1.0, %v6589_v17  ;;  %v5160_v49 = vsel %vm1213_vm6, 1.0, %v6589_v17  ;;  %v6618_v59 = vld [vmem:[#allocation5_spill] sm:$0xff] }
 0x2c6   : > { %v1788_v62 = vmul.f32 %v5131_v63, %v1724_v43  ;;  %v2679_v61 = vadd.f32 1.0, %v2615_v51  ;;  %v2616_v38 = vmul.f32 %v2552_v33, %v5017_v18  ;;  %v2238_v21 = vsub.f32 0.0, %v5115_v53 }
 0x2c7   : > { %v1407_v50 = vmul.f32 0.3275911, %v5147_v23  ;;  %v1979_v12 = vadd.f32 -0.28449672, %v1915_v20  ;;  %3630 = vpow2.f32 %v2387_v19  ;;  %v2389_v34 = vmul.f32 1.442695, %v2301_v22 }
 0x2c8   : > { %v1852_v56 = vadd.f32 1.4214138, %v1788_v62  ;;  %vm1190_vm7 = vcmp.ge.f32.partialorder %v6618_v59, 0.0  ;;  %v2106_v13 = vadd.f32 0.2548296, %v2042_v11  ;;  %vm1214_vm8 = vcmp.ge.f32.partialorder %v5105_v47, 0.0 }
 0x2c9   : > { %v5165_v46 = vpop.eup %3624  ;;  %v1471_v29 = vadd.f32 1.0, %v1407_v50  ;;  %v5169_v7 = vmul.f32 0.70710677, %v969_v26  ;;  %v2553_v51 = vsub.f32 1.0, %v2489_v6  ;;  %v5174_v20 = vmul.f32 0.5, %v5087_v40 }
 0x2ca   : > { %v1916_v18 = vmul.f32 %v5131_v63, %v1852_v56  ;;  %v1661_v33 = vmul.f32 1.0614054, %v5165_v46  ;;  %v5177_v43 = vmul.f32 %v2679_v61, %v4962_v25  ;;  %v2680_v19 = vadd.f32 1.0, %v2616_v38 }
 0x2cb   : > { %v2302_v22 = vmul.f32 %v2238_v21, %v5115_v53  ;;  %3632 = vrcp.f32 %v1471_v29  ;;  %v2043_v47 = vmul.f32 %v5110_v41, %v1979_v12  ;;  %v5182_v36 = vsel %vm1214_vm8, 1.0, %v6589_v17 }
 0x2cc   : > { %6619 = vst [vmem:[#allocation16_spill] sm:$0xff] %v5177_v43  ;;  %v1725_v11 = vadd.f32 -1.4531521, %v1661_v33  ;;  %3634 = vpow2.f32 %v2389_v34  ;;  %v5184_v6 = vpop.eup %3626  ;;  %v2170_v62 = vmul.f32 %v5089_v37, %v2106_v13  ;;  %v5188_v40 = vmul.f32 0.5, %v5126_v27  ;;  %v6621_v27 = vld [vmem:[#allocation9_spill] sm:$0xff] }
 0x2cd   : > { %vm1215_vm9 = vcmp.ge.f32.partialorder %v1151_v32, 0.0  ;;  %v5191_v25 = vand.u32 2147483647, %v5169_v7  ;;  %v2617_v53 = vmul.f32 %v2553_v51, %v5049_v30  ;;  %v1980_v61 = vadd.f32 -0.28449672, %v1916_v18 }
 0x2ce   : > { %v1789_v38 = vmul.f32 %v5165_v46, %v1725_v11  ;;  %v1662_v21 = vmul.f32 1.0614054, %v5184_v6  ;;  %v3629_v50 = vpop.eup %3628  ;;  %v5197_v12 = vmul.f32 %v2680_v19, %v5009_v16  ;;  %v2391_v56 = vmul.f32 1.442695, %v2302_v22 }
 0x2cf   : > { %v1408_v37 = vmul.f32 0.3275911, %v5191_v25  ;;  %v1638_v34 = vmul.f32 1.0614054, %v6621_v27  ;;  %v2107_v32 = vadd.f32 0.2548296, %v2043_v47  ;;  %v2490_v51 = vmul.f32 %v3623_v24, %v2170_v62 }
 0x2d0   : > { %6620 = vst [vmem:[#allocation17_spill] sm:$0xff] %v5197_v12  ;;  %v1853_v13 = vadd.f32 1.4214138, %v1789_v38  ;;  %v5202_v29 = vsel %vm1215_vm9, 1.0, %v6589_v17  ;;  %v2239_v30 = vsub.f32 0.0, %v5147_v23  ;;  %v5205_v33 = vmul.f32 0.5, %v969_v26 }
 0x2d1   : > { %v1726_v18 = vadd.f32 -1.4531521, %v1662_v21  ;;  %v1472_v11 = vadd.f32 1.0, %v1408_v37  ;;  %v3631_v43 = vpop.eup %3630  ;;  %v5207_v16 = vadd.f32 1.0, %v2617_v53  ;;  %v2044_v19 = vmul.f32 %v5131_v63, %v1980_v61  ;;  %v6622_v12 = vld [vmem:[#allocation11_spill] sm:$0xff] }
 0x2d2   : > { %v1917_v22 = vmul.f32 %v5165_v46, %v1853_v13  ;;  %v1640_v47 = vmul.f32 1.0614054, %v6622_v12  ;;  %v1702_v42 = vadd.f32 -1.4531521, %v1638_v34  ;;  %v5215_v24 = vadd.f32 %v4804_v0, %v4426_v2 }
 0x2d3   : > { %v1790_v38 = vmul.f32 %v5184_v6, %v1726_v18  ;;  %3636 = vrcp.f32 %v1472_v11  ;;  %v2171_v26 = vmul.f32 %v5110_v41, %v2107_v32  ;;  %v2303_v62 = vmul.f32 %v2239_v30, %v5147_v23 }
 0x2d4   : > { %v5222_v53 = vsel %vm1190_vm7, 1.0, %v6589_v17  ;;  %v1704_v61 = vadd.f32 -1.4531521, %v1640_v47  ;;  %v2554_v37 = vsub.f32 1.0, %v2490_v51  ;;  %vm1216_vm10 = vcmp.ge.f32.partialorder %v5169_v7, 0.0  ;;  %v6623_v51 = vld [vmem:[#allocation6_spill] sm:$0xff] }
 0x2d5   : > { %v5224_v21 = vpop.eup %3632  ;;  %v1854_v13 = vadd.f32 1.4214138, %v1790_v38  ;;  %v1766_v34 = vmul.f32 %v6621_v27, %v1702_v42  ;;  %v2108_v18 = vadd.f32 0.2548296, %v2044_v19  ;;  %v1981_v41 = vadd.f32 -0.28449672, %v1917_v22 }
 0x2d6   : > { %v5228_v0 = vpop.eup %3634  ;;  %3638 = vpow2.f32 %v2391_v56  ;;  %v1663_v23 = vmul.f32 1.0614054, %v5224_v21  ;;  %v1768_v32 = vmul.f32 %v6622_v12, %v1704_v61  ;;  %v5234_v11 = vmul.f32 0.70710677, %v5215_v24  ;;  %v5261_v19 = vpop.f32.mrb[40].mxu0 }
 0x2d7   : > { %v1918_v59 = vmul.f32 %v5184_v6, %v1854_v13  ;;  %v1830_v30 = vadd.f32 1.4214138, %v1766_v34  ;;  %vm1192_vm11 = vcmp.ge.f32.partialorder %v6623_v51, 0.0  ;;  %v2491_v47 = vmul.f32 %v3629_v50, %v2171_v26 }
 0x2d8   : > { %v1727_v38 = vadd.f32 -1.4531521, %v1663_v23  ;;  %v2393_v42 = vmul.f32 1.442695, %v2303_v62  ;;  %v2618_v56 = vmul.f32 %v2554_v37, %v5076_v60  ;;  %v1832_v5 = vadd.f32 1.4214138, %v1768_v32 }
 0x2d9   : > { %v1982_v22 = vadd.f32 -0.28449672, %v1918_v59  ;;  %v1894_v13 = vmul.f32 %v6621_v27, %v1830_v30  ;;  %v2172_v61 = vmul.f32 %v5131_v63, %v2108_v18  ;;  %v2045_v34 = vmul.f32 %v5165_v46, %v1981_v41 }
 0x2da   : > { %v1791_v8 = vmul.f32 %v5224_v21, %v1727_v38  ;;  %v5247_v50 = vsel %vm1216_vm10, 1.0, %v6589_v17  ;;  %v1896_v62 = vmul.f32 %v6622_v12, %v1832_v5  ;;  %v5252_v37 = vand.u32 2147483647, %v5234_v11 }
 0x2db   : > { %v2046_v26 = vmul.f32 %v5184_v6, %v1982_v22  ;;  %v1958_v60 = vadd.f32 -0.28449672, %v1894_v13  ;;  %v2555_v23 = vsub.f32 1.0, %v2491_v47  ;;  %3640 = vpow2.f32 %v2393_v42 }
 0x2dc   : > { %v1855_v59 = vadd.f32 1.4214138, %v1791_v8  ;;  %v2240_v63 = vsub.f32 0.0, %v5191_v25  ;;  %v2682_v41 = vadd.f32 1.0, %v2618_v56  ;;  %v1960_v32 = vadd.f32 -0.28449672, %v1896_v62 }
 0x2dd   : > { %v5255_v18 = vpop.eup %3636  ;;  %v2022_v7 = vmul.f32 %v6621_v27, %v1958_v60  ;;  %v1409_v30 = vmul.f32 0.3275911, %v5252_v37  ;;  %v2492_v38 = vmul.f32 %v3631_v43, %v2172_v61  ;;  %v2109_v22 = vadd.f32 0.2548296, %v2045_v34  ;;  %v5266_v43 = vpop.f32.mrb[41].mxu0 }
 0x2de   : > { %v1919_v5 = vmul.f32 %v5224_v21, %v1855_v59  ;;  %v1664_v13 = vmul.f32 1.0614054, %v5255_v18  ;;  %v2110_v8 = vadd.f32 0.2548296, %v2046_v26  ;;  %v2024_v47 = vmul.f32 %v6622_v12, %v1960_v32 }
 0x2df   : > { %v2086_v42 = vadd.f32 0.2548296, %v2022_v7  ;;  %v1473_v58 = vadd.f32 1.0, %v1409_v30  ;;  %v2619_v56 = vmul.f32 %v2555_v23, %v5108_v35  ;;  %v2304_v39 = vmul.f32 %v2240_v63, %v5191_v25 }
 0x2e0   : > { %v3639_v48 = vpop.eup %3638  ;;  %v1983_v62 = vadd.f32 -0.28449672, %v1919_v5  ;;  %v1728_v60 = vadd.f32 -1.4531521, %v1664_v13  ;;  %v2088_v61 = vadd.f32 0.2548296, %v2024_v47  ;;  %v5271_v26 = vadd.f32 %v4823_v4, %v4428_v28 }
 0x2e1   : > { %v2150_v34 = vmul.f32 %v6621_v27, %v2086_v42  ;;  %3642 = vrcp.f32 %v1473_v58  ;;  %v2556_v59 = vsub.f32 1.0, %v2492_v38  ;;  %v2173_v32 = vmul.f32 %v5165_v46, %v2109_v22  ;;  %v6624_v58 = vld [vmem:[#allocation10_spill] sm:$0xff]  ;;  %v6625_v5 = vld [vmem:[#allocation12_spill] sm:$0xff] }
 0x2e2   : > { %v2047_v7 = vmul.f32 %v5224_v21, %v1983_v62  ;;  %v1792_v35 = vmul.f32 %v5255_v18, %v1728_v60  ;;  %v2174_v23 = vmul.f32 %v5184_v6, %v2110_v8  ;;  %v1256_v25 = vsel %vm1192_vm11, 1.0, %v6589_v17 }
 0x2e3   : > { %v2152_v27 = vmul.f32 %v6622_v12, %v2088_v61  ;;  %v2470_v63 = vmul.f32 %v6624_v58, %v2150_v34  ;;  %v5284_v4 = vmul.f32 %v5207_v16, %v5019_v54  ;;  %v2395_v38 = vmul.f32 1.442695, %v2304_v39  ;;  %v5296_v16 = vpop.f32.mrb[42].mxu0 }
 0x2e4   : > { %v2111_v30 = vadd.f32 0.2548296, %v2047_v7  ;;  %v1856_v46 = vadd.f32 1.4214138, %v1792_v35  ;;  %v5287_v22 = vmul.f32 %v2682_v41, %v5056_v31  ;;  %v5291_v51 = vmul.f32 0.70710677, %v5271_v26 }
 0x2e5   : > { %v2472_v6 = vmul.f32 %v6625_v5, %v2152_v27  ;;  %v2534_v13 = vsub.f32 1.0, %v2470_v63  ;;  %v3641_v8 = vpop.eup %3640  ;;  %v2683_v12 = vadd.f32 1.0, %v2619_v56  ;;  %v2620_v47 = vmul.f32 %v2556_v59, %v5154_v10  ;;  %6626 = vst [vmem:[#allocation5_spill] sm:$0xff] %v5296_v16 }
 0x2e6   : > { %v2493_v42 = vmul.f32 %v5228_v0, %v2173_v32  ;;  %v1920_v54 = vmul.f32 %v5255_v18, %v1856_v46  ;;  %v2494_v39 = vmul.f32 %v3639_v48, %v2174_v23  ;;  %v5301_v41 = vadd.f32 %v4827_v15, %v4426_v2  ;;  %v5311_v48 = vpop.f32.mrb[43].mxu0 }
 0x2e7   : > { %v2536_v62 = vsub.f32 1.0, %v2472_v6  ;;  %v2598_v31 = vmul.f32 %v2534_v13, %v5222_v53  ;;  %v2175_v60 = vmul.f32 %v5224_v21, %v2111_v30  ;;  %3644 = vpow2.f32 %v2395_v38  ;;  %6627 = vst [vmem:[#allocation9_spill] sm:$0xff] %v5311_v48  ;;  %v6628_v30 = vld [vmem:[#allocation7_spill] sm:$0xff]  ;;  %v6629_v38 = vld [vmem:[#allocation8_spill] sm:$0xff] }
 0x2e8   : > { %v1984_v61 = vadd.f32 -0.28449672, %v1920_v54  ;;  %v5305_v10 = vand.u32 2147483647, %v5291_v51  ;;  %v5308_v34 = vmul.f32 0.5, %v5215_v24  ;;  %vm1217_vm12 = vcmp.ge.f32.partialorder %v5234_v11, 0.0 }
 0x2e9   : > { %v2600_v0 = vmul.f32 %v2536_v62, %v1256_v25  ;;  %v2662_v56 = vadd.f32 1.0, %v2598_v31  ;;  %v2557_v53 = vsub.f32 1.0, %v2493_v42  ;;  %v2241_v59 = vsub.f32 0.0, %v5252_v37 }
 0x2ea   : > { %v2048_v15 = vmul.f32 %v5255_v18, %v1984_v61  ;;  %v1410_v21 = vmul.f32 0.3275911, %v5305_v10  ;;  %v2684_v7 = vadd.f32 1.0, %v2620_v47  ;;  %v2558_v35 = vsub.f32 1.0, %v2494_v39 }
 0x2eb   : > { %v5316_v32 = vpop.eup %3642  ;;  %v2664_v23 = vadd.f32 1.0, %v2600_v0  ;;  %v5319_v25 = vmul.f32 0.70710677, %v5301_v41  ;;  %v2495_v24 = vmul.f32 %v3641_v8, %v2175_v60  ;;  %v2726_v46 = vmul.f32 %v2662_v56, %v6628_v30  ;;  %v5329_v8 = vpop.f32.mrb[44].mxu0 }
 0x2ec   : > { %v2112_v27 = vadd.f32 0.2548296, %v2048_v15  ;;  %v1665_v58 = vmul.f32 1.0614054, %v5316_v32  ;;  %v1474_v63 = vadd.f32 1.0, %v1410_v21  ;;  %v979_v13 = vadd.f32 %v4833_v55, %v4428_v28  ;;  %6630 = vst [vmem:[#allocation11_spill] sm:$0xff] %v5329_v8 }
 0x2ed   : > { %v2728_v5 = vmul.f32 %v2664_v23, %v6629_v38  ;;  %v1347_v6 = vand.u32 2147483647, %v5319_v25  ;;  %v2621_v47 = vmul.f32 %v2557_v53, %v5160_v49  ;;  %v2305_v54 = vmul.f32 %v2241_v59, %v5252_v37  ;;  %v6635_v38 = vld [vmem:[#allocation22_spill] sm:$0xff] }
 0x2ee   : > { %v1729_v42 = vadd.f32 -1.4531521, %v1665_v58  ;;  %3646 = vrcp.f32 %v1474_v63  ;;  %v5332_v39 = vmul.f32 %v2683_v12, %v5096_v44  ;;  %v5337_v31 = vsel %vm1217_vm12, 1.0, %v6589_v17 }
 0x2ef   : > { %v2790_v62 = vpack.c.bf16 %v2728_v5, %v2726_v46  ;;  %v1411_v60 = vmul.f32 0.3275911, %v1347_v6  ;;  %v2622_v55 = vmul.f32 %v2558_v35, %v5182_v36  ;;  %v2559_v61 = vsub.f32 1.0, %v2495_v24  ;;  %v6633_v35 = vld [vmem:[#allocation18_spill] sm:$0xff]  ;;  %v5376_v5 = vpop.f32.mrb[45].mxu0 }
 0x2f0   : > { %v2176_v49 = vmul.f32 %v5255_v18, %v2112_v27  ;;  %v1793_v37 = vmul.f32 %v5316_v32, %v1729_v42  ;;  %v5343_v0 = vmul.f32 %v2684_v7, %v5121_v9  ;;  %v5345_v12 = vmul.f32 0.70710677, %v979_v13  ;;  %v6632_v18 = vld [vmem:[#allocation21_spill] sm:$0xff]  ;;  %6636 = vst [vmem:[#allocation6_spill] sm:$0xff] %v5376_v5 }
 0x2f1   : > { %2988 = vmatprep.mubr.bf16.mxu1 %v2790_v62  ;;  %v1475_v44 = vadd.f32 1.0, %v1411_v60  ;;  %v2792_v11 = vpack.c.bf16 %v4808_v52, %v4764_v1  ;;  %v3645_v56 = vpop.eup %3644  ;;  %v2685_v53 = vadd.f32 1.0, %v2621_v47  ;;  %v2397_v59 = vmul.f32 1.442695, %v2305_v54  ;;  %v6634_v1 = vld [vmem:[#allocation19_spill] sm:$0xff] }
 0x2f2   : > { %v1857_v15 = vadd.f32 1.4214138, %v1793_v37  ;;  %v6631_v36 = vpack.c.bf16 %v4742_v3, %v4723_v45  ;;  %v983_v21 = vadd.f32 %v6632_v18, %v4426_v2  ;;  %v2242_v9 = vsub.f32 0.0, %v5305_v10 }
 0x2f3   : > { %3648 = vrcp.f32 %v1475_v44  ;;  %v5356_v7 = vand.u32 2147483647, %v5345_v12  ;;  %v2791_v52 = vpack.c.bf16 %v6634_v1, %v6633_v35  ;;  %v2686_v23 = vadd.f32 1.0, %v2622_v55 }
 0x2f4   : > { %2989 = vmatmul.mubr.bf16.vlgmr.msra.gmra.mrb[0].mxu1 %v6631_v36  ;;  %v2623_v24 = vmul.f32 %v2559_v61, %v5202_v29  ;;  %v2496_v27 = vmul.f32 %v3645_v56, %v2176_v49  ;;  %vm1218_vm13 = vcmp.ge.f32.partialorder %v5291_v51, 0.0  ;;  %v5363_v45 = vmul.f32 0.5, %v5271_v26 }
 0x2f5   : > { %2996 = vmatprep.mubr.bf16.mxu1 %v2792_v11  ;;  %v2243_v3 = vsub.f32 0.0, %v1347_v6  ;;  %v1412_v58 = vmul.f32 0.3275911, %v5356_v7  ;;  %v5366_v63 = vmul.f32 0.70710677, %v983_v21  ;;  %v5369_v30 = vmul.f32 %v2685_v53, %v5138_v57 }
 0x2f6   : > { %v1921_v46 = vmul.f32 %v5316_v32, %v1857_v15  ;;  %3650 = vpow2.f32 %v2397_v59  ;;  %v5374_v29 = vadd.f32 %v6635_v38, %v4428_v28  ;;  %v5379_v26 = vsel %vm1218_vm13, 1.0, %v6589_v17  ;;  %v5431_v38 = vpop.f32.mrb[46].mxu0 }
 0x2f7   : > { %v2306_v51 = vmul.f32 %v2242_v9, %v5305_v10  ;;  %v1476_v47 = vadd.f32 1.0, %v1412_v58  ;;  %v5383_v42 = vand.u32 2147483647, %v5366_v63  ;;  %v5388_v54 = vmul.f32 %v2686_v23, %v5174_v20  ;;  %6638 = vst [vmem:[#allocation10_spill] sm:$0xff] %v5431_v38 }
 0x2f8   : > { %v5385_v57 = vpop.eup %3646  ;;  %v2687_v62 = vadd.f32 1.0, %v2623_v24  ;;  %v2560_v60 = vsub.f32 1.0, %v2496_v27  ;;  %vm1219_vm14 = vcmp.ge.f32.partialorder %v5319_v25, 0.0  ;;  %v2307_v61 = vmul.f32 %v2243_v3, %v1347_v6  ;;  %v6637_v25 = vld [vmem:[#allocation23_spill] sm:$0xff] }
 0x2f9   : > { %v1666_v55 = vmul.f32 1.0614054, %v5385_v57  ;;  %3652 = vrcp.f32 %v1476_v47  ;;  %v1413_v49 = vmul.f32 0.3275911, %v5383_v42  ;;  %v1985_v10 = vadd.f32 -0.28449672, %v1921_v46 }
 0x2fa   : > { %v5394_v37 = vmul.f32 0.5, %v5301_v41  ;;  %v5396_v44 = vmul.f32 0.5, %v979_v13  ;;  %v5399_v20 = vmul.f32 0.70710677, %v5374_v29  ;;  %v2399_v56 = vmul.f32 1.442695, %v2306_v51 }
 0x2fb   : > { %v1730_v11 = vadd.f32 -1.4531521, %v1666_v55  ;;  %v1477_v53 = vadd.f32 1.0, %v1413_v49  ;;  %v5403_v15 = vadd.f32 %v6637_v25, %v4426_v2  ;;  %v2624_v6 = vmul.f32 %v2560_v60, %v5247_v50  ;;  %v6641_v25 = vld [vmem:[#allocation26_spill] sm:$0xff] }
 0x2fc   : > { %2997 = vmatmul.mubr.bf16.gmra.mrb[4].mxu1 %v2791_v52  ;;  %v5407_v59 = vsel %vm1219_vm14, 1.0, %v6589_v17  ;;  %vm1220_vm15 = vcmp.ge.f32.partialorder %v5345_v12, 0.0  ;;  %v5411_v41 = vand.u32 2147483647, %v5399_v20  ;;  %v5416_v36 = vmul.f32 %v2687_v62, %v5188_v40  ;;  %v6639_v62 = vld [vmem:[#allocation24_spill] sm:$0xff] }
 0x2fd   : > { %v5413_v13 = vpop.eup %3648  ;;  %v1794_v18 = vmul.f32 %v5385_v57, %v1730_v11  ;;  %v2401_v9 = vmul.f32 1.442695, %v2307_v61  ;;  %3654 = vrcp.f32 %v1477_v53  ;;  %v2049_v35 = vmul.f32 %v5316_v32, %v1985_v10 }
 0x2fe   : > { %v1667_v50 = vmul.f32 1.0614054, %v5413_v13  ;;  %v2244_v1 = vsub.f32 0.0, %v5356_v7  ;;  %v1414_v12 = vmul.f32 0.3275911, %v5411_v41  ;;  %3656 = vpow2.f32 %v2399_v56 }
 0x2ff   : > { %v1858_v52 = vadd.f32 1.4214138, %v1794_v18  ;;  %v5424_v23 = vsel %vm1220_vm15, 1.0, %v6589_v17  ;;  %v5427_v40 = vmul.f32 0.70710677, %v5403_v15  ;;  %v2688_v27 = vadd.f32 1.0, %v2624_v6 }
 0x300   : > { %v3651_v24 = vpop.eup %3650  ;;  %v1731_v3 = vadd.f32 -1.4531521, %v1667_v50  ;;  %v5429_v58 = vmul.f32 0.5, %v983_v21  ;;  %v1478_v46 = vadd.f32 1.0, %v1414_v12  ;;  %vm1221_vm0 = vcmp.ge.f32.partialorder %v5366_v63, 0.0  ;;  %v5442_v21 = vpop.f32.mrb[47].mxu0 }
 0x301   : > { %v1922_v51 = vmul.f32 %v5385_v57, %v1858_v52  ;;  %v5436_v47 = vand.u32 2147483647, %v5427_v40  ;;  %v989_v60 = vadd.f32 %v6639_v62, %v4428_v28  ;;  %v2113_v55 = vadd.f32 0.2548296, %v2049_v35  ;;  %6640 = vst [vmem:[#allocation12_spill] sm:$0xff] %v5442_v21  ;;  %v5471_v62 = vpop.f32.mrb[48].mxu0 }
 0x302   : > { %v1795_v61 = vmul.f32 %v5413_v13, %v1731_v3  ;;  %v2308_v49 = vmul.f32 %v2244_v1, %v5356_v7  ;;  %3658 = vrcp.f32 %v1478_v46  ;;  %v2245_v56 = vsub.f32 0.0, %v5383_v42  ;;  %6642 = vst [vmem:[#allocation7_spill] sm:$0xff] %v5471_v62 }
 0x303   : > { %v5444_v10 = vpop.eup %3652  ;;  %v1986_v11 = vadd.f32 -0.28449672, %v1922_v51  ;;  %v1415_v53 = vmul.f32 0.3275911, %v5436_v47  ;;  %v2794_v6 = vpack.c.bf16 %v4985_v14, %v6641_v25  ;;  %3660 = vpow2.f32 %v2401_v9 }
 0x304   : > { %v1859_v18 = vadd.f32 1.4214138, %v1795_v61  ;;  %v1668_v35 = vmul.f32 1.0614054, %v5444_v10  ;;  %v5454_v7 = vsel %vm1221_vm0, 1.0, %v6589_v17  ;;  %v5458_v1 = vmul.f32 0.5, %v5374_v29 }
 0x305   : > { %v2050_v50 = vmul.f32 %v5385_v57, %v1986_v11  ;;  %v1479_v12 = vadd.f32 1.0, %v1415_v53  ;;  %v5460_v52 = vmul.f32 0.70710677, %v989_v60  ;;  %3004 = vmatprep.mubr.bf16.mxu1 %v2794_v6  ;;  %v2403_v9 = vmul.f32 1.442695, %v2308_v49 }
 0x306   : > { %v1923_v14 = vmul.f32 %v5413_v13, %v1859_v18  ;;  %v1732_v3 = vadd.f32 -1.4531521, %v1668_v35  ;;  %vm1222_vm1 = vcmp.ge.f32.partialorder %v5399_v20, 0.0  ;;  %v2177_v63 = vmul.f32 %v5316_v32, %v2113_v55 }
 0x307   : > { %v5464_v46 = vpop.eup %3654  ;;  %v2309_v51 = vmul.f32 %v2245_v56, %v5383_v42  ;;  %3662 = vrcp.f32 %v1479_v12  ;;  %v5469_v29 = vand.u32 2147483647, %v5460_v52  ;;  %v2246_v49 = vsub.f32 0.0, %v5411_v41  ;;  %v5483_v56 = vpop.f32.mrb[49].mxu0 }
 0x308   : > { %v1987_v61 = vadd.f32 -0.28449672, %v1923_v14  ;;  %v1796_v11 = vmul.f32 %v5444_v10, %v1732_v3  ;;  %v1669_v53 = vmul.f32 1.0614054, %v5464_v46  ;;  %v3657_v20 = vpop.eup %3656  ;;  %v5477_v25 = vmul.f32 %v2688_v27, %v5205_v33  ;;  %6643 = vst [vmem:[#allocation8_spill] sm:$0xff] %v5483_v56  ;;  %v5489_v14 = vpop.f32.mrb[50].mxu0 }
 0x309   : > { %v2114_v32 = vadd.f32 0.2548296, %v2050_v50  ;;  %v5480_v42 = vsel %vm1222_vm1, 1.0, %v6589_v17  ;;  %v1416_v55 = vmul.f32 0.3275911, %v5469_v29  ;;  %v5487_v12 = vmul.f32 0.5, %v5403_v15 }
 0x30a   : > { %v2051_v6 = vmul.f32 %v5413_v13, %v1987_v61  ;;  %v1860_v18 = vadd.f32 1.4214138, %v1796_v11  ;;  %v1733_v35 = vadd.f32 -1.4531521, %v1669_v53  ;;  %6644 = vst [vmem:[#allocation21_spill] sm:$0xff] %v5489_v14  ;;  %v2497_v3 = vmul.f32 %v3651_v24, %v2177_v63  ;;  %v6645_v50 = vld [vmem:[#allocation25_spill] sm:$0xff] }
 0x30b   : > { %v2405_v33 = vmul.f32 1.442695, %v2309_v51  ;;  %v1480_v27 = vadd.f32 1.0, %v1416_v55  ;;  %v5493_v62 = vadd.f32 %v6645_v50, %v4426_v2  ;;  %v5495_v21 = vpop.f32.mrb[51].mxu0  ;;  %v2310_v15 = vmul.f32 %v2246_v49, %v5411_v41  ;;  %v6647_v53 = vld [vmem:[#allocation20_spill] sm:$0xff] }
 0x30c   : > { %6646 = vst [vmem:[#allocation18_spill] sm:$0xff] %v5495_v21  ;;  %v5497_v38 = vpop.eup %3658  ;;  %v1924_v61 = vmul.f32 %v5444_v10, %v1860_v18  ;;  %v1797_v11 = vmul.f32 %v5464_v46, %v1733_v35  ;;  %v6648_v56 = vld [vmem:[#allocation28_spill] sm:$0xff]  ;;  %v2247_v63 = vsub.f32 0.0, %v5436_v47  ;;  %v5506_v51 = vmul.f32 0.5, %v989_v60 }
 0x30d   : > { %v2793_v14 = vpack.c.bf16 %v6648_v56, %v6647_v53  ;;  %v1670_v24 = vmul.f32 1.0614054, %v5497_v38  ;;  %3664 = vrcp.f32 %v1480_v27  ;;  %v3661_v55 = vpop.eup %3660  ;;  %v2178_v50 = vmul.f32 %v5385_v57, %v2114_v32  ;;  %v5512_v56 = vpop.f32.mrb[52].mxu0 }
 0x30e   : > { %v2115_v21 = vadd.f32 0.2548296, %v2051_v6  ;;  %v1988_v5 = vadd.f32 -0.28449672, %v1924_v61  ;;  %v1861_v18 = vadd.f32 1.4214138, %v1797_v11  ;;  %3666 = vpow2.f32 %v2403_v9 }
 0x30f   : > { %3005 = vmatmul.mubr.bf16.gmra.mrb[8].mxu1 %v2793_v14  ;;  %v2561_v35 = vsub.f32 1.0, %v2497_v3  ;;  %v1734_v41 = vadd.f32 -1.4531521, %v1670_v24  ;;  %v5510_v49 = vmul.f32 0.70710677, %v5493_v62  ;;  %6649 = vst [vmem:[#allocation19_spill] sm:$0xff] %v5512_v56  ;;  %3668 = vpow2.f32 %v2405_v33 }
 0x310   : > { %v2052_v53 = vmul.f32 %v5444_v10, %v1988_v5  ;;  %v1925_v60 = vmul.f32 %v5464_v46, %v1861_v18  ;;  %v2407_v27 = vmul.f32 1.442695, %v2310_v15  ;;  %v5516_v8 = vpop.f32.mrb[53].mxu0  ;;  %vm1223_vm2 = vcmp.ge.f32.partialorder %v5427_v40, 0.0  ;;  %v6652_v18 = vld [vmem:[#allocation27_spill] sm:$0xff] }
 0x311   : > { %6650 = vst [vmem:[#allocation22_spill] sm:$0xff] %v5516_v8  ;;  %v5518_v57 = vpop.eup %3662  ;;  %v1798_v32 = vmul.f32 %v5497_v38, %v1734_v41  ;;  %v2311_v9 = vmul.f32 %v2247_v63, %v5436_v47  ;;  %v5524_v6 = vand.u32 2147483647, %v5510_v49  ;;  %v5526_v14 = vpop.f32.mrb[54].mxu0  ;;  %v2498_v5 = vmul.f32 %v3657_v20, %v2178_v50 }
 0x312   : > { %6651 = vst [vmem:[#allocation23_spill] sm:$0xff] %v5526_v14  ;;  %v2179_v3 = vmul.f32 %v5413_v13, %v2115_v21  ;;  %v1989_v33 = vadd.f32 -0.28449672, %v1925_v60  ;;  %v2248_v61 = vsub.f32 0.0, %v5469_v29  ;;  %v1671_v15 = vmul.f32 1.0614054, %v5518_v57 }
 0x313   : > { %v1862_v11 = vadd.f32 1.4214138, %v1798_v32  ;;  %v1417_v24 = vmul.f32 0.3275911, %v5524_v6  ;;  %v5534_v41 = vadd.f32 %v6652_v18, %v4428_v28  ;;  %v2625_v47 = vmul.f32 %v2561_v35, %v5337_v31  ;;  %v5538_v20 = vpop.f32.mrb[55].mxu0 }
 0x314   : > { %v2116_v63 = vadd.f32 0.2548296, %v2052_v53  ;;  %v2053_v14 = vmul.f32 %v5464_v46, %v1989_v33  ;;  %3670 = vpow2.f32 %v2407_v27  ;;  %v1735_v21 = vadd.f32 -1.4531521, %v1671_v15  ;;  %v5548_v53 = vpop.f32.mrb[56].mxu0 }
 0x315   : > { %v1926_v13 = vmul.f32 %v5497_v38, %v1862_v11  ;;  %v2409_v50 = vmul.f32 1.442695, %v2311_v9  ;;  %v1481_v60 = vadd.f32 1.0, %v1417_v24  ;;  %v2562_v32 = vsub.f32 1.0, %v2498_v5 }
 0x316   : > { %v2499_v8 = vmul.f32 %v3661_v55, %v2179_v3  ;;  %v2117_v56 = vadd.f32 0.2548296, %v2053_v14  ;;  %v2312_v48 = vmul.f32 %v2248_v61, %v5469_v29  ;;  %v1799_v31 = vmul.f32 %v5518_v57, %v1735_v21  ;;  %v5559_v61 = vpop.f32.mrb[57].mxu0 }
 0x317   : > { %v5542_v18 = vpop.eup %3664  ;;  %v1990_v16 = vadd.f32 -0.28449672, %v1926_v13  ;;  %3672 = vrcp.f32 %v1481_v60  ;;  %v5546_v35 = vmul.f32 0.70710677, %v5534_v41  ;;  %v2689_v27 = vadd.f32 1.0, %v2625_v47 }
 0x318   : > { %v2180_v9 = vmul.f32 %v5444_v10, %v2116_v63  ;;  %v5554_v55 = vsel %vm1223_vm2, 1.0, %v6589_v17  ;;  %v1672_v29 = vmul.f32 1.0614054, %v5542_v18  ;;  %v3667_v14 = vpop.eup %3666  ;;  %v2181_v5 = vmul.f32 %v5464_v46, %v2117_v56 }
 0x319   : > { %v2054_v3 = vmul.f32 %v5497_v38, %v1990_v16  ;;  %v1863_v33 = vadd.f32 1.4214138, %v1799_v31  ;;  %3674 = vpow2.f32 %v2409_v50  ;;  %v3669_v11 = vpop.eup %3668  ;;  %v2626_v15 = vmul.f32 %v2562_v32, %v5379_v26  ;;  %v6653_v50 = vld [vmem:[#allocation29_spill] sm:$0xff] }
 0x31a   : > { %v2563_v10 = vsub.f32 1.0, %v2499_v8  ;;  %v1736_v24 = vadd.f32 -1.4531521, %v1672_v29  ;;  %v2411_v47 = vmul.f32 1.442695, %v2312_v48  ;;  %v2249_v13 = vsub.f32 0.0, %v5524_v6 }
 0x31b   : > { %v2118_v40 = vadd.f32 0.2548296, %v2054_v3  ;;  %v1927_v63 = vmul.f32 %v5518_v57, %v1863_v33  ;;  %v1354_v21 = vand.u32 2147483647, %v5546_v35  ;;  %v5566_v46 = vmul.f32 %v2689_v27, %v5308_v34 }
 0x31c   : > { %v2500_v16 = vmul.f32 %v3667_v14, %v2180_v9  ;;  %v1800_v56 = vmul.f32 %v5542_v18, %v1736_v24  ;;  %v5571_v60 = vadd.f32 %v6653_v50, %v4426_v2  ;;  %v2501_v8 = vmul.f32 %v3669_v11, %v2181_v5 }
 0x31d   : > { %v1991_v26 = vadd.f32 -0.28449672, %v1927_v63  ;;  %vm1224_vm3 = vcmp.ge.f32.partialorder %v5460_v52, 0.0  ;;  %v1418_v48 = vmul.f32 0.3275911, %v1354_v21  ;;  %v2690_v31 = vadd.f32 1.0, %v2626_v15 }
 0x31e   : > { %v3671_v32 = vpop.eup %3670  ;;  %v2182_v29 = vmul.f32 %v5497_v38, %v2118_v40  ;;  %v1864_v3 = vadd.f32 1.4214138, %v1800_v56  ;;  %3676 = vpow2.f32 %v2411_v47  ;;  %v2627_v34 = vmul.f32 %v2563_v10, %v5407_v59  ;;  %v5585_v15 = vpop.f32.mrb[58].mxu0  ;;  %v6654_v10 = vld [vmem:[#allocation30_spill] sm:$0xff] }
 0x31f   : > { %v2055_v27 = vmul.f32 %v5518_v57, %v1991_v26  ;;  %v2313_v9 = vmul.f32 %v2249_v13, %v5524_v6  ;;  %v1482_v14 = vadd.f32 1.0, %v1418_v48  ;;  %v2564_v33 = vsub.f32 1.0, %v2500_v16 }
 0x320   : > { %v5579_v5 = vsel %vm1224_vm3, 1.0, %v6589_v17  ;;  %v1928_v52 = vmul.f32 %v5542_v18, %v1864_v3  ;;  %v5583_v11 = vmul.f32 0.70710677, %v5571_v60  ;;  %v2565_v24 = vsub.f32 1.0, %v2501_v8 }
 0x321   : > { %v5587_v38 = vpop.eup %3672  ;;  %v2119_v59 = vadd.f32 0.2548296, %v2055_v27  ;;  %3678 = vrcp.f32 %v1482_v14  ;;  %v5591_v6 = vadd.f32 %v6654_v10, %v4428_v28  ;;  %v5594_v47 = vmul.f32 %v2690_v31, %v5363_v45 }
 0x322   : > { %v2502_v40 = vmul.f32 %v3671_v32, %v2182_v29  ;;  %v1992_v63 = vadd.f32 -0.28449672, %v1928_v52  ;;  %v1673_v13 = vmul.f32 1.0614054, %v5587_v38  ;;  %v2691_v56 = vadd.f32 1.0, %v2627_v34  ;;  %v6655_v29 = vld [vmem:[#allocation32_spill] sm:$0xff] }
 0x323   : > { %v3675_v16 = vpop.eup %3674  ;;  %v2183_v50 = vmul.f32 %v5518_v57, %v2119_v59  ;;  %v2413_v26 = vmul.f32 1.442695, %v2313_v9  ;;  %v2250_v48 = vsub.f32 0.0, %v1354_v21  ;;  %v2628_v8 = vmul.f32 %v2564_v33, %v5424_v23  ;;  %v6656_v34 = vld [vmem:[#allocation13_spill] sm:$0xff] }
 0x324   : > { %v2056_v3 = vmul.f32 %v5542_v18, %v1992_v63  ;;  %v1737_v27 = vadd.f32 -1.4531521, %v1673_v13  ;;  %v5601_v14 = vand.u32 2147483647, %v5583_v11  ;;  %v2629_v45 = vmul.f32 %v2565_v24, %v5454_v7  ;;  %v5617_v24 = vpop.f32.mrb[59].mxu0 }
 0x325   : > { %v2503_v32 = vmul.f32 %v3675_v16, %v2183_v50  ;;  %v5605_v31 = vmul.f32 0.70710677, %v5591_v6  ;;  %v2796_v52 = vpack.c.bf16 %v6656_v34, %v6655_v29  ;;  %v2566_v57 = vsub.f32 1.0, %v2502_v40  ;;  %v6657_v34 = vld [vmem:[#allocation31_spill] sm:$0xff] }
 0x326   : > { %v2120_v9 = vadd.f32 0.2548296, %v2056_v3  ;;  %v1801_v59 = vmul.f32 %v5587_v38, %v1737_v27  ;;  %v1419_v23 = vmul.f32 0.3275911, %v5601_v14  ;;  %v5612_v33 = vmul.f32 %v2691_v56, %v5394_v37 }
 0x327   : > { %v2567_v10 = vsub.f32 1.0, %v2503_v32  ;;  %v2314_v63 = vmul.f32 %v2250_v48, %v1354_v21  ;;  %v5615_v7 = vand.u32 2147483647, %v5605_v31  ;;  %3012 = vmatprep.mubr.bf16.mxu1 %v2796_v52  ;;  %v2692_v16 = vadd.f32 1.0, %v2628_v8 }
 0x328   : > { %v3677_v13 = vpop.eup %3676  ;;  %v2184_v40 = vmul.f32 %v5542_v18, %v2120_v9  ;;  %v1865_v50 = vadd.f32 1.4214138, %v1801_v59  ;;  %v1483_v3 = vadd.f32 1.0, %v1419_v23  ;;  %v2693_v27 = vadd.f32 1.0, %v2629_v45 }
 0x329   : > { %v2631_v29 = vmul.f32 %v2567_v10, %v5554_v55  ;;  %vm1225_vm4 = vcmp.ge.f32.partialorder %v5510_v49, 0.0  ;;  %3680 = vpow2.f32 %v2413_v26  ;;  %v1420_v37 = vmul.f32 0.3275911, %v5615_v7  ;;  %v6658_v55 = vld [vmem:[#allocation33_spill] sm:$0xff]  ;;  %v6659_v10 = vld [vmem:[#allocation15_spill] sm:$0xff] }
 0x32a   : > { %v2630_v21 = vmul.f32 %v2566_v57, %v5480_v42  ;;  %v2504_v56 = vmul.f32 %v3677_v13, %v2184_v40  ;;  %v1929_v48 = vmul.f32 %v5587_v38, %v1865_v50  ;;  %vm1226_vm5 = vcmp.ge.f32.partialorder %v5546_v35, 0.0 }
 0x32b   : > { %3682 = vrcp.f32 %v1483_v3  ;;  %v5626_v8 = vpop.eup %3678  ;;  %v2695_v18 = vadd.f32 1.0, %v2631_v29  ;;  %v2415_v32 = vmul.f32 1.442695, %v2314_v63  ;;  %v1484_v45 = vadd.f32 1.0, %v1420_v37  ;;  %v6660_v63 = vld [vmem:[#allocation17_spill] sm:$0xff]  ;;  %v6662_v3 = vld [vmem:[#allocation16_spill] sm:$0xff] }
 0x32c   : > { %v2795_v52 = vpack.c.bf16 %v6658_v55, %v6657_v34  ;;  %v5631_v26 = vmul.f32 %v2692_v16, %v5396_v44  ;;  %v2568_v9 = vsub.f32 1.0, %v2504_v56  ;;  %v1993_v59 = vadd.f32 -0.28449672, %v1929_v48  ;;  %v6661_v16 = vld [vmem:[#allocation14_spill] sm:$0xff] }
 0x32d   : > { %v1674_v42 = vmul.f32 1.0614054, %v5626_v8  ;;  %v5635_v57 = vmul.f32 %v2693_v27, %v5429_v58  ;;  %v5638_v23 = vmul.f32 %v2695_v18, %v5487_v12  ;;  %3684 = vrcp.f32 %v1484_v45 }
 0x32e   : > { %3013 = vmatmul.mubr.bf16.gmra.mrb[12].mxu1 %v2795_v52  ;;  %v2798_v13 = vpack.c.bf16 %v6660_v63, %v6659_v10  ;;  %v2694_v40 = vadd.f32 1.0, %v2630_v21  ;;  %v2632_v50 = vmul.f32 %v2568_v9, %v5579_v5  ;;  %v2797_v29 = vpack.c.bf16 %v6662_v3, %v6661_v16 }
 0x32f   : > { %v1738_v44 = vadd.f32 -1.4531521, %v1674_v42  ;;  %v2057_v37 = vmul.f32 %v5587_v38, %v1993_v59  ;;  %v2800_v58 = vpack.c.bf16 %v5343_v0, %v5287_v22  ;;  %v2799_v12 = vpack.c.bf16 %v5332_v39, %v5284_v4  ;;  %v5666_v0 = vpop.f32.mrb[60].mxu0 }
 0x330   : > { %3020 = vmatprep.mubr.bf16.mxu1 %v2798_v13  ;;  %v2802_v27 = vpack.c.bf16 %v5477_v25, %v5388_v54  ;;  %v2696_v56 = vadd.f32 1.0, %v2632_v50  ;;  %v2251_v5 = vsub.f32 0.0, %v5601_v14  ;;  %v2801_v48 = vpack.c.bf16 %v5416_v36, %v5369_v30 }
 0x331   : > { %v1802_v21 = vmul.f32 %v5626_v8, %v1738_v44  ;;  %v2804_v18 = vpack.c.bf16 %v5631_v26, %v5594_v47  ;;  %v2803_v22 = vpack.c.bf16 %v5612_v33, %v5566_v46  ;;  %v5664_v39 = vadd.f32 %v5261_v19, %v4426_v2 }
 0x332   : > { %v5669_v45 = vmul.f32 %v2694_v40, %v5458_v1  ;;  %v5672_v34 = vmul.f32 %v2696_v56, %v5506_v51  ;;  %v2252_v52 = vsub.f32 0.0, %v5615_v7  ;;  %v5676_v59 = vmul.f32 0.5, %v5493_v62 }
 0x333   : > { %v1866_v55 = vadd.f32 1.4214138, %v1802_v21  ;;  %v3681_v9 = vpop.eup %3680  ;;  %v2121_v42 = vadd.f32 0.2548296, %v2057_v37  ;;  %v5679_v10 = vmul.f32 0.70710677, %v5664_v39  ;;  %v5683_v19 = vadd.f32 %v5266_v43, %v4428_v28 }
 0x334   : > { %v5690_v51 = vsel %vm1225_vm4, 1.0, %v6589_v17  ;;  %v2315_v62 = vmul.f32 %v2251_v5, %v5601_v14  ;;  %v2806_v13 = vpack.c.bf16 %v5672_v34, %v5669_v45  ;;  %v5697_v40 = vmul.f32 0.5, %v5534_v41  ;;  %v5718_v5 = vpop.f32.mrb[61].mxu0 }
 0x335   : > { %v5685_v1 = vpop.eup %3682  ;;  %v1930_v63 = vmul.f32 %v5626_v8, %v1866_v55  ;;  %v5702_v43 = vsel %vm1226_vm5, 1.0, %v6589_v17  ;;  %v1357_v49 = vand.u32 2147483647, %v5679_v10  ;;  %3686 = vpow2.f32 %v2415_v32  ;;  %v6663_v32 = vld [vmem:[#allocation5_spill] sm:$0xff] }
 0x336   : > { %v1675_v50 = vmul.f32 1.0614054, %v5685_v1  ;;  %3021 = vmatmul.mubr.bf16.gmra.mrb[16].mxu1 %v2797_v29  ;;  %vm1227_vm6 = vcmp.ge.f32.partialorder %v5583_v11, 0.0  ;;  %v2316_v14 = vmul.f32 %v2252_v52, %v5615_v7  ;;  %v2185_v41 = vmul.f32 %v5587_v38, %v2121_v42 }
 0x337   : > { %v1994_v44 = vadd.f32 -0.28449672, %v1930_v63  ;;  %3028 = vmatprep.mubr.bf16.mxu1 %v2800_v58  ;;  %v5708_v16 = vpop.eup %3684  ;;  %v1421_v35 = vmul.f32 0.3275911, %v1357_v49  ;;  %v5712_v37 = vmul.f32 0.70710677, %v5683_v19  ;;  %v1007_v11 = vadd.f32 %v6663_v32, %v4426_v2 }
 0x338   : > { %v1739_v3 = vadd.f32 -1.4531521, %v1675_v50  ;;  %v2417_v56 = vmul.f32 1.442695, %v2315_v62  ;;  %v1676_v21 = vmul.f32 1.0614054, %v5708_v16  ;;  %v2505_v62 = vmul.f32 %v3681_v9, %v2185_v41 }
 0x339   : > { %v2058_v29 = vmul.f32 %v5626_v8, %v1994_v44  ;;  %v5721_v7 = vmul.f32 0.5, %v5571_v60  ;;  %v5724_v38 = vsel %vm1227_vm6, 1.0, %v6589_v17  ;;  %v1485_v55 = vadd.f32 1.0, %v1421_v35  ;;  %v6664_v9 = vld [vmem:[#allocation9_spill] sm:$0xff]  ;;  %v5739_v35 = vpop.f32.mrb[62].mxu0 }
 0x33a   : > { %v1803_v58 = vmul.f32 %v5685_v1, %v1739_v3  ;;  %v1740_v42 = vadd.f32 -1.4531521, %v1676_v21  ;;  %v2419_v63 = vmul.f32 1.442695, %v2316_v14  ;;  %v5728_v44 = vand.u32 2147483647, %v5712_v37 }
 0x33b   : > { %v2122_v52 = vadd.f32 0.2548296, %v2058_v29  ;;  %3688 = vrcp.f32 %v1485_v55  ;;  %vm1228_vm7 = vcmp.ge.f32.partialorder %v5605_v31, 0.0  ;;  %v5732_v32 = vmul.f32 0.70710677, %v1007_v11 }
 0x33c   : > { %v1867_v50 = vadd.f32 1.4214138, %v1803_v58  ;;  %3690 = vpow2.f32 %v2417_v56  ;;  %v1804_v60 = vmul.f32 %v5708_v16, %v1740_v42  ;;  %v1422_v14 = vmul.f32 0.3275911, %v5728_v44 }
 0x33d   : > { %v2186_v4 = vmul.f32 %v5626_v8, %v2122_v52  ;;  %v1009_v41 = vadd.f32 %v6664_v9, %v4428_v28  ;;  %v5742_v29 = vmul.f32 0.5, %v5591_v6  ;;  %3692 = vpow2.f32 %v2419_v63 }
 0x33e   : > { %v1931_v3 = vmul.f32 %v5685_v1, %v1867_v50  ;;  %3029 = vmatmul.mubr.bf16.gmra.mrb[20].mxu1 %v2799_v12  ;;  %v1868_v56 = vadd.f32 1.4214138, %v1804_v60  ;;  %v5748_v8 = vand.u32 2147483647, %v5732_v32  ;;  %v2569_v12 = vsub.f32 1.0, %v2505_v62  ;;  %v5763_v50 = vpop.f32.mrb[63].mxu0 }
 0x33f   : > { %3036 = vmatprep.mubr.bf16.mxu1 %v2802_v27  ;;  %v2253_v58 = vsub.f32 0.0, %v1357_v49  ;;  %v1486_v55 = vadd.f32 1.0, %v1422_v14  ;;  %v3687_v52 = vpop.eup %3686  ;;  %v5753_v42 = vsel %vm1228_vm7, 1.0, %v6589_v17  ;;  %v5757_v63 = vmul.f32 0.5, %v5664_v39 }
 0x340   : > { %v1995_v21 = vadd.f32 -0.28449672, %v1931_v3  ;;  %v1932_v6 = vmul.f32 %v5708_v16, %v1868_v56  ;;  %v1423_v54 = vmul.f32 0.3275911, %v5748_v8  ;;  %v2506_v25 = vmul.f32 %v3687_v52, %v2186_v4 }
 0x341   : > { %3694 = vrcp.f32 %v1486_v55  ;;  %v5761_v62 = vmul.f32 0.70710677, %v1009_v41  ;;  %vm1229_vm8 = vcmp.ge.f32.partialorder %v5679_v10, 0.0  ;;  %v5767_v31 = vmul.f32 0.5, %v5683_v19  ;;  %v6665_v55 = vld [vmem:[#allocation11_spill] sm:$0xff] }
 0x342   : > { %v2059_v27 = vmul.f32 %v5685_v1, %v1995_v21  ;;  %v1996_v60 = vadd.f32 -0.28449672, %v1932_v6  ;;  %v1487_v3 = vadd.f32 1.0, %v1423_v54  ;;  %v2633_v39 = vmul.f32 %v2569_v12, %v5690_v51 }
 0x343   : > { %v2317_v9 = vmul.f32 %v2253_v58, %v1357_v49  ;;  %v5771_v4 = vand.u32 2147483647, %v5761_v62  ;;  %v5774_v21 = vmul.f32 0.5, %v1007_v11  ;;  %v5778_v52 = vadd.f32 %v6665_v55, %v4426_v2 }
 0x344   : > { %v2123_v14 = vadd.f32 0.2548296, %v2059_v27  ;;  %v2060_v56 = vmul.f32 %v5708_v16, %v1996_v60  ;;  %3696 = vrcp.f32 %v1487_v3  ;;  %v2570_v19 = vsub.f32 1.0, %v2506_v25 }
 0x345   : > { %v5780_v6 = vpop.eup %3688  ;;  %v2254_v51 = vsub.f32 0.0, %v5728_v44  ;;  %v1424_v49 = vmul.f32 0.3275911, %v5771_v4  ;;  %v5794_v58 = vsel %vm1229_vm8, 1.0, %v6589_v17  ;;  %vm1230_vm9 = vcmp.ge.f32.partialorder %v5712_v37, 0.0 }
 0x346   : > { %v2187_v54 = vmul.f32 %v5685_v1, %v2123_v14  ;;  %3037 = vmatmul.mubr.bf16.gmra.mrb[24].mxu1 %v2801_v48  ;;  %v3691_v11 = vpop.eup %3690  ;;  %v2124_v12 = vadd.f32 0.2548296, %v2060_v56  ;;  %v1677_v1 = vmul.f32 1.0614054, %v5780_v6  ;;  %v2697_v30 = vadd.f32 1.0, %v2633_v39 }
 0x347   : > { %3044 = vmatprep.mubr.bf16.mxu1 %v2804_v18  ;;  %v2421_v48 = vmul.f32 1.442695, %v2317_v9  ;;  %v1488_v25 = vadd.f32 1.0, %v1424_v49  ;;  %v3693_v27 = vpop.eup %3692  ;;  %v5799_v14 = vmul.f32 0.5, %v1009_v41  ;;  %v5802_v47 = vmul.f32 0.70710677, %v5778_v52 }
 0x348   : > { %v2507_v36 = vmul.f32 %v3691_v11, %v2187_v54  ;;  %v2188_v60 = vmul.f32 %v5708_v16, %v2124_v12  ;;  %v1741_v3 = vadd.f32 -1.4531521, %v1677_v1  ;;  %v2634_v26 = vmul.f32 %v2570_v19, %v5702_v43 }
 0x349   : > { %v2318_v10 = vmul.f32 %v2254_v51, %v5728_v44  ;;  %3698 = vrcp.f32 %v1488_v25  ;;  %v5810_v9 = vsel %vm1230_vm9, 1.0, %v6589_v17  ;;  %v5813_v16 = vand.u32 2147483647, %v5802_v47  ;;  %v6666_v44 = vld [vmem:[#allocation6_spill] sm:$0xff] }
 0x34a   : > { %v2571_v18 = vsub.f32 1.0, %v2507_v36  ;;  %v2508_v56 = vmul.f32 %v3693_v27, %v2188_v60  ;;  %v1805_v39 = vmul.f32 %v5780_v6, %v1741_v3  ;;  %v5818_v55 = vmul.f32 %v2697_v30, %v5676_v59  ;;  %v6667_v25 = vld [vmem:[#allocation10_spill] sm:$0xff] }
 0x34b   : > { %v5815_v41 = vpop.eup %3694  ;;  %3700 = vpow2.f32 %v2421_v48  ;;  %v5823_v19 = vadd.f32 %v6666_v44, %v4428_v28  ;;  %v2255_v49 = vsub.f32 0.0, %v5748_v8  ;;  %v2698_v11 = vadd.f32 1.0, %v2634_v26 }
 0x34c   : > { %v2635_v43 = vmul.f32 %v2571_v18, %v5724_v38  ;;  %v2572_v54 = vsub.f32 1.0, %v2508_v56  ;;  %v1869_v51 = vadd.f32 1.4214138, %v1805_v39  ;;  %v1678_v37 = vmul.f32 1.0614054, %v5815_v41 }
 0x34d   : > { %v2423_v59 = vmul.f32 1.442695, %v2318_v10  ;;  %vm1231_vm10 = vcmp.ge.f32.partialorder %v5732_v32, 0.0  ;;  %v1425_v38 = vmul.f32 0.3275911, %v5813_v16  ;;  %v5841_v46 = vadd.f32 %v6667_v25, %v4426_v2 }
 0x34e   : > { %v2699_v12 = vadd.f32 1.0, %v2635_v43  ;;  %3045 = vmatmul.mubr.bf16.gmra.mrb[28].mxu1 %v2803_v22  ;;  %v5832_v1 = vpop.eup %3696  ;;  %v2636_v30 = vmul.f32 %v2572_v54, %v5753_v42  ;;  %v1933_v36 = vmul.f32 %v5780_v6, %v1869_v51  ;;  %v1742_v48 = vadd.f32 -1.4531521, %v1678_v37 }
 0x34f   : > { %3052 = vmatprep.mubr.bf16.mxu1 %v2806_v13  ;;  %v1679_v22 = vmul.f32 1.0614054, %v5832_v1  ;;  %v1489_v27 = vadd.f32 1.0, %v1425_v38  ;;  %v5846_v60 = vmul.f32 0.70710677, %v5823_v19  ;;  %v2319_v34 = vmul.f32 %v2255_v49, %v5748_v8 }
 0x350   : > { %v2763_v33 = vmul.f32 %v2699_v12, %v5721_v7  ;;  %v2700_v42 = vadd.f32 1.0, %v2636_v30  ;;  %v1997_v3 = vadd.f32 -0.28449672, %v1933_v36  ;;  %v1806_v45 = vmul.f32 %v5815_v41, %v1742_v48 }
 0x351   : > { %v1743_v26 = vadd.f32 -1.4531521, %v1679_v22  ;;  %v2256_v18 = vsub.f32 0.0, %v5771_v4  ;;  %3702 = vrcp.f32 %v1489_v27  ;;  %v2762_v7 = vmul.f32 %v2698_v11, %v5697_v40 }
 0x352   : > { %v2807_v13 = vpack.c.bf16 %v2763_v33, %v5818_v55  ;;  %v2764_v10 = vmul.f32 %v2700_v42, %v5742_v29  ;;  %v2061_v56 = vmul.f32 %v5780_v6, %v1997_v3  ;;  %v1870_v39 = vadd.f32 1.4214138, %v1806_v45 }
 0x353   : > { %v5855_v43 = vpop.eup %3698  ;;  %v1807_v44 = vmul.f32 %v5832_v1, %v1743_v26  ;;  %vm1232_vm11 = vcmp.ge.f32.partialorder %v5761_v62, 0.0  ;;  %v5860_v8 = vand.u32 2147483647, %v5846_v60  ;;  %v5863_v55 = vmul.f32 0.70710677, %v5841_v46 }
 0x354   : > { %v2808_v54 = vpack.c.bf16 %v2764_v10, %v2762_v7  ;;  %v1934_v40 = vmul.f32 %v5815_v41, %v1870_v39  ;;  %v1680_v29 = vmul.f32 1.0614054, %v5855_v43  ;;  %v2257_v51 = vsub.f32 0.0, %v5813_v16 }
 0x355   : > { %v3701_v37 = vpop.eup %3700  ;;  %v6668_v49 = vpack.c.bf16 %v5638_v23, %v5635_v57  ;;  %v2125_v11 = vadd.f32 0.2548296, %v2061_v56  ;;  %3704 = vpow2.f32 %v2423_v59  ;;  %v1871_v12 = vadd.f32 1.4214138, %v1807_v44  ;;  %v6669_v57 = vld [vmem:[#allocation12_spill] sm:$0xff] }
 0x356   : > { %v1426_v38 = vmul.f32 0.3275911, %v5860_v8  ;;  %v1998_v30 = vadd.f32 -0.28449672, %v1934_v40  ;;  %v2425_v36 = vmul.f32 1.442695, %v2319_v34  ;;  %v2320_v25 = vmul.f32 %v2256_v18, %v5771_v4 }
 0x357   : > { %3053 = vmatmul.mubr.bf16.gmra.mrb[32].mxu1 %v6668_v49  ;;  %v1744_v48 = vadd.f32 -1.4531521, %v1680_v29  ;;  %v1935_v33 = vmul.f32 %v5832_v1, %v1871_v12  ;;  %v5875_v27 = vand.u32 2147483647, %v5863_v55  ;;  %v1019_v23 = vadd.f32 %v6669_v57, %v4428_v28 }
 0x358   : > { %3060 = vmatprep.mubr.bf16.mxu1 %v2808_v54  ;;  %v1490_v22 = vadd.f32 1.0, %v1426_v38  ;;  %v2062_v59 = vmul.f32 %v5815_v41, %v1998_v30  ;;  %v5883_v42 = vsel %vm1231_vm10, 1.0, %v6589_v17  ;;  %v2321_v4 = vmul.f32 %v2257_v51, %v5813_v16 }
 0x359   : > { %v1808_v3 = vmul.f32 %v5855_v43, %v1744_v48  ;;  %v2189_v45 = vmul.f32 %v5780_v6, %v2125_v11  ;;  %v1999_v34 = vadd.f32 -0.28449672, %v1935_v33  ;;  %v1427_v26 = vmul.f32 0.3275911, %v5875_v27 }
 0x35a   : > { %3706 = vrcp.f32 %v1490_v22  ;;  %v2126_v18 = vadd.f32 0.2548296, %v2062_v59  ;;  %v5892_v7 = vsel %vm1232_vm11, 1.0, %v6589_v17  ;;  %v2427_v39 = vmul.f32 1.442695, %v2320_v25 }
 0x35b   : > { %3708 = vpow2.f32 %v2425_v36  ;;  %v1872_v32 = vadd.f32 1.4214138, %v1808_v3  ;;  %v5894_v10 = vpop.eup %3702  ;;  %v2063_v56 = vmul.f32 %v5832_v1, %v1999_v34  ;;  %v1491_v16 = vadd.f32 1.0, %v1427_v26 }
 0x35c   : > { %v5897_v44 = vmul.f32 0.70710677, %v1019_v23  ;;  %v5901_v54 = vmul.f32 0.5, %v5778_v52  ;;  %vm1233_vm12 = vcmp.ge.f32.partialorder %v5802_v47, 0.0  ;;  %v1681_v62 = vmul.f32 1.0614054, %v5894_v10 }
 0x35d   : > { %v1936_v6 = vmul.f32 %v5855_v43, %v1872_v32  ;;  %v2509_v40 = vmul.f32 %v3701_v37, %v2189_v45  ;;  %v2429_v29 = vmul.f32 1.442695, %v2321_v4  ;;  %vm1234_vm13 = vcmp.ge.f32.partialorder %v5846_v60, 0.0  ;;  %v6670_v45 = vld [vmem:[#allocation7_spill] sm:$0xff] }
 0x35e   : > { %3710 = vrcp.f32 %v1491_v16  ;;  %v2190_v51 = vmul.f32 %v5815_v41, %v2126_v18  ;;  %v2127_v49 = vadd.f32 0.2548296, %v2063_v56  ;;  %v1745_v12 = vadd.f32 -1.4531521, %v1681_v62 }
 0x35f   : > { %3061 = vmatmul.mubr.bf16.gmra.mrb[36].mxu1 %v2807_v13  ;;  %v2000_v11 = vadd.f32 -0.28449672, %v1936_v6  ;;  %v3705_v38 = vpop.eup %3704  ;;  %3712 = vpow2.f32 %v2427_v39  ;;  %v5908_v52 = vsel %vm1233_vm12, 1.0, %v6589_v17  ;;  %v2258_v47 = vsub.f32 0.0, %v5860_v8 }
 0x360   : > { %v1364_v30 = vand.u32 2147483647, %v5897_v44  ;;  %v1809_v37 = vmul.f32 %v5894_v10, %v1745_v12  ;;  %v5915_v36 = vmul.f32 0.5, %v5823_v19  ;;  %v5918_v41 = vmul.f32 0.5, %v5841_v46 }
 0x361   : > { %v2064_v13 = vmul.f32 %v5855_v43, %v2000_v11  ;;  %v2573_v48 = vsub.f32 1.0, %v2509_v40  ;;  %v5923_v25 = vsel %vm1234_vm13, 1.0, %v6589_v17  ;;  %vm1235_vm14 = vcmp.ge.f32.partialorder %v5863_v55, 0.0 }
 0x362   : > { %v1428_v33 = vmul.f32 0.3275911, %v1364_v30  ;;  %v2510_v22 = vmul.f32 %v3705_v38, %v2190_v51  ;;  %v2191_v57 = vmul.f32 %v5832_v1, %v2127_v49  ;;  %v1873_v59 = vadd.f32 1.4214138, %v1809_v37 }
 0x363   : > { %3714 = vpow2.f32 %v2429_v29  ;;  %v2322_v19 = vmul.f32 %v2258_v47, %v5860_v8  ;;  %v2259_v46 = vsub.f32 0.0, %v5875_v27  ;;  %v1023_v60 = vadd.f32 %v6670_v45, %v4426_v2  ;;  %v6671_v8 = vld [vmem:[#allocation8_spill] sm:$0xff] }
 0x364   : > { %v5927_v3 = vpop.eup %3706  ;;  %v1492_v4 = vadd.f32 1.0, %v1428_v33  ;;  %v2128_v26 = vadd.f32 0.2548296, %v2064_v13  ;;  %v1937_v55 = vmul.f32 %v5894_v10, %v1873_v59  ;;  %v5936_v1 = vsel %vm1235_vm14, 1.0, %v6589_v17 }
 0x365   : > { %v3709_v34 = vpop.eup %3708  ;;  %v1682_v18 = vmul.f32 1.0614054, %v5927_v3  ;;  %v2637_v32 = vmul.f32 %v2573_v48, %v5794_v58  ;;  %v5939_v56 = vmul.f32 0.5, %v1019_v23  ;;  %v5943_v39 = vadd.f32 %v6671_v8, %v4428_v28 }
 0x366   : > { %3716 = vrcp.f32 %v1492_v4  ;;  %v2574_v16 = vsub.f32 1.0, %v2510_v22  ;;  %v2511_v6 = vmul.f32 %v3709_v34, %v2191_v57  ;;  %v2001_v62 = vadd.f32 -0.28449672, %v1937_v55 }
 0x367   : > { %v1746_v40 = vadd.f32 -1.4531521, %v1682_v18  ;;  %v2431_v51 = vmul.f32 1.442695, %v2322_v19  ;;  %v2323_v49 = vmul.f32 %v2259_v46, %v5875_v27  ;;  %v2260_v11 = vsub.f32 0.0, %v1364_v30 }
 0x368   : > { %v5945_v29 = vpop.eup %3710  ;;  %v5948_v12 = vmul.f32 0.70710677, %v1023_v60  ;;  %v2192_v58 = vmul.f32 %v5855_v43, %v2128_v26  ;;  %vm1236_vm15 = vcmp.ge.f32.partialorder %v5897_v44, 0.0  ;;  %v2701_v13 = vadd.f32 1.0, %v2637_v32 }
 0x369   : > { %v1810_v23 = vmul.f32 %v5927_v3, %v1746_v40  ;;  %v1683_v38 = vmul.f32 1.0614054, %v5945_v29  ;;  %v3713_v47 = vpop.eup %3712  ;;  %v2065_v37 = vmul.f32 %v5894_v10, %v2001_v62  ;;  %v5957_v33 = vmul.f32 0.70710677, %v5943_v39 }
 0x36a   : > { %v1365_v48 = vand.u32 2147483647, %v5948_v12  ;;  %v2638_v27 = vmul.f32 %v2574_v16, %v5810_v9  ;;  %v2575_v22 = vsub.f32 1.0, %v2511_v6  ;;  %3718 = vpow2.f32 %v2431_v51 }
 0x36b   : > { %v1874_v57 = vadd.f32 1.4214138, %v1810_v23  ;;  %v1747_v43 = vadd.f32 -1.4531521, %v1683_v38  ;;  %v2433_v59 = vmul.f32 1.442695, %v2323_v49  ;;  %v2324_v19 = vmul.f32 %v2260_v11, %v1364_v30 }
 0x36c   : > { %v1429_v46 = vmul.f32 0.3275911, %v1365_v48  ;;  %v2512_v45 = vmul.f32 %v3713_v47, %v2192_v58  ;;  %v5965_v55 = vsel %vm1236_vm15, 1.0, %v6589_v17  ;;  %v5968_v9 = vmul.f32 %v2701_v13, %v5757_v63  ;;  %v6672_v13 = vld [vmem:[#allocation21_spill] sm:$0xff] }
 0x36d   : > { %v3715_v4 = vpop.eup %3714  ;;  %v1938_v34 = vmul.f32 %v5927_v3, %v1874_v57  ;;  %v1811_v26 = vmul.f32 %v5945_v29, %v1747_v43  ;;  %v2129_v18 = vadd.f32 0.2548296, %v2065_v37  ;;  %v1366_v8 = vand.u32 2147483647, %v5957_v33 }
 0x36e   : > { %v1493_v32 = vadd.f32 1.0, %v1429_v46  ;;  %v2702_v30 = vadd.f32 1.0, %v2638_v27  ;;  %v2639_v16 = vmul.f32 %v2575_v22, %v5883_v42  ;;  %v2435_v51 = vmul.f32 1.442695, %v2324_v19 }
 0x36f   : > { %v2002_v6 = vadd.f32 -0.28449672, %v1938_v34  ;;  %v1875_v62 = vadd.f32 1.4214138, %v1811_v26  ;;  %v5974_v49 = vmul.f32 0.5, %v1023_v60  ;;  %v2576_v11 = vsub.f32 1.0, %v2512_v45 }
 0x370   : > { %v5972_v40 = vpop.eup %3716  ;;  %3720 = vrcp.f32 %v1493_v32  ;;  %v1430_v44 = vmul.f32 0.3275911, %v1366_v8  ;;  %v2193_v38 = vmul.f32 %v5894_v10, %v2129_v18  ;;  %v2261_v47 = vsub.f32 0.0, %v1365_v48 }
 0x371   : > { %v2066_v63 = vmul.f32 %v5927_v3, %v2002_v6  ;;  %v1939_v58 = vmul.f32 %v5945_v29, %v1875_v62  ;;  %v1684_v23 = vmul.f32 1.0614054, %v5972_v40  ;;  %v1027_v37 = vadd.f32 %v6672_v13, %v4426_v2 }
 0x372   : > { %v1494_v42 = vadd.f32 1.0, %v1430_v44  ;;  %3722 = vpow2.f32 %v2433_v59  ;;  %v5983_v57 = vmul.f32 %v2702_v30, %v5767_v31  ;;  %v2703_v43 = vadd.f32 1.0, %v2639_v16  ;;  %v6673_v31 = vld [vmem:[#allocation18_spill] sm:$0xff] }
 0x373   : > { %v2130_v27 = vadd.f32 0.2548296, %v2066_v63  ;;  %v2003_v22 = vadd.f32 -0.28449672, %v1939_v58  ;;  %v1748_v60 = vadd.f32 -1.4531521, %v1684_v23  ;;  %v2640_v46 = vmul.f32 %v2576_v11, %v5892_v7 }
 0x374   : > { %3724 = vrcp.f32 %v1494_v42  ;;  %v5985_v19 = vmul.f32 0.70710677, %v1027_v37  ;;  %vm1237_vm0 = vcmp.ge.f32.partialorder %v5948_v12, 0.0  ;;  %v3719_v34 = vpop.eup %3718  ;;  %v2513_v26 = vmul.f32 %v3715_v4, %v2193_v38 }
 0x375   : > { %v2067_v10 = vmul.f32 %v5945_v29, %v2003_v22  ;;  %v1812_v45 = vmul.f32 %v5972_v40, %v1748_v60  ;;  %v2325_v18 = vmul.f32 %v2261_v47, %v1365_v48  ;;  %v5994_v32 = vadd.f32 %v6673_v31, %v4428_v28 }
 0x376   : > { %v1367_v59 = vand.u32 2147483647, %v5985_v19  ;;  %v2194_v30 = vmul.f32 %v5927_v3, %v2130_v27  ;;  %3726 = vpow2.f32 %v2435_v51  ;;  %v2262_v7 = vsub.f32 0.0, %v1366_v8 }
 0x377   : > { %v1876_v16 = vadd.f32 1.4214138, %v1812_v45  ;;  %v5998_v6 = vmul.f32 %v2703_v43, %v5774_v21  ;;  %v2131_v62 = vadd.f32 0.2548296, %v2067_v10  ;;  %v6001_v12 = vmul.f32 0.5, %v5943_v39 }
 0x378   : > { %v1431_v4 = vmul.f32 0.3275911, %v1367_v59  ;;  %v6005_v44 = vsel %vm1237_vm0, 1.0, %v6589_v17  ;;  %vm1238_vm1 = vcmp.ge.f32.partialorder %v5957_v33, 0.0  ;;  %v6009_v3 = vmul.f32 0.70710677, %v5994_v32 }
 0x379   : > { %v1940_v48 = vmul.f32 %v5972_v40, %v1876_v16  ;;  %v2704_v11 = vadd.f32 1.0, %v2640_v46  ;;  %v2577_v21 = vsub.f32 1.0, %v2513_v26  ;;  %v2437_v63 = vmul.f32 1.442695, %v2325_v18  ;;  %v6674_v46 = vld [vmem:[#allocation19_spill] sm:$0xff] }
 0x37a   : > { %v6011_v51 = vpop.eup %3720  ;;  %v1495_v58 = vadd.f32 1.0, %v1431_v4  ;;  %v2514_v23 = vmul.f32 %v3719_v34, %v2194_v30  ;;  %v2326_v47 = vmul.f32 %v2262_v7, %v1366_v8  ;;  %v2195_v42 = vmul.f32 %v5945_v29, %v2131_v62 }
 0x37b   : > { %v2004_v39 = vadd.f32 -0.28449672, %v1940_v48  ;;  %v1685_v38 = vmul.f32 1.0614054, %v6011_v51  ;;  %v6016_v13 = vsel %vm1238_vm1, 1.0, %v6589_v17  ;;  %v2263_v43 = vsub.f32 0.0, %v1367_v59 }
 0x37c   : > { %3728 = vrcp.f32 %v1495_v58  ;;  %v1368_v33 = vand.u32 2147483647, %v6009_v3  ;;  %v3723_v27 = vpop.eup %3722  ;;  %v6022_v10 = vadd.f32 %v6674_v46, %v4426_v2  ;;  %v6027_v8 = vmul.f32 %v2704_v11, %v5799_v14  ;;  %v6675_v58 = vld [vmem:[#allocation22_spill] sm:$0xff] }
 0x37d   : > { %v2068_v22 = vmul.f32 %v5972_v40, %v2004_v39  ;;  %v1749_v60 = vadd.f32 -1.4531521, %v1685_v38  ;;  %v2641_v29 = vmul.f32 %v2577_v21, %v5908_v52  ;;  %3730 = vpow2.f32 %v2437_v63 }
 0x37e   : > { %v6024_v45 = vpop.eup %3724  ;;  %v1432_v34 = vmul.f32 0.3275911, %v1368_v33  ;;  %v2578_v26 = vsub.f32 1.0, %v2514_v23  ;;  %v2439_v31 = vmul.f32 1.442695, %v2326_v47  ;;  %v6031_v30 = vmul.f32 0.5, %v1027_v37 }
 0x37f   : > { %v1813_v18 = vmul.f32 %v6011_v51, %v1749_v60  ;;  %v2515_v16 = vmul.f32 %v3723_v27, %v2195_v42  ;;  %v1686_v7 = vmul.f32 1.0614054, %v6024_v45  ;;  %vm1239_vm2 = vcmp.ge.f32.partialorder %v5985_v19, 0.0 }
 0x380   : > { %v1496_v62 = vadd.f32 1.0, %v1432_v34  ;;  %v3727_v4 = vpop.eup %3726  ;;  %v2132_v48 = vadd.f32 0.2548296, %v2068_v22  ;;  %v2327_v11 = vmul.f32 %v2263_v43, %v1367_v59  ;;  %v6036_v52 = vmul.f32 0.70710677, %v6022_v10 }
 0x381   : > { %v1877_v14 = vadd.f32 1.4214138, %v1813_v18  ;;  %v2705_v21 = vadd.f32 1.0, %v2641_v29  ;;  %v1750_v63 = vadd.f32 -1.4531521, %v1686_v7  ;;  %v1035_v37 = vadd.f32 %v6675_v58, %v4428_v28 }
 0x382   : > { %3732 = vrcp.f32 %v1496_v62  ;;  %v2642_v23 = vmul.f32 %v2578_v26, %v5923_v25  ;;  %v6043_v19 = vsel %vm1239_vm2, 1.0, %v6589_v17  ;;  %v2579_v38 = vsub.f32 1.0, %v2515_v16 }
 0x383   : > { %v1941_v39 = vmul.f32 %v6011_v51, %v1877_v14  ;;  %3734 = vpow2.f32 %v2439_v31  ;;  %v1814_v59 = vmul.f32 %v6024_v45, %v1750_v63  ;;  %v2264_v47 = vsub.f32 0.0, %v1368_v33 }
 0x384   : > { %v6047_v42 = vand.u32 2147483647, %v6036_v52  ;;  %v2196_v27 = vmul.f32 %v5972_v40, %v2132_v48  ;;  %v2441_v60 = vmul.f32 1.442695, %v2327_v11  ;;  %vm1240_vm3 = vcmp.ge.f32.partialorder %v6009_v3, 0.0  ;;  %v6676_v40 = vld [vmem:[#allocation23_spill] sm:$0xff] }
 0x385   : > { %v2005_v22 = vadd.f32 -0.28449672, %v1941_v39  ;;  %v6054_v43 = vmul.f32 %v2705_v21, %v5901_v54  ;;  %v1878_v46 = vadd.f32 1.4214138, %v1814_v59  ;;  %v6057_v34 = vmul.f32 0.70710677, %v1035_v37 }
 0x386   : > { %v6051_v25 = vpop.eup %3728  ;;  %v1433_v29 = vmul.f32 0.3275911, %v6047_v42  ;;  %v2706_v26 = vadd.f32 1.0, %v2642_v23  ;;  %v6063_v16 = vadd.f32 %v6676_v40, %v4426_v2  ;;  %v2643_v62 = vmul.f32 %v2579_v38, %v5936_v1 }
 0x387   : > { %v2069_v18 = vmul.f32 %v6011_v51, %v2005_v22  ;;  %v1687_v31 = vmul.f32 1.0614054, %v6051_v25  ;;  %v3731_v7 = vpop.eup %3730  ;;  %v1942_v54 = vmul.f32 %v6024_v45, %v1878_v46  ;;  %v2328_v48 = vmul.f32 %v2264_v47, %v1368_v33 }
 0x388   : > { %v1497_v14 = vadd.f32 1.0, %v1433_v29  ;;  %v2516_v11 = vmul.f32 %v3727_v4, %v2196_v27  ;;  %3736 = vpow2.f32 %v2441_v60  ;;  %v6068_v63 = vmul.f32 0.5, %v5994_v32 }
 0x389   : > { %v1751_v21 = vadd.f32 -1.4531521, %v1687_v31  ;;  %v2133_v58 = vadd.f32 0.2548296, %v2069_v18  ;;  %v2006_v23 = vadd.f32 -0.28449672, %v1942_v54  ;;  %v6072_v59 = vmul.f32 %v2706_v26, %v5915_v36 }
 0x38a   : > { %3738 = vrcp.f32 %v1497_v14  ;;  %v1370_v39 = vand.u32 2147483647, %v6057_v34  ;;  %v6078_v33 = vsel %vm1240_vm3, 1.0, %v6589_v17  ;;  %v6081_v4 = vmul.f32 0.70710677, %v6063_v16 }
 0x38b   : > { %v1815_v1 = vmul.f32 %v6051_v25, %v1751_v21  ;;  %v2707_v38 = vadd.f32 1.0, %v2643_v62  ;;  %v2070_v47 = vmul.f32 %v6024_v45, %v2006_v23  ;;  %v2443_v27 = vmul.f32 1.442695, %v2328_v48 }
 0x38c   : > { %v6083_v32 = vpop.eup %3732  ;;  %v1434_v22 = vmul.f32 0.3275911, %v1370_v39  ;;  %v2580_v36 = vsub.f32 1.0, %v2516_v11  ;;  %v6088_v26 = vmul.f32 0.5, %v6022_v10  ;;  %v2197_v3 = vmul.f32 %v6011_v51, %v2133_v58 }
 0x38d   : > { %v3735_v60 = vpop.eup %3734  ;;  %v1879_v46 = vadd.f32 1.4214138, %v1815_v1  ;;  %v1688_v29 = vmul.f32 1.0614054, %v6083_v32  ;;  %v6091_v18 = vmul.f32 0.5, %v1035_v37  ;;  %v6095_v40 = vadd.f32 %v5538_v20, %v4428_v28 }
 0x38e   : > { %v1498_v31 = vadd.f32 1.0, %v1434_v22  ;;  %v2134_v62 = vadd.f32 0.2548296, %v2070_v47  ;;  %v1371_v14 = vand.u32 2147483647, %v6081_v4  ;;  %v6100_v11 = vmul.f32 %v2707_v38, %v5918_v41 }
 0x38f   : > { %v1943_v54 = vmul.f32 %v6051_v25, %v1879_v46  ;;  %v1752_v48 = vadd.f32 -1.4531521, %v1688_v29  ;;  %vm1241_vm4 = vcmp.ge.f32.partialorder %v6036_v52, 0.0  ;;  %v2265_v51 = vsub.f32 0.0, %v6047_v42 }
 0x390   : > { %3740 = vrcp.f32 %v1498_v31  ;;  %v2644_v10 = vmul.f32 %v2580_v36, %v5965_v55  ;;  %v1435_v21 = vmul.f32 0.3275911, %v1371_v14  ;;  %v2517_v58 = vmul.f32 %v3731_v7, %v2197_v3 }
 0x391   : > { %v2007_v37 = vadd.f32 -0.28449672, %v1943_v54  ;;  %v1816_v20 = vmul.f32 %v6083_v32, %v1752_v48  ;;  %vm1242_vm5 = vcmp.ge.f32.partialorder %v6057_v34, 0.0  ;;  %v2266_v23 = vsub.f32 0.0, %v1370_v39 }
 0x392   : > { %v6108_v1 = vmul.f32 0.70710677, %v6095_v40  ;;  %v3737_v41 = vpop.eup %3736  ;;  %v2198_v38 = vmul.f32 %v6024_v45, %v2134_v62  ;;  %v1499_v46 = vadd.f32 1.0, %v1435_v21  ;;  %3742 = vpow2.f32 %v2443_v27 }
 0x393   : > { %v2071_v47 = vmul.f32 %v6051_v25, %v2007_v37  ;;  %v1880_v22 = vadd.f32 1.4214138, %v1816_v20  ;;  %v6117_v55 = vsel %vm1241_vm4, 1.0, %v6589_v17  ;;  %v2329_v7 = vmul.f32 %v2265_v51, %v6047_v42 }
 0x394   : > { %v6112_v29 = vpop.eup %3738  ;;  %v6121_v36 = vand.u32 2147483647, %v6108_v1  ;;  %v2708_v3 = vadd.f32 1.0, %v2644_v10  ;;  %v6128_v62 = vsel %vm1242_vm5, 1.0, %v6589_v17  ;;  %v2581_v27 = vsub.f32 1.0, %v2517_v58 }
 0x395   : > { %v1944_v45 = vmul.f32 %v6083_v32, %v1880_v22  ;;  %v1689_v31 = vmul.f32 1.0614054, %v6112_v29  ;;  %v2135_v54 = vadd.f32 0.2548296, %v2071_v47  ;;  %v2330_v52 = vmul.f32 %v2266_v23, %v1370_v39 }
 0x396   : > { %3744 = vrcp.f32 %v1499_v46  ;;  %v2518_v48 = vmul.f32 %v3735_v60, %v2198_v38  ;;  %v1436_v51 = vmul.f32 0.3275911, %v6121_v36  ;;  %v2445_v20 = vmul.f32 1.442695, %v2329_v7 }
 0x397   : > { %v2008_v37 = vadd.f32 -0.28449672, %v1944_v45  ;;  %v1753_v42 = vadd.f32 -1.4531521, %v1689_v31  ;;  %v6132_v10 = vmul.f32 0.5, %v6063_v16  ;;  %v2267_v21 = vsub.f32 0.0, %v1371_v14 }
 0x398   : > { %v6136_v22 = vadd.f32 %v5548_v53, %v4426_v2  ;;  %v6139_v34 = vmul.f32 %v2708_v3, %v5939_v56  ;;  %v1500_v58 = vadd.f32 1.0, %v1436_v51  ;;  %v2645_v38 = vmul.f32 %v2581_v27, %v6005_v44 }
 0x399   : > { %v2072_v39 = vmul.f32 %v6083_v32, %v2008_v37  ;;  %v1817_v60 = vmul.f32 %v6112_v29, %v1753_v42  ;;  %v2447_v47 = vmul.f32 1.442695, %v2330_v52  ;;  %vm1243_vm6 = vcmp.ge.f32.partialorder %v6081_v4, 0.0 }
 0x39a   : > { %v6143_v23 = vpop.eup %3740  ;;  %v6148_v16 = vmul.f32 0.70710677, %v6136_v22  ;;  %v2582_v53 = vsub.f32 1.0, %v2518_v48  ;;  %v2199_v46 = vmul.f32 %v6051_v25, %v2135_v54  ;;  %3746 = vrcp.f32 %v1500_v58 }
 0x39b   : > { %v1881_v56 = vadd.f32 1.4214138, %v1817_v60  ;;  %3748 = vpow2.f32 %v2445_v20  ;;  %v1690_v7 = vmul.f32 1.0614054, %v6143_v23  ;;  %v2331_v3 = vmul.f32 %v2267_v21, %v1371_v14 }
 0x39c   : > { %v6154_v45 = vadd.f32 %v5559_v61, %v4428_v28  ;;  %v2136_v44 = vadd.f32 0.2548296, %v2072_v39  ;;  %v6158_v4 = vsel %vm1243_vm6, 1.0, %v6589_v17  ;;  %v6161_v27 = vmul.f32 0.5, %v6095_v40  ;;  %v3743_v25 = vpop.eup %3742 }
 0x39d   : > { %v1945_v31 = vmul.f32 %v6112_v29, %v1881_v56  ;;  %v2709_v54 = vadd.f32 1.0, %v2645_v38  ;;  %v1754_v52 = vadd.f32 -1.4531521, %v1690_v7  ;;  %3750 = vpow2.f32 %v2447_v47 }
 0x39e   : > { %v1373_v48 = vand.u32 2147483647, %v6148_v16  ;;  %v2646_v14 = vmul.f32 %v2582_v53, %v6016_v13  ;;  %v2519_v37 = vmul.f32 %v3737_v41, %v2199_v46  ;;  %vm1244_vm7 = vcmp.ge.f32.partialorder %v6108_v1, 0.0 }
 0x39f   : > { %v2009_v61 = vadd.f32 -0.28449672, %v1945_v31  ;;  %v1818_v51 = vmul.f32 %v6143_v23, %v1754_v52  ;;  %v2449_v20 = vmul.f32 1.442695, %v2331_v3  ;;  %v6170_v40 = vmul.f32 0.70710677, %v6154_v45 }
 0x3a0   : > { %v6166_v42 = vpop.eup %3744  ;;  %v1437_v21 = vmul.f32 0.3275911, %v1373_v48  ;;  %v2200_v39 = vmul.f32 %v6083_v32, %v2136_v44  ;;  %v2268_v13 = vsub.f32 0.0, %v6121_v36  ;;  %v6177_v41 = vmul.f32 %v2709_v54, %v5974_v49 }
 0x3a1   : > { %v2073_v60 = vmul.f32 %v6112_v29, %v2009_v61  ;;  %v1691_v58 = vmul.f32 1.0614054, %v6166_v42  ;;  %v1882_v1 = vadd.f32 1.4214138, %v1818_v51  ;;  %v6180_v38 = vsel %vm1244_vm7, 1.0, %v6589_v17 }
 0x3a2   : > { %v1501_v47 = vadd.f32 1.0, %v1437_v21  ;;  %v2710_v53 = vadd.f32 1.0, %v2646_v14  ;;  %v2583_v46 = vsub.f32 1.0, %v2519_v37  ;;  %v1374_v3 = vand.u32 2147483647, %v6170_v40 }
 0x3a3   : > { %v2137_v56 = vadd.f32 0.2548296, %v2073_v60  ;;  %v1755_v7 = vadd.f32 -1.4531521, %v1691_v58  ;;  %v1946_v32 = vmul.f32 %v6143_v23, %v1882_v1  ;;  %v6186_v44 = vadd.f32 %v5585_v15, %v4426_v2 }
 0x3a4   : > { %3752 = vrcp.f32 %v1501_v47  ;;  %v6188_v49 = vpop.eup %3746  ;;  %v2520_v31 = vmul.f32 %v3743_v25, %v2200_v39  ;;  %v2332_v52 = vmul.f32 %v2268_v13, %v6121_v36  ;;  %v1438_v21 = vmul.f32 0.3275911, %v1374_v3 }
 0x3a5   : > { %v1819_v54 = vmul.f32 %v6166_v42, %v1755_v7  ;;  %3754 = vpow2.f32 %v2449_v20  ;;  %v3749_v14 = vpop.eup %3748  ;;  %v2201_v37 = vmul.f32 %v6112_v29, %v2137_v56  ;;  %v2010_v61 = vadd.f32 -0.28449672, %v1946_v32 }
 0x3a6   : > { %v1692_v51 = vmul.f32 1.0614054, %v6188_v49  ;;  %v2647_v60 = vmul.f32 %v2583_v46, %v6043_v19  ;;  %vm1245_vm8 = vcmp.ge.f32.partialorder %v6148_v16, 0.0  ;;  %v2269_v15 = vsub.f32 0.0, %v1373_v48 }
 0x3a7   : > { %v1883_v58 = vadd.f32 1.4214138, %v1819_v54  ;;  %v3751_v1 = vpop.eup %3750  ;;  %v2074_v25 = vmul.f32 %v6143_v23, %v2010_v61  ;;  %v1502_v20 = vadd.f32 1.0, %v1438_v21  ;;  %v6198_v36 = vmul.f32 0.70710677, %v6186_v44 }
 0x3a8   : > { %v1756_v39 = vadd.f32 -1.4531521, %v1692_v51  ;;  %v2584_v13 = vsub.f32 1.0, %v2520_v31  ;;  %v2451_v47 = vmul.f32 1.442695, %v2332_v52  ;;  %v6203_v56 = vadd.f32 %v5617_v24, %v4428_v28 }
 0x3a9   : > { %v1947_v29 = vmul.f32 %v6166_v42, %v1883_v58  ;;  %v6206_v19 = vmul.f32 %v2710_v53, %v6001_v12  ;;  %v2521_v46 = vmul.f32 %v3749_v14, %v2201_v37  ;;  %3756 = vrcp.f32 %v1502_v20 }
 0x3aa   : > { %v1820_v7 = vmul.f32 %v6188_v49, %v1756_v39  ;;  %v2711_v32 = vadd.f32 1.0, %v2647_v60  ;;  %v6210_v61 = vmul.f32 0.5, %v6136_v22  ;;  %v6215_v31 = vsel %vm1245_vm8, 1.0, %v6589_v17 }
 0x3ab   : > { %v2011_v54 = vadd.f32 -0.28449672, %v1947_v29  ;;  %v2138_v52 = vadd.f32 0.2548296, %v2074_v25  ;;  %v2333_v51 = vmul.f32 %v2269_v15, %v1373_v48  ;;  %v6218_v12 = vand.u32 2147483647, %v6198_v36 }
 0x3ac   : > { %v1884_v24 = vadd.f32 1.4214138, %v1820_v7  ;;  %v2648_v53 = vmul.f32 %v2584_v13, %v6078_v33  ;;  %3758 = vpow2.f32 %v2451_v47  ;;  %v2270_v14 = vsub.f32 0.0, %v1374_v3 }
 0x3ad   : > { %v6222_v37 = vmul.f32 0.70710677, %v6203_v56  ;;  %v2585_v21 = vsub.f32 1.0, %v2521_v46  ;;  %v2075_v16 = vmul.f32 %v6166_v42, %v2011_v54  ;;  %v1439_v58 = vmul.f32 0.3275911, %v6218_v12 }
 0x3ae   : > { %v6224_v22 = vpop.eup %3752  ;;  %v1948_v60 = vmul.f32 %v6188_v49, %v1884_v24  ;;  %v6230_v15 = vmul.f32 %v2711_v32, %v6031_v30  ;;  %v6234_v25 = vmul.f32 0.5, %v6154_v45  ;;  %vm1246_vm9 = vcmp.ge.f32.partialorder %v6170_v40, 0.0 }
 0x3af   : > { %v3755_v48 = vpop.eup %3754  ;;  %v1693_v33 = vmul.f32 1.0614054, %v6224_v22  ;;  %v2202_v39 = vmul.f32 %v6143_v23, %v2138_v52  ;;  %v2453_v13 = vmul.f32 1.442695, %v2333_v51  ;;  %v1503_v29 = vadd.f32 1.0, %v1439_v58 }
 0x3b0   : > { %v2012_v20 = vadd.f32 -0.28449672, %v1948_v60  ;;  %v2712_v47 = vadd.f32 1.0, %v2648_v53  ;;  %v2334_v7 = vmul.f32 %v2270_v14, %v1374_v3  ;;  %v1376_v54 = vand.u32 2147483647, %v6222_v37 }
 0x3b1   : > { %v1757_v46 = vadd.f32 -1.4531521, %v1693_v33  ;;  %v2649_v30 = vmul.f32 %v2585_v21, %v6117_v55  ;;  %v2139_v32 = vadd.f32 0.2548296, %v2075_v16  ;;  %3760 = vrcp.f32 %v1503_v29 }
 0x3b2   : > { %v2076_v24 = vmul.f32 %v6188_v49, %v2012_v20  ;;  %v6243_v40 = vsel %vm1246_vm9, 1.0, %v6589_v17  ;;  %v6246_v23 = vmul.f32 0.5, %v6186_v44  ;;  %v1440_v52 = vmul.f32 0.3275911, %v1376_v54 }
 0x3b3   : > { %v1821_v45 = vmul.f32 %v6224_v22, %v1757_v46  ;;  %v6248_v51 = vpop.eup %3756  ;;  %v2522_v3 = vmul.f32 %v3751_v1, %v2202_v39  ;;  %3762 = vpow2.f32 %v2453_v13  ;;  %v6252_v55 = vadd.f32 %v5666_v0, %v4426_v2 }
 0x3b4   : > { %v2140_v53 = vadd.f32 0.2548296, %v2076_v24  ;;  %v1694_v21 = vmul.f32 1.0614054, %v6248_v51  ;;  %vm1247_vm10 = vcmp.ge.f32.partialorder %v6198_v36, 0.0  ;;  %v1504_v16 = vadd.f32 1.0, %v1440_v52 }
 0x3b5   : > { %v1885_v14 = vadd.f32 1.4214138, %v1821_v45  ;;  %v6257_v60 = vmul.f32 %v2712_v47, %v6068_v63  ;;  %v2713_v44 = vadd.f32 1.0, %v2649_v30  ;;  %v2203_v58 = vmul.f32 %v6166_v42, %v2139_v32 }
 0x3b6   : > { %v2455_v33 = vmul.f32 1.442695, %v2334_v7  ;;  %v3759_v1 = vpop.eup %3758  ;;  %v2204_v39 = vmul.f32 %v6188_v49, %v2140_v53  ;;  %v1758_v0 = vadd.f32 -1.4531521, %v1694_v21  ;;  %3764 = vrcp.f32 %v1504_v16 }
 0x3b7   : > { %v1949_v20 = vmul.f32 %v6224_v22, %v1885_v14  ;;  %v2586_v13 = vsub.f32 1.0, %v2522_v3  ;;  %v6263_v29 = vsel %vm1247_vm10, 1.0, %v6589_v17  ;;  %v2271_v36 = vsub.f32 0.0, %v6218_v12 }
 0x3b8   : > { %v6267_v63 = vmul.f32 0.70710677, %v6252_v55  ;;  %v1822_v42 = vmul.f32 %v6248_v51, %v1758_v0  ;;  %v6271_v46 = vmul.f32 0.5, %v6203_v56  ;;  %v6275_v49 = vadd.f32 %v5718_v5, %v4428_v28 }
 0x3b9   : > { %v2013_v47 = vadd.f32 -0.28449672, %v1949_v20  ;;  %v2523_v7 = vmul.f32 %v3755_v48, %v2203_v58  ;;  %3766 = vpow2.f32 %v2455_v33  ;;  %v2272_v30 = vsub.f32 0.0, %v1376_v54 }
 0x3ba   : > { %v1377_v32 = vand.u32 2147483647, %v6267_v63  ;;  %v6279_v24 = vmul.f32 %v2713_v44, %v6088_v26  ;;  %v2524_v45 = vmul.f32 %v3759_v1, %v2204_v39  ;;  %v1886_v3 = vadd.f32 1.4214138, %v1822_v42 }
 0x3bb   : > { %v2077_v52 = vmul.f32 %v6224_v22, %v2013_v47  ;;  %v6282_v53 = vpop.eup %3760  ;;  %v2650_v56 = vmul.f32 %v2586_v13, %v6128_v62  ;;  %v2335_v14 = vmul.f32 %v2271_v36, %v6218_v12  ;;  %vm1248_vm11 = vcmp.ge.f32.partialorder %v6222_v37, 0.0 }
 0x3bc   : > { %v1441_v5 = vmul.f32 0.3275911, %v1377_v32  ;;  %v1950_v21 = vmul.f32 %v6248_v51, %v1886_v3  ;;  %v1695_v16 = vmul.f32 1.0614054, %v6282_v53  ;;  %v6290_v26 = vmul.f32 0.70710677, %v6275_v49 }
 0x3bd   : > { %v2141_v48 = vadd.f32 0.2548296, %v2077_v52  ;;  %v3763_v44 = vpop.eup %3762  ;;  %v2587_v58 = vsub.f32 1.0, %v2523_v7  ;;  %v2336_v33 = vmul.f32 %v2272_v30, %v1376_v54  ;;  %v6294_v62 = vadd.f32 %v5739_v35, %v4426_v2 }
 0x3be   : > { %v1505_v1 = vadd.f32 1.0, %v1441_v5  ;;  %v2588_v12 = vsub.f32 1.0, %v2524_v45  ;;  %v2014_v20 = vadd.f32 -0.28449672, %v1950_v21  ;;  %v1759_v0 = vadd.f32 -1.4531521, %v1695_v16 }
 0x3bf   : > { %v2205_v39 = vmul.f32 %v6224_v22, %v2141_v48  ;;  %v2457_v13 = vmul.f32 1.442695, %v2335_v14  ;;  %v6300_v36 = vsel %vm1248_vm11, 1.0, %v6589_v17  ;;  %v2273_v47 = vsub.f32 0.0, %v1377_v32 }
 0x3c0   : > { %3768 = vrcp.f32 %v1505_v1  ;;  %v6302_v42 = vpop.eup %3764  ;;  %v2078_v7 = vmul.f32 %v6248_v51, %v2014_v20  ;;  %v1823_v2 = vmul.f32 %v6282_v53, %v1759_v0  ;;  %v1378_v35 = vand.u32 2147483647, %v6290_v26 }
 0x3c1   : > { %v2525_v54 = vmul.f32 %v3763_v44, %v2205_v39  ;;  %v2714_v22 = vadd.f32 1.0, %v2650_v56  ;;  %v2651_v30 = vmul.f32 %v2587_v58, %v6158_v4  ;;  %v1696_v45 = vmul.f32 1.0614054, %v6302_v42 }
 0x3c2   : > { %v6310_v37 = vmul.f32 0.70710677, %v6294_v62  ;;  %v2652_v52 = vmul.f32 %v2588_v12, %v6180_v38  ;;  %v2142_v3 = vadd.f32 0.2548296, %v2078_v7  ;;  %v1887_v14 = vadd.f32 1.4214138, %v1823_v2 }
 0x3c3   : > { %v2459_v5 = vmul.f32 1.442695, %v2336_v33  ;;  %v3767_v48 = vpop.eup %3766  ;;  %v2589_v21 = vsub.f32 1.0, %v2525_v54  ;;  %3770 = vpow2.f32 %v2457_v13  ;;  %v1760_v16 = vadd.f32 -1.4531521, %v1696_v45 }
 0x3c4   : > { %v1442_v44 = vmul.f32 0.3275911, %v1378_v35  ;;  %v1951_v1 = vmul.f32 %v6282_v53, %v1887_v14  ;;  %v2337_v56 = vmul.f32 %v2273_v47, %v1377_v32  ;;  %v2274_v39 = vsub.f32 0.0, %v1378_v35 }
 0x3c5   : > { %v6316_v4 = vadd.f32 %v5763_v50, %v4428_v28  ;;  %v2206_v58 = vmul.f32 %v6248_v51, %v2142_v3  ;;  %v1824_v38 = vmul.f32 %v6302_v42, %v1760_v16  ;;  %v6321_v33 = vand.u32 2147483647, %v6310_v37 }
 0x3c6   : > { %v1506_v12 = vadd.f32 1.0, %v1442_v44  ;;  %v6326_v0 = vmul.f32 %v2714_v22, %v6091_v18  ;;  %v2715_v13 = vadd.f32 1.0, %v2651_v30  ;;  %v2716_v32 = vadd.f32 1.0, %v2652_v52 }
 0x3c7   : > { %v6323_v20 = vpop.f32.mrb[0].mxu1  ;;  %v2015_v47 = vadd.f32 -0.28449672, %v1951_v1  ;;  %v2653_v28 = vmul.f32 %v2589_v21, %v6215_v31  ;;  %v1888_v50 = vadd.f32 1.4214138, %v1824_v38  ;;  %v2338_v3 = vmul.f32 %v2274_v39, %v1378_v35 }
 0x3c8   : > { %v6328_v54 = vpop.f32.mrb[1].mxu1  ;;  %3772 = vrcp.f32 %v1506_v12  ;;  %v1443_v51 = vmul.f32 0.3275911, %v6321_v33  ;;  %v2461_v45 = vmul.f32 1.442695, %v2337_v56  ;;  %v2526_v30 = vmul.f32 %v3767_v48, %v2206_v58 }
 0x3c9   : > { %v6332_v7 = vpop.f32.mrb[2].mxu1  ;;  %v2079_v2 = vmul.f32 %v6282_v53, %v2015_v47  ;;  %3774 = vpow2.f32 %v2459_v5  ;;  %v1952_v52 = vmul.f32 %v6302_v42, %v1888_v50  ;;  %v6339_v31 = vmul.f32 0.70710677, %v6316_v4 }
 0x3ca   : > { %v3293_v18 = vpop.f32.mrb[3].mxu1  ;;  %v6335_v22 = vpop.eup %3768  ;;  %v1507_v14 = vadd.f32 1.0, %v1443_v51  ;;  %v6342_v21 = vmul.f32 %v2715_v13, %v6132_v10  ;;  %v2810_v5 = vpack.c.bf16 %v6027_v8, %v5983_v57  ;;  %v6348_v35 = vmul.f32 %v2716_v32, %v6161_v27 }
 0x3cb   : > { %v2143_v16 = vadd.f32 0.2548296, %v2079_v2  ;;  %v1697_v44 = vmul.f32 1.0614054, %v6335_v22  ;;  %v2717_v1 = vadd.f32 1.0, %v2653_v28  ;;  %v2590_v38 = vsub.f32 1.0, %v2526_v30 }
 0x3cc   : > { %v2016_v48 = vadd.f32 -0.28449672, %v1952_v52  ;;  %3776 = vrcp.f32 %v1507_v14  ;;  %v6351_v58 = vmul.f32 1.442695, %v2338_v3  ;;  %3068 = vmatprep.mubr.bf16.mxu1 %v2810_v5  ;;  %v6355_v57 = vand.u32 2147483647, %v6339_v31 }
 0x3cd   : > { %v2207_v56 = vmul.f32 %v6282_v53, %v2143_v16  ;;  %v1761_v39 = vadd.f32 -1.4531521, %v1697_v44  ;;  %3778 = vpow2.f32 %v2461_v45  ;;  %v3771_v10 = vpop.eup %3770  ;;  %v2809_v8 = vpack.c.bf16 %v5998_v6, %v5968_v9 }
 0x3ce   : > { %v2080_v12 = vmul.f32 %v6302_v42, %v2016_v48  ;;  %v2275_v53 = vsub.f32 0.0, %v6321_v33  ;;  %v2812_v47 = vpack.c.bf16 %v6139_v34, %v6072_v59  ;;  %v6365_v50 = vmul.f32 %v2717_v1, %v6210_v61 }
 0x3cf   : > { %v3295_v27 = vpop.f32.mrb[4].mxu1  ;;  %v2527_v13 = vmul.f32 %v3771_v10, %v2207_v56  ;;  %v1825_v32 = vmul.f32 %v6335_v22, %v1761_v39  ;;  %v1444_v2 = vmul.f32 0.3275911, %v6355_v57  ;;  %3069 = vmatmul.mubr.bf16.gmra.mrb[40].mxu1 %v2809_v8  ;;  %v2811_v9 = vpack.c.bf16 %v6100_v11, %v6054_v43 }
 0x3d0   : > { %v3296_v28 = vpop.f32.mrb[5].mxu1  ;;  %v2144_v51 = vadd.f32 0.2548296, %v2080_v12  ;;  %3076 = vmatprep.mubr.bf16.mxu1 %v2812_v47  ;;  %v2814_v59 = vpack.c.bf16 %v6257_v60, %v6206_v19  ;;  %v2813_v34 = vpack.c.bf16 %v6230_v15, %v6177_v41  ;;  %v2654_v52 = vmul.f32 %v2590_v38, %v6243_v40  ;;  %v6390_v40 = vld [vmem:[%s6568_s6] ss:$0 sm:$0xff] }
 0x3d1   : > { %v3298_v6 = vpop.f32.mrb[6].mxu1  ;;  %v2591_v45 = vsub.f32 1.0, %v2527_v13  ;;  %v1889_v3 = vadd.f32 1.4214138, %v1825_v32  ;;  %v1508_v16 = vadd.f32 1.0, %v1444_v2  ;;  %v2816_v43 = vpack.c.bf16 %v6348_v35, %v6326_v0 }
 0x3d2   : > { %v3299_v61 = vpop.f32.mrb[7].mxu1  ;;  %v6374_v30 = vpop.eup %3772  ;;  %v2208_v14 = vmul.f32 %v6302_v42, %v2144_v51  ;;  %v2815_v5 = vpack.c.bf16 %v6342_v21, %v6279_v24  ;;  %v2339_v1 = vmul.f32 %v2275_v53, %v6321_v33  ;;  %v3291_v48 = vadd.f32 %v6328_v54, %v6323_v20 }
 0x3d3   : > { %v3775_v11 = vpop.eup %3774  ;;  %v2655_v44 = vmul.f32 %v2591_v45, %v6263_v29  ;;  %v1953_v19 = vmul.f32 %v6335_v22, %v1889_v3  ;;  %v1698_v60 = vmul.f32 1.0614054, %v6374_v30  ;;  %3780 = vrcp.f32 %v1508_v16 }
 0x3d4   : > { %v2528_v42 = vmul.f32 %v3775_v11, %v2208_v14  ;;  %v3294_v10 = vadd.f32 %v3293_v18, %v6332_v7  ;;  %v2718_v12 = vadd.f32 1.0, %v2654_v52  ;;  %v2991_v13 = vadd.f32 %v3291_v48, %v6390_v40 }
 0x3d5   : > { %v2719_v29 = vadd.f32 1.0, %v2655_v44  ;;  %v2017_v56 = vadd.f32 -0.28449672, %v1953_v19  ;;  %v1762_v39 = vadd.f32 -1.4531521, %v1698_v60  ;;  %v3297_v32 = vadd.f32 %v3296_v28, %v3295_v27 }
 0x3d6   : > { %v6396_v38 = vpop.eup %3776  ;;  %v2592_v8 = vsub.f32 1.0, %v2528_v42  ;;  %3117 = vst [vmem:[%s6406_s17] sm:$0xff] %v2991_v13  ;;  %v2994_v7 = vadd.f32 %v3294_v10, %v6390_v40  ;;  %v3300_v18 = vadd.f32 %v3299_v61, %v3298_v6  ;;  %v2465_v45 = vmul.f32 1.442695, %v2339_v1 }
 0x3d7   : > { %v3779_v47 = vpop.eup %3778  ;;  %v6400_v51 = vmul.f32 %v2719_v29, %v6246_v23  ;;  %v2081_v33 = vmul.f32 %v6335_v22, %v2017_v56  ;;  %v1826_v20 = vmul.f32 %v6374_v30, %v1762_v39  ;;  %v1699_v54 = vmul.f32 1.0614054, %v6396_v38  ;;  %3077 = vmatmul.mubr.bf16.gmra.mrb[44].mxu1 %v2811_v9 }
 0x3d8   : > { %v2656_v53 = vmul.f32 %v2592_v8, %v6300_v36  ;;  %v2999_v23 = vadd.f32 %v3297_v32, %v6390_v40  ;;  %3084 = vmatprep.mubr.bf16.mxu1 %v2814_v59  ;;  %v2276_v3 = vsub.f32 0.0, %v6355_v57  ;;  %3118 = vst [vmem:[%s6406_s17 + $0x8] sm:$0xff] %v2994_v7  ;;  %v3002_v52 = vadd.f32 %v3300_v18, %v6390_v40 }
 0x3d9   : > { %v2145_v27 = vadd.f32 0.2548296, %v2081_v33  ;;  %v1890_v28 = vadd.f32 1.4214138, %v1826_v20  ;;  %v1763_v2 = vadd.f32 -1.4531521, %v1699_v54  ;;  %v2817_v36 = vpack.c.bf16 %v6400_v51, %v6365_v50 }
 0x3da   : > { %v2720_v9 = vadd.f32 1.0, %v2656_v53  ;;  %3119 = vst [vmem:[%s6406_s17 + $0x10] sm:$0xff] %v2999_v23  ;;  %v2782_v61 = vmul.f32 %v2718_v12, %v6234_v25  ;;  %3120 = vst [vmem:[%s6406_s17 + $0x18] sm:$0xff] %v3002_v52  ;;  %3782 = vpow2.f32 %v6351_v58  ;;  %v2340_v60 = vmul.f32 %v2276_v3, %v6355_v57 }
 0x3db   : > { %v1954_v14 = vmul.f32 %v6374_v30, %v1890_v28  ;;  %v1827_v6 = vmul.f32 %v6396_v38, %v1763_v2  ;;  %v2209_v59 = vmul.f32 %v6335_v22, %v2145_v27  ;;  %3784 = vpow2.f32 %v2465_v45 }
 0x3dc   : > { %v2784_v16 = vmul.f32 %v2720_v9, %v6271_v46  ;;  %v2467_v58 = vmul.f32 1.442695, %v2340_v60  ;;  %vm1249_vm12 = vcmp.ge.f32.partialorder %v6267_v63, 0.0  ;;  %vm1251_vm13 = vcmp.ge.f32.partialorder %v6310_v37, 0.0 }
 0x3dd   : > { %v2018_v11 = vadd.f32 -0.28449672, %v1954_v14  ;;  %v1891_v44 = vadd.f32 1.4214138, %v1827_v6  ;;  %v3781_v19 = vpop.eup %3780  ;;  %v2529_v25 = vmul.f32 %v3779_v47, %v2209_v59  ;;  %v1313_v63 = vsel %vm1249_vm12, 1.0, %v6589_v17 }
 0x3de   : > { %v2818_v42 = vpack.c.bf16 %v2784_v16, %v2782_v61  ;;  %v1700_v29 = vmul.f32 1.0614054, %v3781_v19  ;;  %3786 = vpow2.f32 %v2467_v58  ;;  %vm1250_vm14 = vcmp.ge.f32.partialorder %v6290_v26, 0.0 }
 0x3df   : > { %v2082_v1 = vmul.f32 %v6374_v30, %v2018_v11  ;;  %v1955_v48 = vmul.f32 %v6396_v38, %v1891_v44  ;;  %3085 = vmatmul.mubr.bf16.gmra.mrb[48].mxu1 %v2813_v34  ;;  %v2593_v41 = vsub.f32 1.0, %v2529_v25  ;;  %v1315_v28 = vsel %vm1251_vm13, 1.0, %v6589_v17 }
 0x3e0   : > { %v1764_v56 = vadd.f32 -1.4531521, %v1700_v29  ;;  %3092 = vmatprep.mubr.bf16.mxu1 %v2816_v43  ;;  %v1121_v21 = vmul.f32 0.5, %v6252_v55  ;;  %v1314_v14 = vsel %vm1250_vm14, 1.0, %v6589_v17  ;;  %vm1252_vm15 = vcmp.ge.f32.partialorder %v6339_v31, 0.0 }
 0x3e1   : > { %v2146_v46 = vadd.f32 0.2548296, %v2082_v1  ;;  %v2019_v22 = vadd.f32 -0.28449672, %v1955_v48  ;;  %v2657_v53 = vmul.f32 %v2593_v41, %v1313_v63  ;;  %v1316_v55 = vsel %vm1252_vm15, 1.0, %v6589_v17 }
 0x3e2   : > { %v3301_v57 = vpop.f32.mrb[8].mxu1  ;;  %v1828_v10 = vmul.f32 %v3781_v19, %v1764_v56  ;;  %v1124_v60 = vmul.f32 0.5, %v6316_v4 }
 0x3e3   : > { %v2083_v39 = vmul.f32 %v6396_v38, %v2019_v22  ;;  %v3302_v12 = vpop.f32.mrb[9].mxu1  ;;  %v2210_v15 = vmul.f32 %v6374_v30, %v2146_v46  ;;  %v2721_v37 = vadd.f32 1.0, %v2657_v53 }
 0x3e4   : > { %v3303_v8 = vadd.f32 %v3302_v12, %v3301_v57  ;;  %v3304_v13 = vpop.f32.mrb[10].mxu1  ;;  %v1892_v32 = vadd.f32 1.4214138, %v1828_v10  ;;  %v3783_v43 = vpop.eup %3782 }
 0x3e5   : > { %v2147_v34 = vadd.f32 0.2548296, %v2083_v39  ;;  %v3305_v47 = vpop.f32.mrb[11].mxu1  ;;  %v3785_v54 = vpop.eup %3784  ;;  %v2530_v7 = vmul.f32 %v3783_v43, %v2210_v15  ;;  %v2785_v26 = vmul.f32 %v2721_v37, %v1121_v21 }
 0x3e6   : > { %v3007_v0 = vadd.f32 %v3303_v8, %v6390_v40  ;;  %v3306_v35 = vadd.f32 %v3305_v47, %v3304_v13  ;;  %v1956_v20 = vmul.f32 %v3781_v19, %v1892_v32 }
 0x3e7   : > { %v2211_v33 = vmul.f32 %v6396_v38, %v2147_v34  ;;  %3093 = vmatmul.mubr.bf16.gmra.mrb[52].mxu1 %v2815_v5  ;;  %v2594_v2 = vsub.f32 1.0, %v2530_v7  ;;  %v1123_v5 = vmul.f32 0.5, %v6294_v62 }
 0x3e8   : > { %3121 = vst [vmem:[%s6406_s17 + $0x20] sm:$0xff] %v3007_v0  ;;  %v3010_v30 = vadd.f32 %v3306_v35, %v6390_v40  ;;  %v2020_v18 = vadd.f32 -0.28449672, %v1956_v20  ;;  %3100 = vmatprep.mubr.bf16.mxu1 %v2818_v42  ;;  %v3787_v52 = vpop.eup %3786 }
 0x3e9   : > { %v2531_v23 = vmul.f32 %v3785_v54, %v2211_v33  ;;  %v2658_v6 = vmul.f32 %v2594_v2, %v1314_v14 }
 0x3ea   : > { %3122 = vst [vmem:[%s6406_s17 + $0x28] sm:$0xff] %v3010_v30  ;;  %v2084_v27 = vmul.f32 %v3781_v19, %v2020_v18 }
 0x3eb   : > { %v2595_v38 = vsub.f32 1.0, %v2531_v23  ;;  %v2722_v62 = vadd.f32 1.0, %v2658_v6 }
 0x3ec   : > { %v2148_v24 = vadd.f32 0.2548296, %v2084_v27 }
 0x3ed   : > { %v2659_v9 = vmul.f32 %v2595_v38, %v1315_v28 }
 0x3ee   : > { %v2212_v3 = vmul.f32 %v3781_v19, %v2148_v24  ;;  %v1122_v19 = vmul.f32 0.5, %v6275_v49 }
 0x3ef   : > { %v2723_v45 = vadd.f32 1.0, %v2659_v9  ;;  %3101 = vmatmul.mubr.bf16.gmra.mrb[56].mxu1 %v2817_v36 }
 0x3f0   : > { %v2532_v16 = vmul.f32 %v3787_v52, %v2212_v3  ;;  %v2786_v42 = vmul.f32 %v2722_v62, %v1122_v19 }
 0x3f1   : > { %v2787_v61 = vmul.f32 %v2723_v45, %v1123_v5 }
 0x3f2   : > { %v2596_v59 = vsub.f32 1.0, %v2532_v16 }
 0x3f3   : > { %v2819_v11 = vpack.c.bf16 %v2787_v61, %v2785_v26 }
 0x3f4   : > { %v2660_v44 = vmul.f32 %v2596_v59, %v1316_v55 }
 0x3f6   : > { %v2724_v31 = vadd.f32 1.0, %v2660_v44 }
 0x3f8   : > { %v2788_v50 = vmul.f32 %v2724_v31, %v1124_v60 }
 0x3fa   : > { %v2820_v51 = vpack.c.bf16 %v2788_v50, %v2786_v42 }
 0x3fc   : > { %3108 = vmatprep.mubr.bf16.mxu1 %v2820_v51 }
 0x3fd   : > { %3109 = vmatmul.mubr.bf16.gmra.mrb[60].mxu1 %v2819_v11 }
 0x401   : > { %v3307_v36 = vpop.f32.mrb[12].mxu1 }
 0x402   : > { %v3308_v1 = vpop.f32.mrb[13].mxu1 }
 0x403   : > { %v3309_v48 = vadd.f32 %v3308_v1, %v3307_v36  ;;  %v3310_v29 = vpop.f32.mrb[14].mxu1 }
 0x404   : > { %v3311_v17 = vpop.f32.mrb[15].mxu1 }
 0x405   : > { %v3015_v25 = vadd.f32 %v3309_v48, %v6390_v40  ;;  %v3312_v46 = vadd.f32 %v3311_v17, %v3310_v29 }
 0x407   : > { %3123 = vst [vmem:[%s6406_s17 + $0x30] sm:$0xff] %v3015_v25  ;;  %v3018_v49 = vadd.f32 %v3312_v46, %v6390_v40 }
 0x409   : > { %3124 = vst [vmem:[%s6406_s17 + $0x38] sm:$0xff] %v3018_v49  ;;  %v3313_v4 = vpop.f32.mrb[16].mxu1 }
 0x40a   : > { %v3314_v22 = vpop.f32.mrb[17].mxu1 }
 0x40b   : > { %v3315_v56 = vadd.f32 %v3314_v22, %v3313_v4  ;;  %v3316_v58 = vpop.f32.mrb[18].mxu1 }
 0x40c   : > { %v3317_v57 = vpop.f32.mrb[19].mxu1 }
 0x40d   : > { %v3023_v39 = vadd.f32 %v3315_v56, %v6390_v40  ;;  %v3318_v10 = vadd.f32 %v3317_v57, %v3316_v58 }
 0x40f   : > { %3125 = vst [vmem:[%s6406_s17 + $0x40] sm:$0xff] %v3023_v39  ;;  %v3026_v12 = vadd.f32 %v3318_v10, %v6390_v40 }
 0x411   : > { %3126 = vst [vmem:[%s6406_s17 + $0x48] sm:$0xff] %v3026_v12  ;;  %v3319_v8 = vpop.f32.mrb[20].mxu1 }
 0x412   : > { %v3320_v13 = vpop.f32.mrb[21].mxu1 }
 0x413   : > { %v3321_v41 = vadd.f32 %v3320_v13, %v3319_v8  ;;  %v3322_v15 = vpop.f32.mrb[22].mxu1 }
 0x414   : > { %v3323_v34 = vpop.f32.mrb[23].mxu1 }
 0x415   : > { %v3031_v32 = vadd.f32 %v3321_v41, %v6390_v40  ;;  %v3324_v47 = vadd.f32 %v3323_v34, %v3322_v15 }
 0x417   : > { %3127 = vst [vmem:[%s6406_s17 + $0x50] sm:$0xff] %v3031_v32  ;;  %v3034_v0 = vadd.f32 %v3324_v47, %v6390_v40 }
 0x419   : > { %3128 = vst [vmem:[%s6406_s17 + $0x58] sm:$0xff] %v3034_v0  ;;  %v3325_v35 = vpop.f32.mrb[24].mxu1 }
 0x41a   : > { %v3326_v43 = vpop.f32.mrb[25].mxu1 }
 0x41b   : > { %v3327_v33 = vadd.f32 %v3326_v43, %v3325_v35  ;;  %v3328_v20 = vpop.f32.mrb[26].mxu1 }
 0x41c   : > { %v3329_v54 = vpop.f32.mrb[27].mxu1 }
 0x41d   : > { %v3039_v63 = vadd.f32 %v3327_v33, %v6390_v40  ;;  %v3330_v30 = vadd.f32 %v3329_v54, %v3328_v20 }
 0x41f   : > { %3129 = vst [vmem:[%s6406_s17 + $0x60] sm:$0xff] %v3039_v63  ;;  %v3042_v53 = vadd.f32 %v3330_v30, %v6390_v40 }
 0x421   : > { %3130 = vst [vmem:[%s6406_s17 + $0x68] sm:$0xff] %v3042_v53  ;;  %v3331_v7 = vpop.f32.mrb[28].mxu1 }
 0x422   : > { %v3332_v23 = vpop.f32.mrb[29].mxu1 }
 0x423   : > { %v3333_v18 = vadd.f32 %v3332_v23, %v3331_v7  ;;  %v3334_v38 = vpop.f32.mrb[30].mxu1 }
 0x424   : > { %v3335_v27 = vpop.f32.mrb[31].mxu1 }
 0x425   : > { %v3047_v28 = vadd.f32 %v3333_v18, %v6390_v40  ;;  %v3336_v37 = vadd.f32 %v3335_v27, %v3334_v38 }
 0x427   : > { %3131 = vst [vmem:[%s6406_s17 + $0x70] sm:$0xff] %v3047_v28  ;;  %v3050_v2 = vadd.f32 %v3336_v37, %v6390_v40 }
 0x429   : > { %3132 = vst [vmem:[%s6406_s17 + $0x78] sm:$0xff] %v3050_v2 }
 0x42a   : > { %v3337_v9 = vpop.f32.mrb[32].mxu1 }
 0x42b   : > { %v3338_v24 = vpop.f32.mrb[33].mxu1 }
 0x42c   : > { %v3339_v21 = vadd.f32 %v3338_v24, %v3337_v9  ;;  %v3340_v5 = vpop.f32.mrb[34].mxu1 }
 0x42d   : > { %v3341_v45 = vpop.f32.mrb[35].mxu1 }
 0x42e   : > { %v3055_v3 = vadd.f32 %v3339_v21, %v6390_v40  ;;  %v3342_v52 = vadd.f32 %v3341_v45, %v3340_v5 }
 0x430   : > { %3133 = vst [vmem:[%s6406_s17 + $0x80] sm:$0xff] %v3055_v3  ;;  %v3058_v14 = vadd.f32 %v3342_v52, %v6390_v40 }
 0x432   : > { %3134 = vst [vmem:[%s6406_s17 + $0x88] sm:$0xff] %v3058_v14  ;;  %v3343_v26 = vpop.f32.mrb[36].mxu1 }
 0x433   : > { %v3344_v6 = vpop.f32.mrb[37].mxu1 }
 0x434   : > { %v3345_v61 = vadd.f32 %v3344_v6, %v3343_v26  ;;  %v3346_v16 = vpop.f32.mrb[38].mxu1 }
 0x435   : > { %v3347_v59 = vpop.f32.mrb[39].mxu1 }
 0x436   : > { %v3063_v11 = vadd.f32 %v3345_v61, %v6390_v40  ;;  %v3348_v55 = vadd.f32 %v3347_v59, %v3346_v16 }
 0x438   : > { %3135 = vst [vmem:[%s6406_s17 + $0x90] sm:$0xff] %v3063_v11  ;;  %v3066_v62 = vadd.f32 %v3348_v55, %v6390_v40 }
 0x43a   : > { %3136 = vst [vmem:[%s6406_s17 + $0x98] sm:$0xff] %v3066_v62 }
 0x4a2   : > { %v3349_v44 = vpop.f32.mrb[40].mxu1 }
 0x4a3   : > { %v3350_v19 = vpop.f32.mrb[41].mxu1 }
 0x4a4   : > { %v3351_v60 = vadd.f32 %v3350_v19, %v3349_v44  ;;  %v3352_v31 = vpop.f32.mrb[42].mxu1 }
 0x4a5   : > { %v3353_v42 = vpop.f32.mrb[43].mxu1 }
 0x4a6   : > { %v3071_v50 = vadd.f32 %v3351_v60, %v6390_v40  ;;  %v3354_v51 = vadd.f32 %v3353_v42, %v3352_v31 }
 0x4a8   : > { %3137 = vst [vmem:[%s6406_s17 + $0xa0] sm:$0xff] %v3071_v50  ;;  %v3074_v36 = vadd.f32 %v3354_v51, %v6390_v40 }
 0x4aa   : > { %3138 = vst [vmem:[%s6406_s17 + $0xa8] sm:$0xff] %v3074_v36  ;;  %v3355_v1 = vpop.f32.mrb[44].mxu1 }
 0x4ab   : > { %v3356_v48 = vpop.f32.mrb[45].mxu1 }
 0x4ac   : > { %v3357_v29 = vadd.f32 %v3356_v48, %v3355_v1  ;;  %v3358_v17 = vpop.f32.mrb[46].mxu1 }
 0x4ad   : > { %v3359_v25 = vpop.f32.mrb[47].mxu1 }
 0x4ae   : > { %v3079_v46 = vadd.f32 %v3357_v29, %v6390_v40  ;;  %v3360_v49 = vadd.f32 %v3359_v25, %v3358_v17 }
 0x4b0   : > { %3139 = vst [vmem:[%s6406_s17 + $0xb0] sm:$0xff] %v3079_v46  ;;  %v3082_v4 = vadd.f32 %v3360_v49, %v6390_v40 }
 0x4b2   : > { %3140 = vst [vmem:[%s6406_s17 + $0xb8] sm:$0xff] %v3082_v4  ;;  %v3361_v22 = vpop.f32.mrb[48].mxu1 }
 0x4b3   : > { %v3362_v56 = vpop.f32.mrb[49].mxu1 }
 0x4b4   : > { %v3363_v58 = vadd.f32 %v3362_v56, %v3361_v22  ;;  %v3364_v57 = vpop.f32.mrb[50].mxu1 }
 0x4b5   : > { %v3365_v39 = vpop.f32.mrb[51].mxu1 }
 0x4b6   : > { %v3087_v10 = vadd.f32 %v3363_v58, %v6390_v40  ;;  %v3366_v12 = vadd.f32 %v3365_v39, %v3364_v57 }
 0x4b8   : > { %3141 = vst [vmem:[%s6406_s17 + $0xc0] sm:$0xff] %v3087_v10  ;;  %v3090_v8 = vadd.f32 %v3366_v12, %v6390_v40 }
 0x4ba   : > { %3142 = vst [vmem:[%s6406_s17 + $0xc8] sm:$0xff] %v3090_v8  ;;  %v3367_v13 = vpop.f32.mrb[52].mxu1 }
 0x4bb   : > { %v3368_v41 = vpop.f32.mrb[53].mxu1 }
 0x4bc   : > { %v3369_v15 = vadd.f32 %v3368_v41, %v3367_v13  ;;  %v3370_v34 = vpop.f32.mrb[54].mxu1 }
 0x4bd   : > { %v3371_v32 = vpop.f32.mrb[55].mxu1 }
 0x4be   : > { %v3095_v47 = vadd.f32 %v3369_v15, %v6390_v40  ;;  %v3372_v0 = vadd.f32 %v3371_v32, %v3370_v34 }
 0x4c0   : > { %3143 = vst [vmem:[%s6406_s17 + $0xd0] sm:$0xff] %v3095_v47  ;;  %v3098_v35 = vadd.f32 %v3372_v0, %v6390_v40 }
 0x4c2   : > { %3144 = vst [vmem:[%s6406_s17 + $0xd8] sm:$0xff] %v3098_v35  ;;  %v3373_v43 = vpop.f32.mrb[56].mxu1 }
 0x4c3   : > { %v3374_v33 = vpop.f32.mrb[57].mxu1 }
 0x4c4   : > { %v3375_v20 = vadd.f32 %v3374_v33, %v3373_v43  ;;  %v3376_v54 = vpop.f32.mrb[58].mxu1 }
 0x4c5   : > { %v3377_v63 = vpop.f32.mrb[59].mxu1 }
 0x4c6   : > { %v3103_v30 = vadd.f32 %v3375_v20, %v6390_v40  ;;  %v3378_v53 = vadd.f32 %v3377_v63, %v3376_v54 }
 0x4c8   : > { %3145 = vst [vmem:[%s6406_s17 + $0xe0] sm:$0xff] %v3103_v30  ;;  %v3106_v7 = vadd.f32 %v3378_v53, %v6390_v40 }
 0x4ca   : > { %3146 = vst [vmem:[%s6406_s17 + $0xe8] sm:$0xff] %v3106_v7 }
 0x4d0   : > { %v3379_v23 = vpop.f32.mrb[60].mxu1 }
 0x4d1   : > { %v3380_v18 = vpop.f32.mrb[61].mxu1 }
 0x4d2   : > { %v3381_v38 = vadd.f32 %v3380_v18, %v3379_v23  ;;  %v3382_v27 = vpop.f32.mrb[62].mxu1 }
 0x4d3   : > { %v3383_v28 = vpop.f32.mrb[63].mxu1 }
 0x4d4   : > { %v3111_v37 = vadd.f32 %v3381_v38, %v6390_v40  ;;  %v3384_v2 = vadd.f32 %v3383_v28, %v3382_v27 }
 0x4d6   : > { %3147 = vst [vmem:[%s6406_s17 + $0xf0] sm:$0xff] %v3111_v37  ;;  %v3114_v9 = vadd.f32 %v3384_v2, %v6390_v40 }
 0x4d8   : > { %3148 = vst [vmem:[%s6406_s17 + $0xf8] sm:$0xff] %v3114_v9 }
 0x4d9   : > { %3801 = shalt.err (!%p3798_p3)
}
 0x4da   : > { %s3802_s20 = scalar_lea.hbm %s6512_s14, 4096  ;;  %s3806_s23 = scalar_lea.hbm %s6569_s7, 8192 }
 0x4db   : > { %p3803_p4 = scmp.ne.s32.totalorder %s6512_s14, %s3802_s20  ;;  %p3807_p9 = scmp.lt.u32.totalorder %s6512_s14, %s6569_s7 }
 0x4dc   : > { %p3808_p10 = scmp.lt.u32.totalorder %s3806_s23, %s3802_s20  ;;  %p3810_p12 = scmp.lt.u32.totalorder %s3802_s20, %s6512_s14 }
 0x4dd   : > { %p3804_p7 = pnand %p3803_p4, %p3935_p5 }
 0x4de   : > { %p3809_p11 = por %p3808_p10, %p3807_p9 }
 0x4df   : > { %p3805_p8 = pneg %p3804_p7 }
 0x4e0   : > { %p3811_p13 = por %p3810_p12, %p3809_p11 }
 0x4e2   : > { %p3812_p0 = pnand %p3811_p13, %p3805_p8 }
 0x4e4   : > { %3815 = shalt.err (!%p3812_p0)
}
 0x4e5   : > { %s3855_s9 = smov 128   ;;  %s3856_s13 = smov 8  }
 0x4e6   : > { %3385 = dma.vmem_to_hbm [thread:$0]  (%p3935_p5), %s6514_s8, 4096, %s6512_s14, %s6521_s28, %s3855_s9, %s3855_s9, %s3856_s13  }
 0x4e7 PF: > { %p3391_p1 = scmp.ge.s32.totalorder %s3850_s27, 2  ;;  %s3178_s15 = sand.u32 1, %s3838_s24  }
 0x4e8   : > { %s3179_s16 = scalar_lea.sflag [#allocation3], %s3178_s15 }
 0x4e9   : > { %p3388_p2 = pnand %p3391_p1, %p3939_p6 }
 0x4eb   : > { %3833 = dma.done.wait (!%p3388_p2), %s3179_s16, 4096  }
 0x4ec   : > { %3835 = vsyncadd (!%p3388_p2), %s3179_s16, 4294963200  ;;  %p17_p3 = scmp.ge.s32.totalorder %s3922_s30, 4   ;;  %s6677_s24 = smov %s3842_s25 }
 0x4ed   : > { %s6678_s25 = smov %s3846_s26  ;;  %s6679_s26 = smov %s3933_s10 }
 0x4ee   : > { %s6680_s27 = smov %s3922_s30  ;;  %19 = sbr.rel (!%p17_p3) target bundleno = 3 (0x3), region = 83 }
 0x4f5   :  { %3184 = vsyncpa [#allocation3], 1 }
 0x4f6   :  { %3186 = vsyncpa [#allocation3 + $0x1], 1 }

</bundles_post_ra>
